<compile_context>
chip_gen: v5e
topology: v5e:2x2
jax: 0.10.0
libtpu: 0.0.40
codegen_flags: <defaults>
</compile_context>

<pallas_src>
import functools
import math

import jax
import jax.numpy as jnp
from jax.experimental import pallas as pl
from jax.experimental.pallas import tpu as pltpu

# ----------------------------- configuration --------------------------------
BATCH = 2
IMG_SIZE = 32
EMBED_DIM = 32          # embed_dim
NUM_CLASSES = 8         # num_classes
NUM_QUERIES = 16        # num_queries
NUM_DEC_LAYERS = 3      # transformer.decoder.num_layers
FFN_DIM = 2 * EMBED_DIM


def _round_up(x, m):
    return ((x + m - 1) // m) * m


# ------------------------------ Pallas kernels ------------------------------
def _linear_kernel(x_ref, w_ref, b_ref, o_ref, *, activation):
    # bf16 MXU operands, f32 accumulate; bias/ReLU in f32.
    y = jnp.dot(x_ref[...], w_ref[...], preferred_element_type=jnp.float32)
    y = y + b_ref[...]
    if activation == "relu":
        y = jnp.maximum(y, 0.0)
    o_ref[...] = y.astype(o_ref.dtype)


def pallas_linear(x, w, b, activation="none", block_rows=256,
                  out_dtype=jnp.float32):
    """(M, K) @ (K, N) + b, optional ReLU.  M-tiled grid, bf16 MXU inputs.

    `out_dtype` lets consumers that only need bf16 (e.g. the packed K/V
    projection) skip an f32 HBM roundtrip.
    """
    m, k = x.shape
    n = w.shape[1]
    xb = x.astype(jnp.bfloat16)
    wb = w.astype(jnp.bfloat16)
    bf = b.reshape(1, n).astype(jnp.float32)

    m_pad = _round_up(m, 8)
    tm = min(block_rows, m_pad)
    m_pad = _round_up(m_pad, tm)
    if m_pad != m:
        xb = jnp.pad(xb, ((0, m_pad - m), (0, 0)))

    out = pl.pallas_call(
        functools.partial(_linear_kernel, activation=activation),
        grid=(m_pad // tm,),
        in_specs=[
            pl.BlockSpec((tm, k), lambda i: (i, 0)),
            pl.BlockSpec((k, n), lambda i: (0, 0)),
            pl.BlockSpec((1, n), lambda i: (0, 0)),
        ],
        out_specs=pl.BlockSpec((tm, n), lambda i: (i, 0)),
        out_shape=jax.ShapeDtypeStruct((m_pad, n), out_dtype),
        compiler_params=pltpu.CompilerParams(
            dimension_semantics=("parallel",)),
    )(xb, wb, bf)
    return out[:m] if m_pad != m else out


def _decoder_kernel(k_ref, v_ref, qpos_ref, tgt0_ref, ref0_ref,
                    wq_ref, bq_ref, wo_ref, bo_ref, ln1g_ref, ln1b_ref,
                    wf1_ref, bf1_ref, wf2_ref, bf2_ref, ln2g_ref, ln2b_ref,
                    wc_ref, bc_ref, w1_ref, b1_ref, w2_ref, b2_ref,
                    w3_ref, b3_ref,
                    logits_ref, boxes_ref,
                    tgt_sc, ref_sc,
                    *, scale, ln_eps, inv_eps):
    """One decoder layer + its detection head per grid step (grid=(L,)).

    tgt / reference are carried across layers in VMEM scratch.  Shared head
    weights (class linear, bbox MLP) have constant block indices and stay
    VMEM-resident across the whole grid.
    """
    lvl = pl.program_id(0)

    @pl.when(lvl == 0)
    def _init():
        tgt_sc[...] = tgt0_ref[...]
        ref_sc[...] = ref0_ref[...]

    def mm(x, w):
        return jnp.dot(x.astype(jnp.bfloat16), w.astype(jnp.bfloat16),
                       preferred_element_type=jnp.float32)

    def layernorm(x, g, b):
        mu = jnp.mean(x, axis=-1, keepdims=True)
        xc = x - mu
        var = jnp.mean(xc * xc, axis=-1, keepdims=True)
        return xc * jax.lax.rsqrt(var + ln_eps) * g + b

    batch = k_ref.shape[0]
    tgt = tgt_sc[...]                                    # (B*Q, D) f32
    n_q = tgt.shape[0] // batch

    # ---- cross-attention (dense stand-in for deformable attention) ----
    q = mm(tgt + qpos_ref[...], wq_ref[...]) + bq_ref[...]          # (B*Q, D)
    attn_parts = []
    for b in range(batch):                               # static unroll, B tiny
        qb = q[b * n_q:(b + 1) * n_q, :]                 # (Q, D)
        kb = k_ref[b]                                    # (S, D) bf16
        vb = v_ref[b]                                    # (S, D) bf16
        s = jax.lax.dot_general(qb.astype(jnp.bfloat16), kb,
                                (((1,), (1,)), ((), ())),
                                preferred_element_type=jnp.float32) * scale
        s = s - jnp.max(s, axis=-1, keepdims=True)
        p = jnp.exp(s)
        p = p * pl.reciprocal(jnp.sum(p, axis=-1, keepdims=True), approx=True)
        attn_parts.append(jnp.dot(p.astype(jnp.bfloat16), vb,
                                  preferred_element_type=jnp.float32))
    attn = jnp.concatenate(attn_parts, axis=0)           # (B*Q, D)

    o = mm(attn, wo_ref[...]) + bo_ref[...]
    tgt = layernorm(tgt + o, ln1g_ref[...], ln1b_ref[...])

    # ---- FFN ----
    h = jnp.maximum(mm(tgt, wf1_ref[...]) + bf1_ref[...], 0.0)
    h = mm(h, wf2_ref[...]) + bf2_ref[...]
    tgt = layernorm(tgt + h, ln2g_ref[...], ln2b_ref[...])
    tgt_sc[...] = tgt

    # ---- detection head (class linear, shared weights) ----
    logits_ref[...] = mm(tgt, wc_ref[...]) + bc_ref[...]

    # ---- bbox MLP + iterative box refinement (shared weights, per-layer b3) ----
    hb = jnp.maximum(mm(tgt, w1_ref[...]) + b1_ref[...], 0.0)
    hb = jnp.maximum(mm(hb, w2_ref[...]) + b2_ref[...], 0.0)
    delta = mm(hb, w3_ref[...]) + b3_ref[...]

    r = jnp.clip(ref_sc[...], 0.0, 1.0)
    r1 = jnp.maximum(r, inv_eps)
    r2 = jnp.maximum(1.0 - r, inv_eps)
    new_ref = jax.nn.sigmoid(delta + jnp.log(r1 / r2))   # == outputs_coord[lvl]
    ref_sc[...] = new_ref
    boxes_ref[...] = new_ref


def pallas_decoder_and_heads(k_all, v_all, qpos, tgt0, ref0, dec, params,
                             ln_eps=1e-5, inv_eps=1e-3):
    """Fused decoder stack + per-layer heads.  Returns (logits (L,B*Q,C),
    boxes (L,B*Q,4))."""
    L, B, S, D = k_all.shape
    BQ = tgt0.shape[0]
    C = params["class_w"].shape[1]
    F = dec["wf1"].shape[-1]
    scale = 1.0 / math.sqrt(D)
    bf16 = jnp.bfloat16

    shared2 = lambda l: (0, 0)
    perl3 = lambda l: (l, 0, 0)
    perl4 = lambda l: (l, 0, 0, 0)

    in_specs = [
        pl.BlockSpec((None, B, S, D), perl4),     # k_all (per layer)
        pl.BlockSpec((None, B, S, D), perl4),     # v_all (per layer)
        pl.BlockSpec((BQ, D), shared2),           # qpos
        pl.BlockSpec((BQ, D), shared2),           # tgt0
        pl.BlockSpec((BQ, 4), shared2),           # ref0
        pl.BlockSpec((None, D, D), perl3),        # wq
        pl.BlockSpec((None, 1, D), perl3),        # bq
        pl.BlockSpec((None, D, D), perl3),        # wo
        pl.BlockSpec((None, 1, D), perl3),        # bo
        pl.BlockSpec((None, 1, D), perl3),        # ln1g
        pl.BlockSpec((None, 1, D), perl3),        # ln1b
        pl.BlockSpec((None, D, F), perl3),        # wf1
        pl.BlockSpec((None, 1, F), perl3),        # bf1
        pl.BlockSpec((None, F, D), perl3),        # wf2
        pl.BlockSpec((None, 1, D), perl3),        # bf2
        pl.BlockSpec((None, 1, D), perl3),        # ln2g
        pl.BlockSpec((None, 1, D), perl3),        # ln2b
        pl.BlockSpec((D, C), shared2),            # class_w (shared, no re-DMA)
        pl.BlockSpec((1, C), shared2),            # class_b
        pl.BlockSpec((D, D), shared2),            # bbox_w1
        pl.BlockSpec((1, D), shared2),            # bbox_b1
        pl.BlockSpec((D, D), shared2),            # bbox_w2
        pl.BlockSpec((1, D), shared2),            # bbox_b2
        pl.BlockSpec((D, 4), shared2),            # bbox_w3
        pl.BlockSpec((None, 1, 4), perl3),        # bbox_b3 (per layer)
    ]
    out_specs = [
        pl.BlockSpec((None, BQ, C), perl3),
        pl.BlockSpec((None, BQ, 4), perl3),
    ]

    logits, boxes = pl.pallas_call(
        functools.partial(_decoder_kernel, scale=scale,
                          ln_eps=ln_eps, inv_eps=inv_eps),
        grid=(L,),
        in_specs=in_specs,
        out_specs=out_specs,
        out_shape=[
            jax.ShapeDtypeStruct((L, BQ, C), jnp.float32),
            jax.ShapeDtypeStruct((L, BQ, 4), jnp.float32),
        ],
        scratch_shapes=[
            pltpu.VMEM((BQ, D), jnp.float32),     # tgt carry
            pltpu.VMEM((BQ, 4), jnp.float32),     # reference carry
        ],
        compiler_params=pltpu.CompilerParams(
            dimension_semantics=("arbitrary",)),  # sequential carry over layers
    )(k_all, v_all, qpos, tgt0, ref0,
      dec["wq"].astype(bf16), dec["bq"], dec["wo"].astype(bf16), dec["bo"],
      dec["ln1g"], dec["ln1b"],
      dec["wf1"].astype(bf16), dec["bf1"], dec["wf2"].astype(bf16), dec["bf2"],
      dec["ln2g"], dec["ln2b"],
      params["class_w"].astype(bf16), params["class_b"],
      params["bbox_w1"].astype(bf16), params["bbox_b1"],
      params["bbox_w2"].astype(bf16), params["bbox_b2"],
      params["bbox_w3"].astype(bf16), params["bbox_b3"])
    return logits, boxes


# ------------------------------- JAX glue ------------------------------------
def inverse_sigmoid(x, eps=1e-3):
    x = jnp.clip(x, 0.0, 1.0)
    x1 = jnp.maximum(x, eps)
    x2 = jnp.maximum(1.0 - x, eps)
    return jnp.log(x1 / x2)


def im2col(x, k=3, stride=2, pad=1):
    """x: (B, H, W, C) NHWC -> (B, Ho, Wo, k*k*C) patch slab (plain-JAX glue)."""
    xp = jnp.pad(x, ((0, 0), (pad, pad), (pad, pad), (0, 0)))
    _, hp, wp, _ = xp.shape
    ho = (hp - k) // stride + 1
    wo = (wp - k) // stride + 1
    cols = []
    for di in range(k):
        for dj in range(k):
            cols.append(xp[:, di:di + stride * ho:stride,
                           dj:dj + stride * wo:stride, :])
    return jnp.concatenate(cols, axis=-1)


def sine_position_embedding(mask, num_pos_feats, temperature=10000.0):
    """PositionEmbeddingSine on a boolean padding mask, NHWC output (B,H,W,2P)."""
    not_mask = (~mask).astype(jnp.float32)
    y_embed = jnp.cumsum(not_mask, axis=1)
    x_embed = jnp.cumsum(not_mask, axis=2)
    eps = 1e-6
    scale = 2.0 * math.pi
    y_embed = (y_embed - 0.5) / (y_embed[:, -1:, :] + eps) * scale
    x_embed = (x_embed - 0.5) / (x_embed[:, :, -1:] + eps) * scale
    dim_t = jnp.arange(num_pos_feats, dtype=jnp.float32)
    dim_t = temperature ** (2.0 * jnp.floor(dim_t / 2.0) / num_pos_feats)
    b, hf, wf = x_embed.shape
    pos_x = x_embed[..., None] / dim_t
    pos_y = y_embed[..., None] / dim_t
    pos_x = jnp.stack([jnp.sin(pos_x[..., 0::2]), jnp.cos(pos_x[..., 1::2])],
                      axis=-1).reshape(b, hf, wf, -1)
    pos_y = jnp.stack([jnp.sin(pos_y[..., 0::2]), jnp.cos(pos_y[..., 1::2])],
                      axis=-1).reshape(b, hf, wf, -1)
    return jnp.concatenate([pos_y, pos_x], axis=-1)


# --------------------------- parameter construction --------------------------
def init_params(key):
    D, C, Q, L, F = EMBED_DIM, NUM_CLASSES, NUM_QUERIES, NUM_DEC_LAYERS, FFN_DIM
    keys = iter(jax.random.split(key, 64))
    p = {}
    p["pixel_mean"] = jnp.array([123.675, 116.28, 103.53], jnp.float32)
    p["pixel_std"] = jnp.array([58.395, 57.12, 57.375], jnp.float32)

    def lin_init(k, fan_in, shape):
        bound = 1.0 / math.sqrt(fan_in)
        return jax.random.uniform(k, shape, jnp.float32, -bound, bound)

    # backbone stand-in: 5 strided 3x3 convs (levels = outputs of the last 3)
    # TODO(synk): the real ResNet backbone is an injected module; deterministic stand-in.
    chans = [3, 16, 24, 32, 48, 64]
    backbone = []
    for cin, cout in zip(chans[:-1], chans[1:]):
        w = lin_init(next(keys), 9 * cin, (9 * cin, cout))
        backbone.append((w, jnp.zeros((cout,), jnp.float32)))
    p["backbone"] = backbone

    # neck: per-level 1x1 conv to embed_dim, xavier_uniform weight, zero bias (per __init__)
    # TODO(synk): GroupNorm inside the ChannelMapper neck is omitted.
    neck = []
    for cin in chans[3:]:
        limit = math.sqrt(6.0 / (cin + D))
        w = jax.random.uniform(next(keys), (cin, D), jnp.float32, -limit, limit)
        neck.append((w, jnp.zeros((D,), jnp.float32)))
    p["neck"] = neck

    # query embeddings (per __init__): tgt zeros, refpoints = clamp(inv_sigmoid(U(0,1)), -3, 3)
    p["tgt_embed"] = jnp.zeros((Q, D), jnp.float32)
    ref = jax.random.uniform(next(keys), (Q, 4), jnp.float32, 0.0, 1.0)
    p["refpoint_embed"] = jnp.clip(inverse_sigmoid(ref), -3.0, 3.0)

    # class_embed: default Linear init, bias = -log((1-p)/p); shared across levels (deepcopy)
    bias_value = -math.log((1.0 - 0.01) / 0.01)
    p["class_w"] = lin_init(next(keys), D, (D, C))
    p["class_b"] = jnp.full((1, C), bias_value, jnp.float32)

    # bbox_embed MLP(D, D, 4, 3): last layer weight/bias zero; copies share weights,
    # only bbox_embed[0].layers[-1].bias[2:] = -2.0 differs per level.
    p["bbox_w1"] = lin_init(next(keys), D, (D, D))
    p["bbox_b1"] = lin_init(next(keys), D, (1, D))
    p["bbox_w2"] = lin_init(next(keys), D, (D, D))
    p["bbox_b2"] = lin_init(next(keys), D, (1, D))
    p["bbox_w3"] = jnp.zeros((D, 4), jnp.float32)
    b3 = jnp.zeros((L, 1, 4), jnp.float32)
    b3 = b3.at[0, 0, 2:].set(-2.0)
    p["bbox_b3"] = b3

    # transformer stand-in parameters
    # TODO(synk): multi-scale deformable attention transformer is an injected module;
    #             replaced by a dense cross-attention decoder stand-in.
    p["ref_point_proj_w"] = lin_init(next(keys), 4, (4, D))
    p["ref_point_proj_b"] = jnp.zeros((D,), jnp.float32)

    def stack(fn):
        return jnp.stack([fn(next(keys)) for _ in range(L)])

    p["decoder"] = {
        "wq": stack(lambda k: lin_init(k, D, (D, D))),
        "bq": jnp.zeros((L, 1, D), jnp.float32),
        "wk": stack(lambda k: lin_init(k, D, (D, D))),
        "bk": jnp.zeros((L, 1, D), jnp.float32),
        "wv": stack(lambda k: lin_init(k, D, (D, D))),
        "bv": jnp.zeros((L, 1, D), jnp.float32),
        "wo": stack(lambda k: lin_init(k, D, (D, D))),
        "bo": jnp.zeros((L, 1, D), jnp.float32),
        "ln1g": jnp.ones((L, 1, D), jnp.float32),
        "ln1b": jnp.zeros((L, 1, D), jnp.float32),
        "wf1": stack(lambda k: lin_init(k, D, (D, F))),
        "bf1": jnp.zeros((L, 1, F), jnp.float32),
        "wf2": stack(lambda k: lin_init(k, F, (F, D))),
        "bf2": jnp.zeros((L, 1, D), jnp.float32),
        "ln2g": jnp.ones((L, 1, D), jnp.float32),
        "ln2b": jnp.zeros((L, 1, D), jnp.float32),
    }
    return p


# ------------------------------ forward pass ---------------------------------
def dab_deformable_detr_forward(params, images_nchw):
    B, _, H, W = images_nchw.shape
    D, C, Q, L = EMBED_DIM, NUM_CLASSES, NUM_QUERIES, NUM_DEC_LAYERS

    # preprocess_image: (x - mean)/std.  The /std is folded into the first conv
    # weights; (x - mean) is a plain-XLA elementwise op fused into the im2col
    # gather (no standalone Pallas normalize kernel, no extra HBM pass).
    x = jnp.transpose(images_nchw, (0, 2, 3, 1)).astype(jnp.float32)  # NHWC
    x = x - params["pixel_mean"]
    inv_std = jnp.tile(1.0 / params["pixel_std"], 9)[:, None]         # (27, 1)

    # backbone stand-in: strided 3x3 convs (im2col + Pallas matmul), ReLU
    feats = []
    cur = x
    for i, (w, b) in enumerate(params["backbone"]):
        if i == 0:
            w = w * inv_std                     # fold pixel_std into first conv
        cols = im2col(cur, k=3, stride=2, pad=1)
        bb, ho, wo_, kc = cols.shape
        out = pallas_linear(cols.reshape(bb * ho * wo_, kc), w, b,
                            activation="relu")
        cur = out.reshape(bb, ho, wo_, w.shape[1])
        if i >= 2:
            feats.append(cur)                   # strides 8 / 16 / 32 levels

    # eval mode: img_masks are identically zero, so the per-level interpolated
    # padding masks are zero as well -- build them directly (no resize needed).
    multi_level_pos = []
    for f in feats:
        hf, wf = f.shape[1], f.shape[2]
        m = jnp.zeros((B, hf, wf), dtype=bool)
        multi_level_pos.append(sine_position_embedding(m, num_pos_feats=D // 2))

    # neck: per-level 1x1 conv projection to embed_dim   [Pallas matmul kernel]
    projected = []
    for f, (w, b) in zip(feats, params["neck"]):
        bb, hf, wf, cf = f.shape
        pr = pallas_linear(f.reshape(bb * hf * wf, cf), w, b)
        projected.append(pr.reshape(bb, hf, wf, D))

    # ---- transformer stand-in (dense cross-attention decoder) ----
    src_flatten = jnp.concatenate([p.reshape(B, -1, D) for p in projected], axis=1)
    pos_flatten = jnp.concatenate([p.reshape(B, -1, D) for p in multi_level_pos], axis=1)
    memory = src_flatten + pos_flatten          # (B, S, D); encoder = identity
    S = memory.shape[1]
    mem2 = memory.reshape(B * S, D)

    # packed K/V projections for ALL decoder layers in one wide matmul;
    # output written directly as bf16 (halves the HBM writeback / re-read).
    dec = params["decoder"]
    wkv = jnp.concatenate([dec["wk"], dec["wv"]], axis=2)          # (L, D, 2D)
    wkv_all = jnp.transpose(wkv, (1, 0, 2)).reshape(D, L * 2 * D)
    bkv_all = jnp.concatenate([dec["bk"], dec["bv"]], axis=2).reshape(L * 2 * D)
    kv = pallas_linear(mem2, wkv_all, bkv_all,
                       out_dtype=jnp.bfloat16)                     # (B*S, L*2D)
    kv = kv.reshape(B, S, L, 2, D)
    k_all = jnp.transpose(kv[:, :, :, 0, :], (2, 0, 1, 3))         # (L,B,S,D) bf16
    v_all = jnp.transpose(kv[:, :, :, 1, :], (2, 0, 1, 3))         # (L,B,S,D) bf16

    # query_embeds = cat(tgt_embed, refpoint_embed) (as_two_stage=False)
    tgt0 = jnp.broadcast_to(params["tgt_embed"][None], (B, Q, D)).reshape(B * Q, D)
    refanchor = params["refpoint_embed"]                           # (Q, 4)
    ref0 = jnp.broadcast_to(jax.nn.sigmoid(refanchor)[None],
                            (B, Q, 4)).reshape(B * Q, 4)
    # tiny ref-point projection: plain JAX (not worth a kernel launch)
    q_pos = refanchor @ params["ref_point_proj_w"] + params["ref_point_proj_b"]
    qpos = jnp.broadcast_to(q_pos[None], (B, Q, D)).reshape(B * Q, D)

    # fused decoder stack + per-layer heads + iterative box refinement
    logits, boxes = pallas_decoder_and_heads(
        k_all, v_all, qpos, tgt0, ref0, dec, params)

    outputs_class = logits.reshape(L, B, Q, C)
    outputs_coord = boxes.reshape(L, B, Q, 4)

    output = {
        "pred_logits": outputs_class[-1],
        "pred_boxes": outputs_coord[-1],
        "aux_outputs": [
            {"pred_logits": a, "pred_boxes": b}
            for a, b in zip(outputs_class[:-1], outputs_coord[:-1])
        ],
    }
    # TODO(synk): detectron2 Instances top-k postprocess / criterion (training) not implemented.
    return output


# ---------------------------------- main -------------------------------------
if __name__ == "__main__":
    key = jax.random.PRNGKey(0)
    pkey, ikey = jax.random.split(key)
    params = init_params(pkey)
    images = jax.random.uniform(ikey, (BATCH, 3, IMG_SIZE, IMG_SIZE),
                                jnp.float32, 0.0, 255.0)

    fwd = jax.jit(dab_deformable_detr_forward)
    out = fwd(params, images)
    out = jax.tree_util.tree_map(jax.block_until_ready, out)

    assert out["pred_logits"].shape == (BATCH, NUM_QUERIES, NUM_CLASSES)
    assert out["pred_boxes"].shape == (BATCH, NUM_QUERIES, 4)
    assert len(out["aux_outputs"]) == NUM_DEC_LAYERS - 1
    assert bool(jnp.all(jnp.isfinite(out["pred_logits"])))
    assert bool(jnp.all((out["pred_boxes"] >= 0.0) & (out["pred_boxes"] <= 1.0)))
    print("KERNEL_OK")
</pallas_src>

<mosaic_0001>
module attributes {stable_mosaic.version = 11 : i64} {
  func.func @_linear_kernel(%arg0: i32, %arg1: memref<256x27xbf16, #tpu.memory_space<vmem>>, %arg2: memref<27x16xbf16, #tpu.memory_space<vmem>>, %arg3: memref<1x16xf32, #tpu.memory_space<vmem>>, %arg4: memref<256x16xf32, #tpu.memory_space<vmem>>) attributes {dimension_semantics = [#tpu.dimension_semantics<parallel>], iteration_bounds = array<i64: 2>, scalar_prefetch = 0 : i64, scratch_operands = 0 : i64, tpu.core_type = #tpu.core_type<tc>, window_params = [{transform_indices = @transform_0, window_bounds = array<i64: 256, 27>}, {pipeline_mode = #tpu.pipeline_mode<synchronous>, transform_indices = @transform_1, window_bounds = array<i64: 27, 16>}, {pipeline_mode = #tpu.pipeline_mode<synchronous>, transform_indices = @transform_2, window_bounds = array<i64: 1, 16>}, {transform_indices = @transform_3, window_bounds = array<i64: 256, 16>}]} {
    %c0 = arith.constant 0 : index
    %c0_0 = arith.constant 0 : index
    %0 = vector.load %arg1[%c0, %c0_0] : memref<256x27xbf16, #tpu.memory_space<vmem>>, vector<256x27xbf16>
    %c0_1 = arith.constant 0 : index
    %c0_2 = arith.constant 0 : index
    %1 = vector.load %arg2[%c0_1, %c0_2] : memref<27x16xbf16, #tpu.memory_space<vmem>>, vector<27x16xbf16>
    %cst = arith.constant dense<0.000000e+00> : vector<256x16xf32>
    %2 = tpu.matmul %0, %1, %cst {dimension_numbers = #tpu.dot_dimension_numbers<[1], [0], [0], [1], [0, 0, 1, 1], [], []>} : vector<256x27xbf16>, vector<27x16xbf16>, vector<256x16xf32> -> vector<256x16xf32>
    %c0_3 = arith.constant 0 : index
    %c0_4 = arith.constant 0 : index
    %3 = vector.load %arg3[%c0_3, %c0_4] : memref<1x16xf32, #tpu.memory_space<vmem>>, vector<1x16xf32>
    %4 = vector.broadcast %3 : vector<1x16xf32> to vector<256x16xf32>
    %5 = arith.addf %2, %4 : vector<256x16xf32>
    %cst_5 = arith.constant 0.000000e+00 : f32
    %6 = vector.broadcast %cst_5 : f32 to vector<256x16xf32>
    %7 = arith.maximumf %5, %6 : vector<256x16xf32>
    %c0_6 = arith.constant 0 : index
    %c0_7 = arith.constant 0 : index
    %8 = vector.load %arg4[%c0_6, %c0_7] : memref<256x16xf32, #tpu.memory_space<vmem>>, vector<256x16xf32>
    tpu.vector_store %arg4[%c0_6, %c0_7], %7 {strides = array<i32>} : memref<256x16xf32, #tpu.memory_space<vmem>>, vector<256x16xf32>,
    return
  }
  func.func @transform_0(%arg0: i32) -> (i32, i32) {
    %c0_i32 = arith.constant 0 : i32
    %c0_i32_0 = arith.constant 0 : i32
    return %arg0, %c0_i32 : i32, i32
  }
  func.func @transform_1(%arg0: i32) -> (i32, i32) {
    %c0_i32 = arith.constant 0 : i32
    %c0_i32_0 = arith.constant 0 : i32
    %c0_i32_1 = arith.constant 0 : i32
    return %c0_i32, %c0_i32_0 : i32, i32
  }
  func.func @transform_2(%arg0: i32) -> (i32, i32) {
    %c0_i32 = arith.constant 0 : i32
    %c0_i32_0 = arith.constant 0 : i32
    %c0_i32_1 = arith.constant 0 : i32
    return %c0_i32, %c0_i32_0 : i32, i32
  }
  func.func @transform_3(%arg0: i32) -> (i32, i32) {
    %c0_i32 = arith.constant 0 : i32
    %c0_i32_0 = arith.constant 0 : i32
    return %arg0, %c0_i32 : i32, i32
  }
}

module attributes {stable_mosaic.version = 11 : i64} {
  func.func @_linear_kernel(%arg0: i32, %arg1: memref<128x144xbf16, #tpu.memory_space<vmem>>, %arg2: memref<144x24xbf16, #tpu.memory_space<vmem>>, %arg3: memref<1x24xf32, #tpu.memory_space<vmem>>, %arg4: memref<128x24xf32, #tpu.memory_space<vmem>>) attributes {dimension_semantics = [#tpu.dimension_semantics<parallel>], iteration_bounds = array<i64: 1>, scalar_prefetch = 0 : i64, scratch_operands = 0 : i64, tpu.core_type = #tpu.core_type<tc>, window_params = [{transform_indices = @transform_0, window_bounds = array<i64: 128, 144>}, {pipeline_mode = #tpu.pipeline_mode<synchronous>, transform_indices = @transform_1, window_bounds = array<i64: 144, 24>}, {pipeline_mode = #tpu.pipeline_mode<synchronous>, transform_indices = @transform_2, window_bounds = array<i64: 1, 24>}, {transform_indices = @transform_3, window_bounds = array<i64: 128, 24>}]} {
    %c0 = arith.constant 0 : index
    %c0_0 = arith.constant 0 : index
    %0 = vector.load %arg1[%c0, %c0_0] : memref<128x144xbf16, #tpu.memory_space<vmem>>, vector<128x144xbf16>
    %c0_1 = arith.constant 0 : index
    %c0_2 = arith.constant 0 : index
    %1 = vector.load %arg2[%c0_1, %c0_2] : memref<144x24xbf16, #tpu.memory_space<vmem>>, vector<144x24xbf16>
    %cst = arith.constant dense<0.000000e+00> : vector<128x24xf32>
    %2 = tpu.matmul %0, %1, %cst {dimension_numbers = #tpu.dot_dimension_numbers<[1], [0], [0], [1], [0, 0, 1, 1], [], []>} : vector<128x144xbf16>, vector<144x24xbf16>, vector<128x24xf32> -> vector<128x24xf32>
    %c0_3 = arith.constant 0 : index
    %c0_4 = arith.constant 0 : index
    %3 = vector.load %arg3[%c0_3, %c0_4] : memref<1x24xf32, #tpu.memory_space<vmem>>, vector<1x24xf32>
    %4 = vector.broadcast %3 : vector<1x24xf32> to vector<128x24xf32>
    %5 = arith.addf %2, %4 : vector<128x24xf32>
    %cst_5 = arith.constant 0.000000e+00 : f32
    %6 = vector.broadcast %cst_5 : f32 to vector<128x24xf32>
    %7 = arith.maximumf %5, %6 : vector<128x24xf32>
    %c0_6 = arith.constant 0 : index
    %c0_7 = arith.constant 0 : index
    %8 = vector.load %arg4[%c0_6, %c0_7] : memref<128x24xf32, #tpu.memory_space<vmem>>, vector<128x24xf32>
    tpu.vector_store %arg4[%c0_6, %c0_7], %7 {strides = array<i32>} : memref<128x24xf32, #tpu.memory_space<vmem>>, vector<128x24xf32>,
    return
  }
  func.func @transform_0(%arg0: i32) -> (i32, i32) {
    %c0_i32 = arith.constant 0 : i32
    %c0_i32_0 = arith.constant 0 : i32
    return %arg0, %c0_i32 : i32, i32
  }
  func.func @transform_1(%arg0: i32) -> (i32, i32) {
    %c0_i32 = arith.constant 0 : i32
    %c0_i32_0 = arith.constant 0 : i32
    %c0_i32_1 = arith.constant 0 : i32
    return %c0_i32, %c0_i32_0 : i32, i32
  }
  func.func @transform_2(%arg0: i32) -> (i32, i32) {
    %c0_i32 = arith.constant 0 : i32
    %c0_i32_0 = arith.constant 0 : i32
    %c0_i32_1 = arith.constant 0 : i32
    return %c0_i32, %c0_i32_0 : i32, i32
  }
  func.func @transform_3(%arg0: i32) -> (i32, i32) {
    %c0_i32 = arith.constant 0 : i32
    %c0_i32_0 = arith.constant 0 : i32
    return %arg0, %c0_i32 : i32, i32
  }
}

module attributes {stable_mosaic.version = 11 : i64} {
  func.func @_linear_kernel(%arg0: i32, %arg1: memref<32x216xbf16, #tpu.memory_space<vmem>>, %arg2: memref<216x32xbf16, #tpu.memory_space<vmem>>, %arg3: memref<1x32xf32, #tpu.memory_space<vmem>>, %arg4: memref<32x32xf32, #tpu.memory_space<vmem>>) attributes {dimension_semantics = [#tpu.dimension_semantics<parallel>], iteration_bounds = array<i64: 1>, scalar_prefetch = 0 : i64, scratch_operands = 0 : i64, tpu.core_type = #tpu.core_type<tc>, window_params = [{transform_indices = @transform_0, window_bounds = array<i64: 32, 216>}, {pipeline_mode = #tpu.pipeline_mode<synchronous>, transform_indices = @transform_1, window_bounds = array<i64: 216, 32>}, {pipeline_mode = #tpu.pipeline_mode<synchronous>, transform_indices = @transform_2, window_bounds = array<i64: 1, 32>}, {transform_indices = @transform_3, window_bounds = array<i64: 32, 32>}]} {
    %c0 = arith.constant 0 : index
    %c0_0 = arith.constant 0 : index
    %0 = vector.load %arg1[%c0, %c0_0] : memref<32x216xbf16, #tpu.memory_space<vmem>>, vector<32x216xbf16>
    %c0_1 = arith.constant 0 : index
    %c0_2 = arith.constant 0 : index
    %1 = vector.load %arg2[%c0_1, %c0_2] : memref<216x32xbf16, #tpu.memory_space<vmem>>, vector<216x32xbf16>
    %cst = arith.constant dense<0.000000e+00> : vector<32x32xf32>
    %2 = tpu.matmul %0, %1, %cst {dimension_numbers = #tpu.dot_dimension_numbers<[1], [0], [0], [1], [0, 0, 1, 1], [], []>} : vector<32x216xbf16>, vector<216x32xbf16>, vector<32x32xf32> -> vector<32x32xf32>
    %c0_3 = arith.constant 0 : index
    %c0_4 = arith.constant 0 : index
    %3 = vector.load %arg3[%c0_3, %c0_4] : memref<1x32xf32, #tpu.memory_space<vmem>>, vector<1x32xf32>
    %4 = vector.broadcast %3 : vector<1x32xf32> to vector<32x32xf32>
    %5 = arith.addf %2, %4 : vector<32x32xf32>
    %cst_5 = arith.constant 0.000000e+00 : f32
    %6 = vector.broadcast %cst_5 : f32 to vector<32x32xf32>
    %7 = arith.maximumf %5, %6 : vector<32x32xf32>
    %c0_6 = arith.constant 0 : index
    %c0_7 = arith.constant 0 : index
    %8 = vector.load %arg4[%c0_6, %c0_7] : memref<32x32xf32, #tpu.memory_space<vmem>>, vector<32x32xf32>
    tpu.vector_store %arg4[%c0_6, %c0_7], %7 {strides = array<i32>} : memref<32x32xf32, #tpu.memory_space<vmem>>, vector<32x32xf32>,
    return
  }
  func.func @transform_0(%arg0: i32) -> (i32, i32) {
    %c0_i32 = arith.constant 0 : i32
    %c0_i32_0 = arith.constant 0 : i32
    return %arg0, %c0_i32 : i32, i32
  }
  func.func @transform_1(%arg0: i32) -> (i32, i32) {
    %c0_i32 = arith.constant 0 : i32
    %c0_i32_0 = arith.constant 0 : i32
    %c0_i32_1 = arith.constant 0 : i32
    return %c0_i32, %c0_i32_0 : i32, i32
  }
  func.func @transform_2(%arg0: i32) -> (i32, i32) {
    %c0_i32 = arith.constant 0 : i32
    %c0_i32_0 = arith.constant 0 : i32
    %c0_i32_1 = arith.constant 0 : i32
    return %c0_i32, %c0_i32_0 : i32, i32
  }
  func.func @transform_3(%arg0: i32) -> (i32, i32) {
    %c0_i32 = arith.constant 0 : i32
    %c0_i32_0 = arith.constant 0 : i32
    return %arg0, %c0_i32 : i32, i32
  }
}

module attributes {stable_mosaic.version = 11 : i64} {
  func.func @_linear_kernel(%arg0: i32, %arg1: memref<8x288xbf16, #tpu.memory_space<vmem>>, %arg2: memref<288x48xbf16, #tpu.memory_space<vmem>>, %arg3: memref<1x48xf32, #tpu.memory_space<vmem>>, %arg4: memref<8x48xf32, #tpu.memory_space<vmem>>) attributes {dimension_semantics = [#tpu.dimension_semantics<parallel>], iteration_bounds = array<i64: 1>, scalar_prefetch = 0 : i64, scratch_operands = 0 : i64, tpu.core_type = #tpu.core_type<tc>, window_params = [{transform_indices = @transform_0, window_bounds = array<i64: 8, 288>}, {pipeline_mode = #tpu.pipeline_mode<synchronous>, transform_indices = @transform_1, window_bounds = array<i64: 288, 48>}, {pipeline_mode = #tpu.pipeline_mode<synchronous>, transform_indices = @transform_2, window_bounds = array<i64: 1, 48>}, {transform_indices = @transform_3, window_bounds = array<i64: 8, 48>}]} {
    %c0 = arith.constant 0 : index
    %c0_0 = arith.constant 0 : index
    %0 = vector.load %arg1[%c0, %c0_0] : memref<8x288xbf16, #tpu.memory_space<vmem>>, vector<8x288xbf16>
    %c0_1 = arith.constant 0 : index
    %c0_2 = arith.constant 0 : index
    %1 = vector.load %arg2[%c0_1, %c0_2] : memref<288x48xbf16, #tpu.memory_space<vmem>>, vector<288x48xbf16>
    %cst = arith.constant dense<0.000000e+00> : vector<8x48xf32>
    %2 = tpu.matmul %0, %1, %cst {dimension_numbers = #tpu.dot_dimension_numbers<[1], [0], [0], [1], [0, 0, 1, 1], [], []>} : vector<8x288xbf16>, vector<288x48xbf16>, vector<8x48xf32> -> vector<8x48xf32>
    %c0_3 = arith.constant 0 : index
    %c0_4 = arith.constant 0 : index
    %3 = vector.load %arg3[%c0_3, %c0_4] : memref<1x48xf32, #tpu.memory_space<vmem>>, vector<1x48xf32>
    %4 = vector.broadcast %3 : vector<1x48xf32> to vector<8x48xf32>
    %5 = arith.addf %2, %4 : vector<8x48xf32>
    %cst_5 = arith.constant 0.000000e+00 : f32
    %6 = vector.broadcast %cst_5 : f32 to vector<8x48xf32>
    %7 = arith.maximumf %5, %6 : vector<8x48xf32>
    %c0_6 = arith.constant 0 : index
    %c0_7 = arith.constant 0 : index
    %8 = vector.load %arg4[%c0_6, %c0_7] : memref<8x48xf32, #tpu.memory_space<vmem>>, vector<8x48xf32>
    tpu.vector_store %arg4[%c0_6, %c0_7], %7 {strides = array<i32>} : memref<8x48xf32, #tpu.memory_space<vmem>>, vector<8x48xf32>,
    return
  }
  func.func @transform_0(%arg0: i32) -> (i32, i32) {
    %c0_i32 = arith.constant 0 : i32
    %c0_i32_0 = arith.constant 0 : i32
    return %arg0, %c0_i32 : i32, i32
  }
  func.func @transform_1(%arg0: i32) -> (i32, i32) {
    %c0_i32 = arith.constant 0 : i32
    %c0_i32_0 = arith.constant 0 : i32
    %c0_i32_1 = arith.constant 0 : i32
    return %c0_i32, %c0_i32_0 : i32, i32
  }
  func.func @transform_2(%arg0: i32) -> (i32, i32) {
    %c0_i32 = arith.constant 0 : i32
    %c0_i32_0 = arith.constant 0 : i32
    %c0_i32_1 = arith.constant 0 : i32
    return %c0_i32, %c0_i32_0 : i32, i32
  }
  func.func @transform_3(%arg0: i32) -> (i32, i32) {
    %c0_i32 = arith.constant 0 : i32
    %c0_i32_0 = arith.constant 0 : i32
    return %arg0, %c0_i32 : i32, i32
  }
}

module attributes {stable_mosaic.version = 11 : i64} {
  func.func @_linear_kernel(%arg0: i32, %arg1: memref<8x432xbf16, #tpu.memory_space<vmem>>, %arg2: memref<432x64xbf16, #tpu.memory_space<vmem>>, %arg3: memref<1x64xf32, #tpu.memory_space<vmem>>, %arg4: memref<8x64xf32, #tpu.memory_space<vmem>>) attributes {dimension_semantics = [#tpu.dimension_semantics<parallel>], iteration_bounds = array<i64: 1>, scalar_prefetch = 0 : i64, scratch_operands = 0 : i64, tpu.core_type = #tpu.core_type<tc>, window_params = [{transform_indices = @transform_0, window_bounds = array<i64: 8, 432>}, {pipeline_mode = #tpu.pipeline_mode<synchronous>, transform_indices = @transform_1, window_bounds = array<i64: 432, 64>}, {pipeline_mode = #tpu.pipeline_mode<synchronous>, transform_indices = @transform_2, window_bounds = array<i64: 1, 64>}, {transform_indices = @transform_3, window_bounds = array<i64: 8, 64>}]} {
    %c0 = arith.constant 0 : index
    %c0_0 = arith.constant 0 : index
    %0 = vector.load %arg1[%c0, %c0_0] : memref<8x432xbf16, #tpu.memory_space<vmem>>, vector<8x432xbf16>
    %c0_1 = arith.constant 0 : index
    %c0_2 = arith.constant 0 : index
    %1 = vector.load %arg2[%c0_1, %c0_2] : memref<432x64xbf16, #tpu.memory_space<vmem>>, vector<432x64xbf16>
    %cst = arith.constant dense<0.000000e+00> : vector<8x64xf32>
    %2 = tpu.matmul %0, %1, %cst {dimension_numbers = #tpu.dot_dimension_numbers<[1], [0], [0], [1], [0, 0, 1, 1], [], []>} : vector<8x432xbf16>, vector<432x64xbf16>, vector<8x64xf32> -> vector<8x64xf32>
    %c0_3 = arith.constant 0 : index
    %c0_4 = arith.constant 0 : index
    %3 = vector.load %arg3[%c0_3, %c0_4] : memref<1x64xf32, #tpu.memory_space<vmem>>, vector<1x64xf32>
    %4 = vector.broadcast %3 : vector<1x64xf32> to vector<8x64xf32>
    %5 = arith.addf %2, %4 : vector<8x64xf32>
    %cst_5 = arith.constant 0.000000e+00 : f32
    %6 = vector.broadcast %cst_5 : f32 to vector<8x64xf32>
    %7 = arith.maximumf %5, %6 : vector<8x64xf32>
    %c0_6 = arith.constant 0 : index
    %c0_7 = arith.constant 0 : index
    %8 = vector.load %arg4[%c0_6, %c0_7] : memref<8x64xf32, #tpu.memory_space<vmem>>, vector<8x64xf32>
    tpu.vector_store %arg4[%c0_6, %c0_7], %7 {strides = array<i32>} : memref<8x64xf32, #tpu.memory_space<vmem>>, vector<8x64xf32>,
    return
  }
  func.func @transform_0(%arg0: i32) -> (i32, i32) {
    %c0_i32 = arith.constant 0 : i32
    %c0_i32_0 = arith.constant 0 : i32
    return %arg0, %c0_i32 : i32, i32
  }
  func.func @transform_1(%arg0: i32) -> (i32, i32) {
    %c0_i32 = arith.constant 0 : i32
    %c0_i32_0 = arith.constant 0 : i32
    %c0_i32_1 = arith.constant 0 : i32
    return %c0_i32, %c0_i32_0 : i32, i32
  }
  func.func @transform_2(%arg0: i32) -> (i32, i32) {
    %c0_i32 = arith.constant 0 : i32
    %c0_i32_0 = arith.constant 0 : i32
    %c0_i32_1 = arith.constant 0 : i32
    return %c0_i32, %c0_i32_0 : i32, i32
  }
  func.func @transform_3(%arg0: i32) -> (i32, i32) {
    %c0_i32 = arith.constant 0 : i32
    %c0_i32_0 = arith.constant 0 : i32
    return %arg0, %c0_i32 : i32, i32
  }
}

module attributes {stable_mosaic.version = 11 : i64} {
  func.func @_linear_kernel(%arg0: i32, %arg1: memref<8x64xbf16, #tpu.memory_space<vmem>>, %arg2: memref<64x32xbf16, #tpu.memory_space<vmem>>, %arg3: memref<1x32xf32, #tpu.memory_space<vmem>>, %arg4: memref<8x32xf32, #tpu.memory_space<vmem>>) attributes {dimension_semantics = [#tpu.dimension_semantics<parallel>], iteration_bounds = array<i64: 1>, scalar_prefetch = 0 : i64, scratch_operands = 0 : i64, tpu.core_type = #tpu.core_type<tc>, window_params = [{transform_indices = @transform_0, window_bounds = array<i64: 8, 64>}, {pipeline_mode = #tpu.pipeline_mode<synchronous>, transform_indices = @transform_1, window_bounds = array<i64: 64, 32>}, {pipeline_mode = #tpu.pipeline_mode<synchronous>, transform_indices = @transform_2, window_bounds = array<i64: 1, 32>}, {transform_indices = @transform_3, window_bounds = array<i64: 8, 32>}]} {
    %c0 = arith.constant 0 : index
    %c0_0 = arith.constant 0 : index
    %0 = vector.load %arg1[%c0, %c0_0] : memref<8x64xbf16, #tpu.memory_space<vmem>>, vector<8x64xbf16>
    %c0_1 = arith.constant 0 : index
    %c0_2 = arith.constant 0 : index
    %1 = vector.load %arg2[%c0_1, %c0_2] : memref<64x32xbf16, #tpu.memory_space<vmem>>, vector<64x32xbf16>
    %cst = arith.constant dense<0.000000e+00> : vector<8x32xf32>
    %2 = tpu.matmul %0, %1, %cst {dimension_numbers = #tpu.dot_dimension_numbers<[1], [0], [0], [1], [0, 0, 1, 1], [], []>} : vector<8x64xbf16>, vector<64x32xbf16>, vector<8x32xf32> -> vector<8x32xf32>
    %c0_3 = arith.constant 0 : index
    %c0_4 = arith.constant 0 : index
    %3 = vector.load %arg3[%c0_3, %c0_4] : memref<1x32xf32, #tpu.memory_space<vmem>>, vector<1x32xf32>
    %4 = vector.broadcast %3 : vector<1x32xf32> to vector<8x32xf32>
    %5 = arith.addf %2, %4 : vector<8x32xf32>
    %c0_5 = arith.constant 0 : index
    %c0_6 = arith.constant 0 : index
    %6 = vector.load %arg4[%c0_5, %c0_6] : memref<8x32xf32, #tpu.memory_space<vmem>>, vector<8x32xf32>
    tpu.vector_store %arg4[%c0_5, %c0_6], %5 {strides = array<i32>} : memref<8x32xf32, #tpu.memory_space<vmem>>, vector<8x32xf32>,
    return
  }
  func.func @transform_0(%arg0: i32) -> (i32, i32) {
    %c0_i32 = arith.constant 0 : i32
    %c0_i32_0 = arith.constant 0 : i32
    return %arg0, %c0_i32 : i32, i32
  }
  func.func @transform_1(%arg0: i32) -> (i32, i32) {
    %c0_i32 = arith.constant 0 : i32
    %c0_i32_0 = arith.constant 0 : i32
    %c0_i32_1 = arith.constant 0 : i32
    return %c0_i32, %c0_i32_0 : i32, i32
  }
  func.func @transform_2(%arg0: i32) -> (i32, i32) {
    %c0_i32 = arith.constant 0 : i32
    %c0_i32_0 = arith.constant 0 : i32
    %c0_i32_1 = arith.constant 0 : i32
    return %c0_i32, %c0_i32_0 : i32, i32
  }
  func.func @transform_3(%arg0: i32) -> (i32, i32) {
    %c0_i32 = arith.constant 0 : i32
    %c0_i32_0 = arith.constant 0 : i32
    return %arg0, %c0_i32 : i32, i32
  }
}

module attributes {stable_mosaic.version = 11 : i64} {
  func.func @_linear_kernel(%arg0: i32, %arg1: memref<8x48xbf16, #tpu.memory_space<vmem>>, %arg2: memref<48x32xbf16, #tpu.memory_space<vmem>>, %arg3: memref<1x32xf32, #tpu.memory_space<vmem>>, %arg4: memref<8x32xf32, #tpu.memory_space<vmem>>) attributes {dimension_semantics = [#tpu.dimension_semantics<parallel>], iteration_bounds = array<i64: 1>, scalar_prefetch = 0 : i64, scratch_operands = 0 : i64, tpu.core_type = #tpu.core_type<tc>, window_params = [{transform_indices = @transform_0, window_bounds = array<i64: 8, 48>}, {pipeline_mode = #tpu.pipeline_mode<synchronous>, transform_indices = @transform_1, window_bounds = array<i64: 48, 32>}, {pipeline_mode = #tpu.pipeline_mode<synchronous>, transform_indices = @transform_2, window_bounds = array<i64: 1, 32>}, {transform_indices = @transform_3, window_bounds = array<i64: 8, 32>}]} {
    %c0 = arith.constant 0 : index
    %c0_0 = arith.constant 0 : index
    %0 = vector.load %arg1[%c0, %c0_0] : memref<8x48xbf16, #tpu.memory_space<vmem>>, vector<8x48xbf16>
    %c0_1 = arith.constant 0 : index
    %c0_2 = arith.constant 0 : index
    %1 = vector.load %arg2[%c0_1, %c0_2] : memref<48x32xbf16, #tpu.memory_space<vmem>>, vector<48x32xbf16>
    %cst = arith.constant dense<0.000000e+00> : vector<8x32xf32>
    %2 = tpu.matmul %0, %1, %cst {dimension_numbers = #tpu.dot_dimension_numbers<[1], [0], [0], [1], [0, 0, 1, 1], [], []>} : vector<8x48xbf16>, vector<48x32xbf16>, vector<8x32xf32> -> vector<8x32xf32>
    %c0_3 = arith.constant 0 : index
    %c0_4 = arith.constant 0 : index
    %3 = vector.load %arg3[%c0_3, %c0_4] : memref<1x32xf32, #tpu.memory_space<vmem>>, vector<1x32xf32>
    %4 = vector.broadcast %3 : vector<1x32xf32> to vector<8x32xf32>
    %5 = arith.addf %2, %4 : vector<8x32xf32>
    %c0_5 = arith.constant 0 : index
    %c0_6 = arith.constant 0 : index
    %6 = vector.load %arg4[%c0_5, %c0_6] : memref<8x32xf32, #tpu.memory_space<vmem>>, vector<8x32xf32>
    tpu.vector_store %arg4[%c0_5, %c0_6], %5 {strides = array<i32>} : memref<8x32xf32, #tpu.memory_space<vmem>>, vector<8x32xf32>,
    return
  }
  func.func @transform_0(%arg0: i32) -> (i32, i32) {
    %c0_i32 = arith.constant 0 : i32
    %c0_i32_0 = arith.constant 0 : i32
    return %arg0, %c0_i32 : i32, i32
  }
  func.func @transform_1(%arg0: i32) -> (i32, i32) {
    %c0_i32 = arith.constant 0 : i32
    %c0_i32_0 = arith.constant 0 : i32
    %c0_i32_1 = arith.constant 0 : i32
    return %c0_i32, %c0_i32_0 : i32, i32
  }
  func.func @transform_2(%arg0: i32) -> (i32, i32) {
    %c0_i32 = arith.constant 0 : i32
    %c0_i32_0 = arith.constant 0 : i32
    %c0_i32_1 = arith.constant 0 : i32
    return %c0_i32, %c0_i32_0 : i32, i32
  }
  func.func @transform_3(%arg0: i32) -> (i32, i32) {
    %c0_i32 = arith.constant 0 : i32
    %c0_i32_0 = arith.constant 0 : i32
    return %arg0, %c0_i32 : i32, i32
  }
}

module attributes {stable_mosaic.version = 11 : i64} {
  func.func @_linear_kernel(%arg0: i32, %arg1: memref<32x32xbf16, #tpu.memory_space<vmem>>, %arg2: memref<32x32xbf16, #tpu.memory_space<vmem>>, %arg3: memref<1x32xf32, #tpu.memory_space<vmem>>, %arg4: memref<32x32xf32, #tpu.memory_space<vmem>>) attributes {dimension_semantics = [#tpu.dimension_semantics<parallel>], iteration_bounds = array<i64: 1>, scalar_prefetch = 0 : i64, scratch_operands = 0 : i64, tpu.core_type = #tpu.core_type<tc>, window_params = [{transform_indices = @transform_0, window_bounds = array<i64: 32, 32>}, {pipeline_mode = #tpu.pipeline_mode<synchronous>, transform_indices = @transform_1, window_bounds = array<i64: 32, 32>}, {pipeline_mode = #tpu.pipeline_mode<synchronous>, transform_indices = @transform_2, window_bounds = array<i64: 1, 32>}, {transform_indices = @transform_3, window_bounds = array<i64: 32, 32>}]} {
    %c0 = arith.constant 0 : index
    %c0_0 = arith.constant 0 : index
    %0 = vector.load %arg1[%c0, %c0_0] : memref<32x32xbf16, #tpu.memory_space<vmem>>, vector<32x32xbf16>
    %c0_1 = arith.constant 0 : index
    %c0_2 = arith.constant 0 : index
    %1 = vector.load %arg2[%c0_1, %c0_2] : memref<32x32xbf16, #tpu.memory_space<vmem>>, vector<32x32xbf16>
    %cst = arith.constant dense<0.000000e+00> : vector<32x32xf32>
    %2 = tpu.matmul %0, %1, %cst {dimension_numbers = #tpu.dot_dimension_numbers<[1], [0], [0], [1], [0, 0, 1, 1], [], []>} : vector<32x32xbf16>, vector<32x32xbf16>, vector<32x32xf32> -> vector<32x32xf32>
    %c0_3 = arith.constant 0 : index
    %c0_4 = arith.constant 0 : index
    %3 = vector.load %arg3[%c0_3, %c0_4] : memref<1x32xf32, #tpu.memory_space<vmem>>, vector<1x32xf32>
    %4 = vector.broadcast %3 : vector<1x32xf32> to vector<32x32xf32>
    %5 = arith.addf %2, %4 : vector<32x32xf32>
    %c0_5 = arith.constant 0 : index
    %c0_6 = arith.constant 0 : index
    %6 = vector.load %arg4[%c0_5, %c0_6] : memref<32x32xf32, #tpu.memory_space<vmem>>, vector<32x32xf32>
    tpu.vector_store %arg4[%c0_5, %c0_6], %5 {strides = array<i32>} : memref<32x32xf32, #tpu.memory_space<vmem>>, vector<32x32xf32>,
    return
  }
  func.func @transform_0(%arg0: i32) -> (i32, i32) {
    %c0_i32 = arith.constant 0 : i32
    %c0_i32_0 = arith.constant 0 : i32
    return %arg0, %c0_i32 : i32, i32
  }
  func.func @transform_1(%arg0: i32) -> (i32, i32) {
    %c0_i32 = arith.constant 0 : i32
    %c0_i32_0 = arith.constant 0 : i32
    %c0_i32_1 = arith.constant 0 : i32
    return %c0_i32, %c0_i32_0 : i32, i32
  }
  func.func @transform_2(%arg0: i32) -> (i32, i32) {
    %c0_i32 = arith.constant 0 : i32
    %c0_i32_0 = arith.constant 0 : i32
    %c0_i32_1 = arith.constant 0 : i32
    return %c0_i32, %c0_i32_0 : i32, i32
  }
  func.func @transform_3(%arg0: i32) -> (i32, i32) {
    %c0_i32 = arith.constant 0 : i32
    %c0_i32_0 = arith.constant 0 : i32
    return %arg0, %c0_i32 : i32, i32
  }
}

module attributes {stable_mosaic.version = 11 : i64} {
  func.func @_linear_kernel(%arg0: i32, %arg1: memref<48x32xbf16, #tpu.memory_space<vmem>>, %arg2: memref<32x192xbf16, #tpu.memory_space<vmem>>, %arg3: memref<1x192xf32, #tpu.memory_space<vmem>>, %arg4: memref<48x192xbf16, #tpu.memory_space<vmem>>) attributes {dimension_semantics = [#tpu.dimension_semantics<parallel>], iteration_bounds = array<i64: 1>, scalar_prefetch = 0 : i64, scratch_operands = 0 : i64, tpu.core_type = #tpu.core_type<tc>, window_params = [{transform_indices = @transform_0, window_bounds = array<i64: 48, 32>}, {pipeline_mode = #tpu.pipeline_mode<synchronous>, transform_indices = @transform_1, window_bounds = array<i64: 32, 192>}, {pipeline_mode = #tpu.pipeline_mode<synchronous>, transform_indices = @transform_2, window_bounds = array<i64: 1, 192>}, {transform_indices = @transform_3, window_bounds = array<i64: 48, 192>}]} {
    %c0 = arith.constant 0 : index
    %c0_0 = arith.constant 0 : index
    %0 = vector.load %arg1[%c0, %c0_0] : memref<48x32xbf16, #tpu.memory_space<vmem>>, vector<48x32xbf16>
    %c0_1 = arith.constant 0 : index
    %c0_2 = arith.constant 0 : index
    %1 = vector.load %arg2[%c0_1, %c0_2] : memref<32x192xbf16, #tpu.memory_space<vmem>>, vector<32x192xbf16>
    %cst = arith.constant dense<0.000000e+00> : vector<48x192xf32>
    %2 = tpu.matmul %0, %1, %cst {dimension_numbers = #tpu.dot_dimension_numbers<[1], [0], [0], [1], [0, 0, 1, 1], [], []>} : vector<48x32xbf16>, vector<32x192xbf16>, vector<48x192xf32> -> vector<48x192xf32>
    %c0_3 = arith.constant 0 : index
    %c0_4 = arith.constant 0 : index
    %3 = vector.load %arg3[%c0_3, %c0_4] : memref<1x192xf32, #tpu.memory_space<vmem>>, vector<1x192xf32>
    %4 = vector.broadcast %3 : vector<1x192xf32> to vector<48x192xf32>
    %5 = arith.addf %2, %4 : vector<48x192xf32>
    %6 = arith.truncf %5 : vector<48x192xf32> to vector<48x192xbf16>
    %c0_5 = arith.constant 0 : index
    %c0_6 = arith.constant 0 : index
    %7 = vector.load %arg4[%c0_5, %c0_6] : memref<48x192xbf16, #tpu.memory_space<vmem>>, vector<48x192xbf16>
    tpu.vector_store %arg4[%c0_5, %c0_6], %6 {strides = array<i32>} : memref<48x192xbf16, #tpu.memory_space<vmem>>, vector<48x192xbf16>,
    return
  }
  func.func @transform_0(%arg0: i32) -> (i32, i32) {
    %c0_i32 = arith.constant 0 : i32
    %c0_i32_0 = arith.constant 0 : i32
    return %arg0, %c0_i32 : i32, i32
  }
  func.func @transform_1(%arg0: i32) -> (i32, i32) {
    %c0_i32 = arith.constant 0 : i32
    %c0_i32_0 = arith.constant 0 : i32
    %c0_i32_1 = arith.constant 0 : i32
    return %c0_i32, %c0_i32_0 : i32, i32
  }
  func.func @transform_2(%arg0: i32) -> (i32, i32) {
    %c0_i32 = arith.constant 0 : i32
    %c0_i32_0 = arith.constant 0 : i32
    %c0_i32_1 = arith.constant 0 : i32
    return %c0_i32, %c0_i32_0 : i32, i32
  }
  func.func @transform_3(%arg0: i32) -> (i32, i32) {
    %c0_i32 = arith.constant 0 : i32
    %c0_i32_0 = arith.constant 0 : i32
    return %arg0, %c0_i32 : i32, i32
  }
}

module attributes {stable_mosaic.version = 11 : i64} {
  func.func @_decoder_kernel(%arg0: i32, %arg1: memref<1x2x21x32xbf16, #tpu.memory_space<vmem>>, %arg2: memref<1x2x21x32xbf16, #tpu.memory_space<vmem>>, %arg3: memref<32x32xf32, #tpu.memory_space<vmem>>, %arg4: memref<32x32xf32, #tpu.memory_space<vmem>>, %arg5: memref<32x4xf32, #tpu.memory_space<vmem>>, %arg6: memref<1x32x32xbf16, #tpu.memory_space<vmem>>, %arg7: memref<1x1x32xf32, #tpu.memory_space<vmem>>, %arg8: memref<1x32x32xbf16, #tpu.memory_space<vmem>>, %arg9: memref<1x1x32xf32, #tpu.memory_space<vmem>>, %arg10: memref<1x1x32xf32, #tpu.memory_space<vmem>>, %arg11: memref<1x1x32xf32, #tpu.memory_space<vmem>>, %arg12: memref<1x32x64xbf16, #tpu.memory_space<vmem>>, %arg13: memref<1x1x64xf32, #tpu.memory_space<vmem>>, %arg14: memref<1x64x32xbf16, #tpu.memory_space<vmem>>, %arg15: memref<1x1x32xf32, #tpu.memory_space<vmem>>, %arg16: memref<1x1x32xf32, #tpu.memory_space<vmem>>, %arg17: memref<1x1x32xf32, #tpu.memory_space<vmem>>, %arg18: memref<32x8xbf16, #tpu.memory_space<vmem>>, %arg19: memref<1x8xf32, #tpu.memory_space<vmem>>, %arg20: memref<32x32xbf16, #tpu.memory_space<vmem>>, %arg21: memref<1x32xf32, #tpu.memory_space<vmem>>, %arg22: memref<32x32xbf16, #tpu.memory_space<vmem>>, %arg23: memref<1x32xf32, #tpu.memory_space<vmem>>, %arg24: memref<32x4xbf16, #tpu.memory_space<vmem>>, %arg25: memref<1x1x4xf32, #tpu.memory_space<vmem>>, %arg26: memref<1x32x8xf32, #tpu.memory_space<vmem>>, %arg27: memref<1x32x4xf32, #tpu.memory_space<vmem>>, %arg28: memref<32x32xf32, #tpu.memory_space<vmem>>, %arg29: memref<32x4xf32, #tpu.memory_space<vmem>>) attributes {dimension_semantics = [#tpu.dimension_semantics<arbitrary>], iteration_bounds = array<i64: 3>, scalar_prefetch = 0 : i64, scratch_operands = 2 : i64, tpu.core_type = #tpu.core_type<tc>, window_params = [{transform_indices = @transform_0, window_bounds = array<i64: 1, 2, 21, 32>}, {transform_indices = @transform_1, window_bounds = array<i64: 1, 2, 21, 32>}, {pipeline_mode = #tpu.pipeline_mode<synchronous>, transform_indices = @transform_2, window_bounds = array<i64: 32, 32>}, {pipeline_mode = #tpu.pipeline_mode<synchronous>, transform_indices = @transform_3, window_bounds = array<i64: 32, 32>}, {pipeline_mode = #tpu.pipeline_mode<synchronous>, transform_indices = @transform_4, window_bounds = array<i64: 32, 4>}, {transform_indices = @transform_5, window_bounds = array<i64: 1, 32, 32>}, {transform_indices = @transform_6, window_bounds = array<i64: 1, 1, 32>}, {transform_indices = @transform_7, window_bounds = array<i64: 1, 32, 32>}, {transform_indices = @transform_8, window_bounds = array<i64: 1, 1, 32>}, {transform_indices = @transform_9, window_bounds = array<i64: 1, 1, 32>}, {transform_indices = @transform_10, window_bounds = array<i64: 1, 1, 32>}, {transform_indices = @transform_11, window_bounds = array<i64: 1, 32, 64>}, {transform_indices = @transform_12, window_bounds = array<i64: 1, 1, 64>}, {transform_indices = @transform_13, window_bounds = array<i64: 1, 64, 32>}, {transform_indices = @transform_14, window_bounds = array<i64: 1, 1, 32>}, {transform_indices = @transform_15, window_bounds = array<i64: 1, 1, 32>}, {transform_indices = @transform_16, window_bounds = array<i64: 1, 1, 32>}, {pipeline_mode = #tpu.pipeline_mode<synchronous>, transform_indices = @transform_17, window_bounds = array<i64: 32, 8>}, {pipeline_mode = #tpu.pipeline_mode<synchronous>, transform_indices = @transform_18, window_bounds = array<i64: 1, 8>}, {pipeline_mode = #tpu.pipeline_mode<synchronous>, transform_indices = @transform_19, window_bounds = array<i64: 32, 32>}, {pipeline_mode = #tpu.pipeline_mode<synchronous>, transform_indices = @transform_20, window_bounds = array<i64: 1, 32>}, {pipeline_mode = #tpu.pipeline_mode<synchronous>, transform_indices = @transform_21, window_bounds = array<i64: 32, 32>}, {pipeline_mode = #tpu.pipeline_mode<synchronous>, transform_indices = @transform_22, window_bounds = array<i64: 1, 32>}, {pipeline_mode = #tpu.pipeline_mode<synchronous>, transform_indices = @transform_23, window_bounds = array<i64: 32, 4>}, {transform_indices = @transform_24, window_bounds = array<i64: 1, 1, 4>}, {transform_indices = @transform_25, window_bounds = array<i64: 1, 32, 8>}, {transform_indices = @transform_26, window_bounds = array<i64: 1, 32, 4>}]} {
    %c0_i32 = arith.constant 0 : i32
    %0 = arith.cmpi eq, %arg0, %c0_i32 : i32
    %1 = arith.extui %0 : i1 to i32
    %c0_i32_0 = arith.constant 0 : i32
    %2 = arith.cmpi ne, %1, %c0_i32_0 : i32
    scf.if %2 {
      %c0_120 = arith.constant 0 : index
      %c0_121 = arith.constant 0 : index
      %189 = vector.load %arg4[%c0_120, %c0_121] : memref<32x32xf32, #tpu.memory_space<vmem>>, vector<32x32xf32>
      %c0_122 = arith.constant 0 : index
      %c0_123 = arith.constant 0 : index
      %190 = vector.load %arg28[%c0_122, %c0_123] : memref<32x32xf32, #tpu.memory_space<vmem>>, vector<32x32xf32>
      tpu.vector_store %arg28[%c0_122, %c0_123], %189 {strides = array<i32>} : memref<32x32xf32, #tpu.memory_space<vmem>>, vector<32x32xf32>,
      %c0_124 = arith.constant 0 : index
      %c0_125 = arith.constant 0 : index
      %191 = vector.load %arg5[%c0_124, %c0_125] : memref<32x4xf32, #tpu.memory_space<vmem>>, vector<32x4xf32>
      %c0_126 = arith.constant 0 : index
      %c0_127 = arith.constant 0 : index
      %192 = vector.load %arg29[%c0_126, %c0_127] : memref<32x4xf32, #tpu.memory_space<vmem>>, vector<32x4xf32>
      tpu.vector_store %arg29[%c0_126, %c0_127], %191 {strides = array<i32>} : memref<32x4xf32, #tpu.memory_space<vmem>>, vector<32x4xf32>,
    } else {
    }
    %c0 = arith.constant 0 : index
    %c0_1 = arith.constant 0 : index
    %3 = vector.load %arg28[%c0, %c0_1] : memref<32x32xf32, #tpu.memory_space<vmem>>, vector<32x32xf32>
    %c0_2 = arith.constant 0 : index
    %c0_3 = arith.constant 0 : index
    %4 = vector.load %arg3[%c0_2, %c0_3] : memref<32x32xf32, #tpu.memory_space<vmem>>, vector<32x32xf32>
    %5 = arith.addf %3, %4 : vector<32x32xf32>
    %c0_4 = arith.constant 0 : index
    %c0_5 = arith.constant 0 : index
    %c0_6 = arith.constant 0 : index
    %6 = vector.load %arg6[%c0_4, %c0_5, %c0_6] : memref<1x32x32xbf16, #tpu.memory_space<vmem>>, vector<1x32x32xbf16>
    %7 = vector.shape_cast %6 : vector<1x32x32xbf16> to vector<32x32xbf16>
    %8 = arith.truncf %5 : vector<32x32xf32> to vector<32x32xbf16>
    %cst = arith.constant dense<0.000000e+00> : vector<32x32xf32>
    %9 = tpu.matmul %8, %7, %cst {dimension_numbers = #tpu.dot_dimension_numbers<[1], [0], [0], [1], [0, 0, 1, 1], [], []>} : vector<32x32xbf16>, vector<32x32xbf16>, vector<32x32xf32> -> vector<32x32xf32>
    %c0_7 = arith.constant 0 : index
    %c0_8 = arith.constant 0 : index
    %c0_9 = arith.constant 0 : index
    %10 = vector.load %arg7[%c0_7, %c0_8, %c0_9] : memref<1x1x32xf32, #tpu.memory_space<vmem>>, vector<1x1x32xf32>
    %11 = vector.shape_cast %10 : vector<1x1x32xf32> to vector<1x32xf32>
    %12 = vector.broadcast %11 : vector<1x32xf32> to vector<32x32xf32>
    %13 = arith.addf %9, %12 : vector<32x32xf32>
    %14 = vector.extract_strided_slice %13 {offsets = [0, 0], sizes = [16, 32], strides = [1, 1]} : vector<32x32xf32> to vector<16x32xf32>
    %c0_10 = arith.constant 0 : index
    %c0_11 = arith.constant 0 : index
    %c0_12 = arith.constant 0 : index
    %c0_13 = arith.constant 0 : index
    %15 = vector.load %arg1[%c0_10, %c0_11, %c0_12, %c0_13] : memref<1x2x21x32xbf16, #tpu.memory_space<vmem>>, vector<1x1x21x32xbf16>
    %16 = vector.shape_cast %15 : vector<1x1x21x32xbf16> to vector<21x32xbf16>
    %c0_14 = arith.constant 0 : index
    %c0_15 = arith.constant 0 : index
    %c0_16 = arith.constant 0 : index
    %c0_17 = arith.constant 0 : index
    %17 = vector.load %arg2[%c0_14, %c0_15, %c0_16, %c0_17] : memref<1x2x21x32xbf16, #tpu.memory_space<vmem>>, vector<1x1x21x32xbf16>
    %18 = vector.shape_cast %17 : vector<1x1x21x32xbf16> to vector<21x32xbf16>
    %19 = arith.truncf %14 : vector<16x32xf32> to vector<16x32xbf16>
    %cst_18 = arith.constant dense<0.000000e+00> : vector<16x21xf32>
    %20 = tpu.matmul %19, %16, %cst_18 {dimension_numbers = #tpu.dot_dimension_numbers<[1], [1], [0], [0], [0, 0, 1, 0], [], []>} : vector<16x32xbf16>, vector<21x32xbf16>, vector<16x21xf32> -> vector<16x21xf32>
    %cst_19 = arith.constant 0.176776692 : f32
    %21 = vector.broadcast %cst_19 : f32 to vector<16x21xf32>
    %22 = arith.mulf %20, %21 : vector<16x21xf32>
    %cst_20 = arith.constant dense<0xFF800000> : vector<16xf32>
    %23 = vector.multi_reduction <maximumf>, %22, %cst_20 [1] : vector<16x21xf32> to vector<16xf32>
    %24 = vector.shape_cast %23 : vector<16xf32> to vector<16x1xf32>
    %25 = vector.broadcast %24 : vector<16x1xf32> to vector<16x21xf32>
    %26 = arith.subf %22, %25 : vector<16x21xf32>
    %27 = math.exp %26 : vector<16x21xf32>
    %cst_21 = arith.constant dense<0.000000e+00> : vector<16xf32>
    %28 = vector.multi_reduction <add>, %27, %cst_21 [1] : vector<16x21xf32> to vector<16xf32>
    %29 = vector.shape_cast %28 : vector<16xf32> to vector<16x1xf32>
    %30 = tpu.reciprocal %29 {approx = true} : vector<16x1xf32> -> vector<16x1xf32>
    %31 = vector.broadcast %30 : vector<16x1xf32> to vector<16x21xf32>
    %32 = arith.mulf %27, %31 : vector<16x21xf32>
    %33 = arith.truncf %32 : vector<16x21xf32> to vector<16x21xbf16>
    %cst_22 = arith.constant dense<0.000000e+00> : vector<16x32xf32>
    %34 = tpu.matmul %33, %18, %cst_22 {dimension_numbers = #tpu.dot_dimension_numbers<[1], [0], [0], [1], [0, 0, 1, 1], [], []>} : vector<16x21xbf16>, vector<21x32xbf16>, vector<16x32xf32> -> vector<16x32xf32>
    %35 = vector.extract_strided_slice %13 {offsets = [16, 0], sizes = [16, 32], strides = [1, 1]} : vector<32x32xf32> to vector<16x32xf32>
    %c0_23 = arith.constant 0 : index
    %c1 = arith.constant 1 : index
    %c0_24 = arith.constant 0 : index
    %c0_25 = arith.constant 0 : index
    %36 = vector.load %arg1[%c0_23, %c1, %c0_24, %c0_25] : memref<1x2x21x32xbf16, #tpu.memory_space<vmem>>, vector<1x1x21x32xbf16>
    %37 = vector.shape_cast %36 : vector<1x1x21x32xbf16> to vector<21x32xbf16>
    %c0_26 = arith.constant 0 : index
    %c1_27 = arith.constant 1 : index
    %c0_28 = arith.constant 0 : index
    %c0_29 = arith.constant 0 : index
    %38 = vector.load %arg2[%c0_26, %c1_27, %c0_28, %c0_29] : memref<1x2x21x32xbf16, #tpu.memory_space<vmem>>, vector<1x1x21x32xbf16>
    %39 = vector.shape_cast %38 : vector<1x1x21x32xbf16> to vector<21x32xbf16>
    %40 = arith.truncf %35 : vector<16x32xf32> to vector<16x32xbf16>
    %cst_30 = arith.constant dense<0.000000e+00> : vector<16x21xf32>
    %41 = tpu.matmul %40, %37, %cst_30 {dimension_numbers = #tpu.dot_dimension_numbers<[1], [1], [0], [0], [0, 0, 1, 0], [], []>} : vector<16x32xbf16>, vector<21x32xbf16>, vector<16x21xf32> -> vector<16x21xf32>
    %cst_31 = arith.constant 0.176776692 : f32
    %42 = vector.broadcast %cst_31 : f32 to vector<16x21xf32>
    %43 = arith.mulf %41, %42 : vector<16x21xf32>
    %cst_32 = arith.constant dense<0xFF800000> : vector<16xf32>
    %44 = vector.multi_reduction <maximumf>, %43, %cst_32 [1] : vector<16x21xf32> to vector<16xf32>
    %45 = vector.shape_cast %44 : vector<16xf32> to vector<16x1xf32>
    %46 = vector.broadcast %45 : vector<16x1xf32> to vector<16x21xf32>
    %47 = arith.subf %43, %46 : vector<16x21xf32>
    %48 = math.exp %47 : vector<16x21xf32>
    %cst_33 = arith.constant dense<0.000000e+00> : vector<16xf32>
    %49 = vector.multi_reduction <add>, %48, %cst_33 [1] : vector<16x21xf32> to vector<16xf32>
    %50 = vector.shape_cast %49 : vector<16xf32> to vector<16x1xf32>
    %51 = tpu.reciprocal %50 {approx = true} : vector<16x1xf32> -> vector<16x1xf32>
    %52 = vector.broadcast %51 : vector<16x1xf32> to vector<16x21xf32>
    %53 = arith.mulf %48, %52 : vector<16x21xf32>
    %54 = arith.truncf %53 : vector<16x21xf32> to vector<16x21xbf16>
    %cst_34 = arith.constant dense<0.000000e+00> : vector<16x32xf32>
    %55 = tpu.matmul %54, %39, %cst_34 {dimension_numbers = #tpu.dot_dimension_numbers<[1], [0], [0], [1], [0, 0, 1, 1], [], []>} : vector<16x21xbf16>, vector<21x32xbf16>, vector<16x32xf32> -> vector<16x32xf32>
    %56 = tpu.concatenate %34, %55 in 0 : vector<16x32xf32>, vector<16x32xf32> -> vector<32x32xf32>
    %c0_35 = arith.constant 0 : index
    %c0_36 = arith.constant 0 : index
    %c0_37 = arith.constant 0 : index
    %57 = vector.load %arg8[%c0_35, %c0_36, %c0_37] : memref<1x32x32xbf16, #tpu.memory_space<vmem>>, vector<1x32x32xbf16>
    %58 = vector.shape_cast %57 : vector<1x32x32xbf16> to vector<32x32xbf16>
    %59 = arith.truncf %56 : vector<32x32xf32> to vector<32x32xbf16>
    %cst_38 = arith.constant dense<0.000000e+00> : vector<32x32xf32>
    %60 = tpu.matmul %59, %58, %cst_38 {dimension_numbers = #tpu.dot_dimension_numbers<[1], [0], [0], [1], [0, 0, 1, 1], [], []>} : vector<32x32xbf16>, vector<32x32xbf16>, vector<32x32xf32> -> vector<32x32xf32>
    %c0_39 = arith.constant 0 : index
    %c0_40 = arith.constant 0 : index
    %c0_41 = arith.constant 0 : index
    %61 = vector.load %arg9[%c0_39, %c0_40, %c0_41] : memref<1x1x32xf32, #tpu.memory_space<vmem>>, vector<1x1x32xf32>
    %62 = vector.shape_cast %61 : vector<1x1x32xf32> to vector<1x32xf32>
    %63 = vector.broadcast %62 : vector<1x32xf32> to vector<32x32xf32>
    %64 = arith.addf %60, %63 : vector<32x32xf32>
    %65 = arith.addf %3, %64 : vector<32x32xf32>
    %c0_42 = arith.constant 0 : index
    %c0_43 = arith.constant 0 : index
    %c0_44 = arith.constant 0 : index
    %66 = vector.load %arg10[%c0_42, %c0_43, %c0_44] : memref<1x1x32xf32, #tpu.memory_space<vmem>>, vector<1x1x32xf32>
    %67 = vector.shape_cast %66 : vector<1x1x32xf32> to vector<1x32xf32>
    %c0_45 = arith.constant 0 : index
    %c0_46 = arith.constant 0 : index
    %c0_47 = arith.constant 0 : index
    %68 = vector.load %arg11[%c0_45, %c0_46, %c0_47] : memref<1x1x32xf32, #tpu.memory_space<vmem>>, vector<1x1x32xf32>
    %69 = vector.shape_cast %68 : vector<1x1x32xf32> to vector<1x32xf32>
    %cst_48 = arith.constant dense<0.000000e+00> : vector<32xf32>
    %70 = vector.multi_reduction <add>, %65, %cst_48 [1] : vector<32x32xf32> to vector<32xf32>
    %71 = vector.shape_cast %70 : vector<32xf32> to vector<32x1xf32>
    %cst_49 = arith.constant 3.200000e+01 : f32
    %72 = vector.broadcast %cst_49 : f32 to vector<32x1xf32>
    %73 = arith.divf %71, %72 : vector<32x1xf32>
    %74 = vector.broadcast %73 : vector<32x1xf32> to vector<32x32xf32>
    %75 = arith.subf %65, %74 : vector<32x32xf32>
    %76 = arith.mulf %75, %75 : vector<32x32xf32>
    %cst_50 = arith.constant dense<0.000000e+00> : vector<32xf32>
    %77 = vector.multi_reduction <add>, %76, %cst_50 [1] : vector<32x32xf32> to vector<32xf32>
    %78 = vector.shape_cast %77 : vector<32xf32> to vector<32x1xf32>
    %cst_51 = arith.constant 3.200000e+01 : f32
    %79 = vector.broadcast %cst_51 : f32 to vector<32x1xf32>
    %80 = arith.divf %78, %79 : vector<32x1xf32>
    %cst_52 = arith.constant 9.99999974E-6 : f32
    %81 = vector.broadcast %cst_52 : f32 to vector<32x1xf32>
    %82 = arith.addf %80, %81 : vector<32x1xf32>
    %83 = math.rsqrt %82 : vector<32x1xf32>
    %84 = vector.broadcast %83 : vector<32x1xf32> to vector<32x32xf32>
    %85 = arith.mulf %75, %84 : vector<32x32xf32>
    %86 = vector.broadcast %67 : vector<1x32xf32> to vector<32x32xf32>
    %87 = arith.mulf %85, %86 : vector<32x32xf32>
    %88 = vector.broadcast %69 : vector<1x32xf32> to vector<32x32xf32>
    %89 = arith.addf %87, %88 : vector<32x32xf32>
    %c0_53 = arith.constant 0 : index
    %c0_54 = arith.constant 0 : index
    %c0_55 = arith.constant 0 : index
    %90 = vector.load %arg12[%c0_53, %c0_54, %c0_55] : memref<1x32x64xbf16, #tpu.memory_space<vmem>>, vector<1x32x64xbf16>
    %91 = vector.shape_cast %90 : vector<1x32x64xbf16> to vector<32x64xbf16>
    %92 = arith.truncf %89 : vector<32x32xf32> to vector<32x32xbf16>
    %cst_56 = arith.constant dense<0.000000e+00> : vector<32x64xf32>
    %93 = tpu.matmul %92, %91, %cst_56 {dimension_numbers = #tpu.dot_dimension_numbers<[1], [0], [0], [1], [0, 0, 1, 1], [], []>} : vector<32x32xbf16>, vector<32x64xbf16>, vector<32x64xf32> -> vector<32x64xf32>
    %c0_57 = arith.constant 0 : index
    %c0_58 = arith.constant 0 : index
    %c0_59 = arith.constant 0 : index
    %94 = vector.load %arg13[%c0_57, %c0_58, %c0_59] : memref<1x1x64xf32, #tpu.memory_space<vmem>>, vector<1x1x64xf32>
    %95 = vector.shape_cast %94 : vector<1x1x64xf32> to vector<1x64xf32>
    %96 = vector.broadcast %95 : vector<1x64xf32> to vector<32x64xf32>
    %97 = arith.addf %93, %96 : vector<32x64xf32>
    %cst_60 = arith.constant 0.000000e+00 : f32
    %98 = vector.broadcast %cst_60 : f32 to vector<32x64xf32>
    %99 = arith.maximumf %97, %98 : vector<32x64xf32>
    %c0_61 = arith.constant 0 : index
    %c0_62 = arith.constant 0 : index
    %c0_63 = arith.constant 0 : index
    %100 = vector.load %arg14[%c0_61, %c0_62, %c0_63] : memref<1x64x32xbf16, #tpu.memory_space<vmem>>, vector<1x64x32xbf16>
    %101 = vector.shape_cast %100 : vector<1x64x32xbf16> to vector<64x32xbf16>
    %102 = arith.truncf %99 : vector<32x64xf32> to vector<32x64xbf16>
    %cst_64 = arith.constant dense<0.000000e+00> : vector<32x32xf32>
    %103 = tpu.matmul %102, %101, %cst_64 {dimension_numbers = #tpu.dot_dimension_numbers<[1], [0], [0], [1], [0, 0, 1, 1], [], []>} : vector<32x64xbf16>, vector<64x32xbf16>, vector<32x32xf32> -> vector<32x32xf32>
    %c0_65 = arith.constant 0 : index
    %c0_66 = arith.constant 0 : index
    %c0_67 = arith.constant 0 : index
    %104 = vector.load %arg15[%c0_65, %c0_66, %c0_67] : memref<1x1x32xf32, #tpu.memory_space<vmem>>, vector<1x1x32xf32>
    %105 = vector.shape_cast %104 : vector<1x1x32xf32> to vector<1x32xf32>
    %106 = vector.broadcast %105 : vector<1x32xf32> to vector<32x32xf32>
    %107 = arith.addf %103, %106 : vector<32x32xf32>
    %108 = arith.addf %89, %107 : vector<32x32xf32>
    %c0_68 = arith.constant 0 : index
    %c0_69 = arith.constant 0 : index
    %c0_70 = arith.constant 0 : index
    %109 = vector.load %arg16[%c0_68, %c0_69, %c0_70] : memref<1x1x32xf32, #tpu.memory_space<vmem>>, vector<1x1x32xf32>
    %110 = vector.shape_cast %109 : vector<1x1x32xf32> to vector<1x32xf32>
    %c0_71 = arith.constant 0 : index
    %c0_72 = arith.constant 0 : index
    %c0_73 = arith.constant 0 : index
    %111 = vector.load %arg17[%c0_71, %c0_72, %c0_73] : memref<1x1x32xf32, #tpu.memory_space<vmem>>, vector<1x1x32xf32>
    %112 = vector.shape_cast %111 : vector<1x1x32xf32> to vector<1x32xf32>
    %cst_74 = arith.constant dense<0.000000e+00> : vector<32xf32>
    %113 = vector.multi_reduction <add>, %108, %cst_74 [1] : vector<32x32xf32> to vector<32xf32>
    %114 = vector.shape_cast %113 : vector<32xf32> to vector<32x1xf32>
    %cst_75 = arith.constant 3.200000e+01 : f32
    %115 = vector.broadcast %cst_75 : f32 to vector<32x1xf32>
    %116 = arith.divf %114, %115 : vector<32x1xf32>
    %117 = vector.broadcast %116 : vector<32x1xf32> to vector<32x32xf32>
    %118 = arith.subf %108, %117 : vector<32x32xf32>
    %119 = arith.mulf %118, %118 : vector<32x32xf32>
    %cst_76 = arith.constant dense<0.000000e+00> : vector<32xf32>
    %120 = vector.multi_reduction <add>, %119, %cst_76 [1] : vector<32x32xf32> to vector<32xf32>
    %121 = vector.shape_cast %120 : vector<32xf32> to vector<32x1xf32>
    %cst_77 = arith.constant 3.200000e+01 : f32
    %122 = vector.broadcast %cst_77 : f32 to vector<32x1xf32>
    %123 = arith.divf %121, %122 : vector<32x1xf32>
    %cst_78 = arith.constant 9.99999974E-6 : f32
    %124 = vector.broadcast %cst_78 : f32 to vector<32x1xf32>
    %125 = arith.addf %123, %124 : vector<32x1xf32>
    %126 = math.rsqrt %125 : vector<32x1xf32>
    %127 = vector.broadcast %126 : vector<32x1xf32> to vector<32x32xf32>
    %128 = arith.mulf %118, %127 : vector<32x32xf32>
    %129 = vector.broadcast %110 : vector<1x32xf32> to vector<32x32xf32>
    %130 = arith.mulf %128, %129 : vector<32x32xf32>
    %131 = vector.broadcast %112 : vector<1x32xf32> to vector<32x32xf32>
    %132 = arith.addf %130, %131 : vector<32x32xf32>
    %c0_79 = arith.constant 0 : index
    %c0_80 = arith.constant 0 : index
    %133 = vector.load %arg28[%c0_79, %c0_80] : memref<32x32xf32, #tpu.memory_space<vmem>>, vector<32x32xf32>
    tpu.vector_store %arg28[%c0_79, %c0_80], %132 {strides = array<i32>} : memref<32x32xf32, #tpu.memory_space<vmem>>, vector<32x32xf32>,
    %c0_81 = arith.constant 0 : index
    %c0_82 = arith.constant 0 : index
    %134 = vector.load %arg18[%c0_81, %c0_82] : memref<32x8xbf16, #tpu.memory_space<vmem>>, vector<32x8xbf16>
    %135 = arith.truncf %132 : vector<32x32xf32> to vector<32x32xbf16>
    %cst_83 = arith.constant dense<0.000000e+00> : vector<32x8xf32>
    %136 = tpu.matmul %135, %134, %cst_83 {dimension_numbers = #tpu.dot_dimension_numbers<[1], [0], [0], [1], [0, 0, 1, 1], [], []>} : vector<32x32xbf16>, vector<32x8xbf16>, vector<32x8xf32> -> vector<32x8xf32>
    %c0_84 = arith.constant 0 : index
    %c0_85 = arith.constant 0 : index
    %137 = vector.load %arg19[%c0_84, %c0_85] : memref<1x8xf32, #tpu.memory_space<vmem>>, vector<1x8xf32>
    %138 = vector.broadcast %137 : vector<1x8xf32> to vector<32x8xf32>
    %139 = arith.addf %136, %138 : vector<32x8xf32>
    %c0_86 = arith.constant 0 : index
    %c0_87 = arith.constant 0 : index
    %c0_88 = arith.constant 0 : index
    %140 = vector.load %arg26[%c0_86, %c0_87, %c0_88] : memref<1x32x8xf32, #tpu.memory_space<vmem>>, vector<1x32x8xf32>
    %141 = vector.shape_cast %140 : vector<1x32x8xf32> to vector<32x8xf32>
    %142 = vector.shape_cast %139 : vector<32x8xf32> to vector<1x32x8xf32>
    tpu.vector_store %arg26[%c0_86, %c0_87, %c0_88], %142 {strides = array<i32>} : memref<1x32x8xf32, #tpu.memory_space<vmem>>, vector<1x32x8xf32>,
    %c0_89 = arith.constant 0 : index
    %c0_90 = arith.constant 0 : index
    %143 = vector.load %arg20[%c0_89, %c0_90] : memref<32x32xbf16, #tpu.memory_space<vmem>>, vector<32x32xbf16>
    %144 = arith.truncf %132 : vector<32x32xf32> to vector<32x32xbf16>
    %cst_91 = arith.constant dense<0.000000e+00> : vector<32x32xf32>
    %145 = tpu.matmul %144, %143, %cst_91 {dimension_numbers = #tpu.dot_dimension_numbers<[1], [0], [0], [1], [0, 0, 1, 1], [], []>} : vector<32x32xbf16>, vector<32x32xbf16>, vector<32x32xf32> -> vector<32x32xf32>
    %c0_92 = arith.constant 0 : index
    %c0_93 = arith.constant 0 : index
    %146 = vector.load %arg21[%c0_92, %c0_93] : memref<1x32xf32, #tpu.memory_space<vmem>>, vector<1x32xf32>
    %147 = vector.broadcast %146 : vector<1x32xf32> to vector<32x32xf32>
    %148 = arith.addf %145, %147 : vector<32x32xf32>
    %cst_94 = arith.constant 0.000000e+00 : f32
    %149 = vector.broadcast %cst_94 : f32 to vector<32x32xf32>
    %150 = arith.maximumf %148, %149 : vector<32x32xf32>
    %c0_95 = arith.constant 0 : index
    %c0_96 = arith.constant 0 : index
    %151 = vector.load %arg22[%c0_95, %c0_96] : memref<32x32xbf16, #tpu.memory_space<vmem>>, vector<32x32xbf16>
    %152 = arith.truncf %150 : vector<32x32xf32> to vector<32x32xbf16>
    %cst_97 = arith.constant dense<0.000000e+00> : vector<32x32xf32>
    %153 = tpu.matmul %152, %151, %cst_97 {dimension_numbers = #tpu.dot_dimension_numbers<[1], [0], [0], [1], [0, 0, 1, 1], [], []>} : vector<32x32xbf16>, vector<32x32xbf16>, vector<32x32xf32> -> vector<32x32xf32>
    %c0_98 = arith.constant 0 : index
    %c0_99 = arith.constant 0 : index
    %154 = vector.load %arg23[%c0_98, %c0_99] : memref<1x32xf32, #tpu.memory_space<vmem>>, vector<1x32xf32>
    %155 = vector.broadcast %154 : vector<1x32xf32> to vector<32x32xf32>
    %156 = arith.addf %153, %155 : vector<32x32xf32>
    %cst_100 = arith.constant 0.000000e+00 : f32
    %157 = vector.broadcast %cst_100 : f32 to vector<32x32xf32>
    %158 = arith.maximumf %156, %157 : vector<32x32xf32>
    %c0_101 = arith.constant 0 : index
    %c0_102 = arith.constant 0 : index
    %159 = vector.load %arg24[%c0_101, %c0_102] : memref<32x4xbf16, #tpu.memory_space<vmem>>, vector<32x4xbf16>
    %160 = arith.truncf %158 : vector<32x32xf32> to vector<32x32xbf16>
    %cst_103 = arith.constant dense<0.000000e+00> : vector<32x4xf32>
    %161 = tpu.matmul %160, %159, %cst_103 {dimension_numbers = #tpu.dot_dimension_numbers<[1], [0], [0], [1], [0, 0, 1, 1], [], []>} : vector<32x32xbf16>, vector<32x4xbf16>, vector<32x4xf32> -> vector<32x4xf32>
    %c0_104 = arith.constant 0 : index
    %c0_105 = arith.constant 0 : index
    %c0_106 = arith.constant 0 : index
    %162 = vector.load %arg25[%c0_104, %c0_105, %c0_106] : memref<1x1x4xf32, #tpu.memory_space<vmem>>, vector<1x1x4xf32>
    %163 = vector.shape_cast %162 : vector<1x1x4xf32> to vector<1x4xf32>
    %164 = vector.broadcast %163 : vector<1x4xf32> to vector<32x4xf32>
    %165 = arith.addf %161, %164 : vector<32x4xf32>
    %c0_107 = arith.constant 0 : index
    %c0_108 = arith.constant 0 : index
    %166 = vector.load %arg29[%c0_107, %c0_108] : memref<32x4xf32, #tpu.memory_space<vmem>>, vector<32x4xf32>
    %cst_109 = arith.constant 0.000000e+00 : f32
    %cst_110 = arith.constant 1.000000e+00 : f32
    %167 = vector.broadcast %cst_109 : f32 to vector<32x4xf32>
    %168 = arith.maximumf %167, %166 : vector<32x4xf32>
    %169 = vector.broadcast %cst_110 : f32 to vector<32x4xf32>
    %170 = arith.minimumf %169, %168 : vector<32x4xf32>
    %cst_111 = arith.constant 1.000000e-03 : f32
    %171 = vector.broadcast %cst_111 : f32 to vector<32x4xf32>
    %172 = arith.maximumf %170, %171 : vector<32x4xf32>
    %cst_112 = arith.constant 1.000000e+00 : f32
    %173 = vector.broadcast %cst_112 : f32 to vector<32x4xf32>
    %174 = arith.subf %173, %170 : vector<32x4xf32>
    %cst_113 = arith.constant 1.000000e-03 : f32
    %175 = vector.broadcast %cst_113 : f32 to vector<32x4xf32>
    %176 = arith.maximumf %174, %175 : vector<32x4xf32>
    %177 = arith.divf %172, %176 : vector<32x4xf32>
    %178 = math.log %177 : vector<32x4xf32>
    %179 = arith.addf %165, %178 : vector<32x4xf32>
    %180 = arith.negf %179 : vector<32x4xf32>
    %181 = math.exp %180 : vector<32x4xf32>
    %cst_114 = arith.constant 1.000000e+00 : f32
    %182 = vector.broadcast %cst_114 : f32 to vector<32x4xf32>
    %183 = arith.addf %182, %181 : vector<32x4xf32>
    %184 = arith.divf %182, %183 : vector<32x4xf32>
    %c0_115 = arith.constant 0 : index
    %c0_116 = arith.constant 0 : index
    %185 = vector.load %arg29[%c0_115, %c0_116] : memref<32x4xf32, #tpu.memory_space<vmem>>, vector<32x4xf32>
    tpu.vector_store %arg29[%c0_115, %c0_116], %184 {strides = array<i32>} : memref<32x4xf32, #tpu.memory_space<vmem>>, vector<32x4xf32>,
    %c0_117 = arith.constant 0 : index
    %c0_118 = arith.constant 0 : index
    %c0_119 = arith.constant 0 : index
    %186 = vector.load %arg27[%c0_117, %c0_118, %c0_119] : memref<1x32x4xf32, #tpu.memory_space<vmem>>, vector<1x32x4xf32>
    %187 = vector.shape_cast %186 : vector<1x32x4xf32> to vector<32x4xf32>
    %188 = vector.shape_cast %184 : vector<32x4xf32> to vector<1x32x4xf32>
    tpu.vector_store %arg27[%c0_117, %c0_118, %c0_119], %188 {strides = array<i32>} : memref<1x32x4xf32, #tpu.memory_space<vmem>>, vector<1x32x4xf32>,
    return
  }
  func.func @transform_0(%arg0: i32) -> (i32, i32, i32, i32) {
    %c0_i32 = arith.constant 0 : i32
    %c0_i32_0 = arith.constant 0 : i32
    %c0_i32_1 = arith.constant 0 : i32
    %c0_i32_2 = arith.constant 0 : i32
    return %arg0, %c0_i32, %c0_i32_0, %c0_i32_1 : i32, i32, i32, i32
  }
  func.func @transform_1(%arg0: i32) -> (i32, i32, i32, i32) {
    %c0_i32 = arith.constant 0 : i32
    %c0_i32_0 = arith.constant 0 : i32
    %c0_i32_1 = arith.constant 0 : i32
    %c0_i32_2 = arith.constant 0 : i32
    return %arg0, %c0_i32, %c0_i32_0, %c0_i32_1 : i32, i32, i32, i32
  }
  func.func @transform_2(%arg0: i32) -> (i32, i32) {
    %c0_i32 = arith.constant 0 : i32
    %c0_i32_0 = arith.constant 0 : i32
    %c0_i32_1 = arith.constant 0 : i32
    return %c0_i32, %c0_i32_0 : i32, i32
  }
  func.func @transform_3(%arg0: i32) -> (i32, i32) {
    %c0_i32 = arith.constant 0 : i32
    %c0_i32_0 = arith.constant 0 : i32
    %c0_i32_1 = arith.constant 0 : i32
    return %c0_i32, %c0_i32_0 : i32, i32
  }
  func.func @transform_4(%arg0: i32) -> (i32, i32) {
    %c0_i32 = arith.constant 0 : i32
    %c0_i32_0 = arith.constant 0 : i32
    %c0_i32_1 = arith.constant 0 : i32
    return %c0_i32, %c0_i32_0 : i32, i32
  }
  func.func @transform_5(%arg0: i32) -> (i32, i32, i32) {
    %c0_i32 = arith.constant 0 : i32
    %c0_i32_0 = arith.constant 0 : i32
    %c0_i32_1 = arith.constant 0 : i32
    return %arg0, %c0_i32, %c0_i32_0 : i32, i32, i32
  }
  func.func @transform_6(%arg0: i32) -> (i32, i32, i32) {
    %c0_i32 = arith.constant 0 : i32
    %c0_i32_0 = arith.constant 0 : i32
    %c0_i32_1 = arith.constant 0 : i32
    return %arg0, %c0_i32, %c0_i32_0 : i32, i32, i32
  }
  func.func @transform_7(%arg0: i32) -> (i32, i32, i32) {
    %c0_i32 = arith.constant 0 : i32
    %c0_i32_0 = arith.constant 0 : i32
    %c0_i32_1 = arith.constant 0 : i32
    return %arg0, %c0_i32, %c0_i32_0 : i32, i32, i32
  }
  func.func @transform_8(%arg0: i32) -> (i32, i32, i32) {
    %c0_i32 = arith.constant 0 : i32
    %c0_i32_0 = arith.constant 0 : i32
    %c0_i32_1 = arith.constant 0 : i32
    return %arg0, %c0_i32, %c0_i32_0 : i32, i32, i32
  }
  func.func @transform_9(%arg0: i32) -> (i32, i32, i32) {
    %c0_i32 = arith.constant 0 : i32
    %c0_i32_0 = arith.constant 0 : i32
    %c0_i32_1 = arith.constant 0 : i32
    return %arg0, %c0_i32, %c0_i32_0 : i32, i32, i32
  }
  func.func @transform_10(%arg0: i32) -> (i32, i32, i32) {
    %c0_i32 = arith.constant 0 : i32
    %c0_i32_0 = arith.constant 0 : i32
    %c0_i32_1 = arith.constant 0 : i32
    return %arg0, %c0_i32, %c0_i32_0 : i32, i32, i32
  }
  func.func @transform_11(%arg0: i32) -> (i32, i32, i32) {
    %c0_i32 = arith.constant 0 : i32
    %c0_i32_0 = arith.constant 0 : i32
    %c0_i32_1 = arith.constant 0 : i32
    return %arg0, %c0_i32, %c0_i32_0 : i32, i32, i32
  }
  func.func @transform_12(%arg0: i32) -> (i32, i32, i32) {
    %c0_i32 = arith.constant 0 : i32
    %c0_i32_0 = arith.constant 0 : i32
    %c0_i32_1 = arith.constant 0 : i32
    return %arg0, %c0_i32, %c0_i32_0 : i32, i32, i32
  }
  func.func @transform_13(%arg0: i32) -> (i32, i32, i32) {
    %c0_i32 = arith.constant 0 : i32
    %c0_i32_0 = arith.constant 0 : i32
    %c0_i32_1 = arith.constant 0 : i32
    return %arg0, %c0_i32, %c0_i32_0 : i32, i32, i32
  }
  func.func @transform_14(%arg0: i32) -> (i32, i32, i32) {
    %c0_i32 = arith.constant 0 : i32
    %c0_i32_0 = arith.constant 0 : i32
    %c0_i32_1 = arith.constant 0 : i32
    return %arg0, %c0_i32, %c0_i32_0 : i32, i32, i32
  }
  func.func @transform_15(%arg0: i32) -> (i32, i32, i32) {
    %c0_i32 = arith.constant 0 : i32
    %c0_i32_0 = arith.constant 0 : i32
    %c0_i32_1 = arith.constant 0 : i32
    return %arg0, %c0_i32, %c0_i32_0 : i32, i32, i32
  }
  func.func @transform_16(%arg0: i32) -> (i32, i32, i32) {
    %c0_i32 = arith.constant 0 : i32
    %c0_i32_0 = arith.constant 0 : i32
    %c0_i32_1 = arith.constant 0 : i32
    return %arg0, %c0_i32, %c0_i32_0 : i32, i32, i32
  }
  func.func @transform_17(%arg0: i32) -> (i32, i32) {
    %c0_i32 = arith.constant 0 : i32
    %c0_i32_0 = arith.constant 0 : i32
    %c0_i32_1 = arith.constant 0 : i32
    return %c0_i32, %c0_i32_0 : i32, i32
  }
  func.func @transform_18(%arg0: i32) -> (i32, i32) {
    %c0_i32 = arith.constant 0 : i32
    %c0_i32_0 = arith.constant 0 : i32
    %c0_i32_1 = arith.constant 0 : i32
    return %c0_i32, %c0_i32_0 : i32, i32
  }
  func.func @transform_19(%arg0: i32) -> (i32, i32) {
    %c0_i32 = arith.constant 0 : i32
    %c0_i32_0 = arith.constant 0 : i32
    %c0_i32_1 = arith.constant 0 : i32
    return %c0_i32, %c0_i32_0 : i32, i32
  }
  func.func @transform_20(%arg0: i32) -> (i32, i32) {
    %c0_i32 = arith.constant 0 : i32
    %c0_i32_0 = arith.constant 0 : i32
    %c0_i32_1 = arith.constant 0 : i32
    return %c0_i32, %c0_i32_0 : i32, i32
  }
  func.func @transform_21(%arg0: i32) -> (i32, i32) {
    %c0_i32 = arith.constant 0 : i32
    %c0_i32_0 = arith.constant 0 : i32
    %c0_i32_1 = arith.constant 0 : i32
    return %c0_i32, %c0_i32_0 : i32, i32
  }
  func.func @transform_22(%arg0: i32) -> (i32, i32) {
    %c0_i32 = arith.constant 0 : i32
    %c0_i32_0 = arith.constant 0 : i32
    %c0_i32_1 = arith.constant 0 : i32
    return %c0_i32, %c0_i32_0 : i32, i32
  }
  func.func @transform_23(%arg0: i32) -> (i32, i32) {
    %c0_i32 = arith.constant 0 : i32
    %c0_i32_0 = arith.constant 0 : i32
    %c0_i32_1 = arith.constant 0 : i32
    return %c0_i32, %c0_i32_0 : i32, i32
  }
  func.func @transform_24(%arg0: i32) -> (i32, i32, i32) {
    %c0_i32 = arith.constant 0 : i32
    %c0_i32_0 = arith.constant 0 : i32
    %c0_i32_1 = arith.constant 0 : i32
    return %arg0, %c0_i32, %c0_i32_0 : i32, i32, i32
  }
  func.func @transform_25(%arg0: i32) -> (i32, i32, i32) {
    %c0_i32 = arith.constant 0 : i32
    %c0_i32_0 = arith.constant 0 : i32
    %c0_i32_1 = arith.constant 0 : i32
    return %arg0, %c0_i32, %c0_i32_0 : i32, i32, i32
  }
  func.func @transform_26(%arg0: i32) -> (i32, i32, i32) {
    %c0_i32 = arith.constant 0 : i32
    %c0_i32_0 = arith.constant 0 : i32
    %c0_i32_1 = arith.constant 0 : i32
    return %arg0, %c0_i32, %c0_i32_0 : i32, i32, i32
  }
}

</mosaic_0001>

<bundles_post_ra>
// kernel: tile.8
= control target key start
LH: loop header
LB: loop body
LE: loop exit
PB: predicated region body
PF: predicated region fallthrough
CT: control target
= control target key end

     0   :  { %s28_s0 = inlined_call_operand.vmem [shape: f32[3], index: 0, kind: input, shape index: {}]   ;;  %s29_s1 = inlined_call_operand.vmem [shape: f32[9,3], index: 1, kind: output, shape index: {}]  }
   0x1   :  { %v4_v0 = vld [vmem:[%s28_s0] ss:$0 sm:$0xff] }
   0x2   :  { %5 = vst [vmem:[%s29_s1] sm:$0xff] %v4_v0 }
   0x3   :  { %8 = vst [vmem:[%s29_s1 + $0x8] sm:$0xff] %v4_v0 }

// kernel: mul.14
= control target key start
LH: loop header
LB: loop body
LE: loop exit
PB: predicated region body
PF: predicated region fallthrough
CT: control target
= control target key end

     0   :  { %s75_s10 = smov 24   ;;  %s76_s11 = smov 18   ;;  %vm3_vm0 = vcmask 23552   ;;  %vm9_vm1 = vcmask 220352   ;;  %vm15_vm2 = vcmask 195752   ;;  %vm21_vm3 = vcmask 171152   ;;  %s123_s0 = inlined_call_operand.vmem [shape: f32[9,3], index: 0, kind: input, shape index: {}]   ;;  %s124_s1 = inlined_call_operand.vmem [shape: f32[27], index: 1, kind: output, shape index: {}]  }
   0x1   :  { %v59_v0 = vld [vmem:[%s123_s0 + $0x8] sm:$0x1]   ;;  %v61_v1 = vld [vmem:[%s123_s0 + $0x6] sm:$0x1]   ;;  %v63_v2 = vld [vmem:[%s123_s0 + $0x4] sm:$0x1]  }
   0x2   :  { %7 = vrot.lane.b32.xlu0 %v59_v0, %s75_s10  ;;  %19 = vrot.lane.b32.xlu1 %v61_v1, %s76_s11  ;;  %s77_s14 = smov 12   ;;  %v60_v3 = vld [vmem:[%s123_s0 + $0x7] sm:$0x1]   ;;  %v62_v4 = vld [vmem:[%s123_s0 + $0x5] sm:$0x1]   ;;  %s78_s19 = smov 21  }
   0x3   :  { %31 = vrot.lane.b32.xlu2 %v63_v2, %s77_s14  ;;  %s79_s20 = smov 15   ;;  %v64_v5 = vld [vmem:[%s123_s0 + $0x3] sm:$0x1]   ;;  %s80_s23 = smov 9   ;;  %v65_v6 = vld [vmem:[%s123_s0 + $0x2] sm:$0x1]  }
   0x4   :  { %v66_v7 = vld [vmem:[%s123_s0 + $0x1] sm:$0x1]   ;;  %s81_s28 = smov 6   ;;  %s82_s29 = smov 3   ;;  %v2_v8 = vld [vmem:[%s123_s0] sm:$0x1]  }
   0x5   :  { %4 = vst.msk [vmem:[#allocation0] sm:$0x1] %vm3_vm0, %v2_v8   ;;  %vm27_vm4 = vcmask 146552   ;;  %vm33_vm5 = vcmask 121952   ;;  %vm39_vm6 = vcmask 97352   ;;  %vm45_vm7 = vcmask 72752  }
   0x6   :  { %vm51_vm8 = vcmask 48152  }
   0xa   :  { %13 = vrot.lane.b32.xlu0 %v60_v3, %s78_s19  ;;  %25 = vrot.lane.b32.xlu1 %v62_v4, %s79_s20 }
   0xb   :  { %37 = vrot.lane.b32.xlu2 %v64_v5, %s80_s23 }
  0x12   :  { %43 = vrot.lane.b32.xlu0 %v65_v6, %s81_s28  ;;  %49 = vrot.lane.b32.xlu1 %v66_v7, %s82_s29 }
  0x5d   :  { %v32_v9 = vpop.permute.xlu2 %31  }
  0x65   :  { %v38_v10 = vpop.permute.xlu2 %37  }
  0x74   :  { %v8_v11 = vpop.permute.xlu0 %7   ;;  %v20_v12 = vpop.permute.xlu1 %19  }
  0x75   :  { %10 = vst.msk [vmem:[#allocation0] sm:$0x1] %vm9_vm1, %v8_v11  }
  0x7c   :  { %v14_v13 = vpop.permute.xlu0 %13   ;;  %v26_v14 = vpop.permute.xlu1 %25  }
  0x7d   :  { %16 = vst.msk [vmem:[#allocation0] sm:$0x1] %vm15_vm2, %v14_v13  }
  0x7e   :  { %22 = vst.msk [vmem:[#allocation0] sm:$0x1] %vm21_vm3, %v20_v12  }
  0x7f   :  { %28 = vst.msk [vmem:[#allocation0] sm:$0x1] %vm27_vm4, %v26_v14  }
  0x80   :  { %34 = vst.msk [vmem:[#allocation0] sm:$0x1] %vm33_vm5, %v32_v9  }
  0x81   :  { %40 = vst.msk [vmem:[#allocation0] sm:$0x1] %vm39_vm6, %v38_v10  }
  0x84   :  { %v44_v15 = vpop.permute.xlu0 %43   ;;  %v50_v16 = vpop.permute.xlu1 %49  }
  0x85   :  { %46 = vst.msk [vmem:[#allocation0] sm:$0x1] %vm45_vm7, %v44_v15  }
  0x86   :  { %52 = vst.msk [vmem:[#allocation0] sm:$0x1] %vm51_vm8, %v50_v16  }
  0x8d   :  { %v55_v17 = vld [vmem:[#allocation0] sm:$0x1] }
  0x8e   :  { %58 = vst [vmem:[%s124_s1] sm:$0x1] %v55_v17 }

// kernel: dab_deformable_detr_forward.10
= control target key start
LH: loop header
LB: loop body
LE: loop exit
PB: predicated region body
PF: predicated region fallthrough
CT: control target
= control target key end

     0   :  { %s734_s12 = smov 0   ;;  %s901_s0 = inlined_call_operand.vmem [shape: bf16[512,27], index: 0, kind: input, shape index: {}]   ;;  %s902_s1 = inlined_call_operand.vmem [shape: bf16[27,16], index: 1, kind: input, shape index: {}]   ;;  %s903_s2 = inlined_call_operand.vmem [shape: f32[1,16], index: 2, kind: input, shape index: {}]   ;;  %s904_s3 = inlined_call_operand.vmem [shape: f32[512,16], index: 3, kind: output, shape index: {}]  }
   0x1 LB: > { %s572_s13 = sadd.s32 4294967295, %s711_s12   ;;  %p576_p0 = scmp.ge.s32.totalorder %s711_s12, 1  ;;  %s711_s12 = sphi %s734_s12, %s13_s12  }
   0x2   : > { %p138_p1 = scmp.lt.s32.totalorder %s711_s12, 3 }
   0x4   : > { %p139_p2 = pnand %p576_p0, %p138_p1 }
   0x5   : > { %s577_s18 = sshll.u32 (!%p139_p2), %s572_s13, 5 }
   0x6   : > { %142 = sbr.rel (%p139_p2) target bundleno = 219 (0xdb), region = 32  ;;  %p163_p3 = scmp.lt.s32.totalorder (!%p139_p2), %s577_s18, 63 }
   0xb   : > { %v651_v0 = vld [vmem:[%s902_s1 + $0x8] sm:$0xf]  ;;  %v688_v1 = vld [vmem:[%s902_s1 + $0x8] sm:$0x30]  ;;  %vm355_vm0 = vcmask 1044480   ;;  %vm356_vm1 = vcmask 1045504  }
   0xc   : > { %v652_v2 = vor.u32 %v688_v1, %v651_v0  ;;  %v713_v3 = vmov 65535   ;;  %s906_s18 = smov (!%p163_p3, %s577_s18), 63  ;;  %v687_v7 = vld [vmem:[%s902_s1] sm:$0xff]  ;;  %vm306_vm2 = vcmask 220160   ;;  %vm483_vm3 = vcmask 130048  }
   0xd   : > { %v357_v4 = vsel %vm355_vm0, 4294967295, %v713_v3  ;;  %s578_s21 = sshll.u32 %s906_s18, 2  ;;  %v794_v24 = vld [vmem:[%s903_s2] ss:$0 sm:$0xff]  ;;  %s580_s27 = sshll.u32 %s906_s18, 3 }
   0xe   : > { %v358_v5 = vsel %vm356_vm1, %v357_v4, 0  ;;  %s757_s24 = scalar_lea.vmem %s901_s0, %s578_s21  ;;  %s802_s30 = scalar_lea.vmem %s904_s3, %s580_s27 }
   0xf   : > { %v360_v6 = vand.u32 %v652_v2, %v358_v5  ;;  %v671_v8 = vld [vmem:[%s757_s24] sm:$0xff]  ;;  %v672_v12 = vld [vmem:[%s757_s24 + $0x8] sm:$0xff]  ;;  %v673_v16 = vld [vmem:[%s757_s24 + $0x10] sm:$0xff] }
  0x10   : > { %v675_v9 = vld [vmem:[%s757_s24 + $0x20] sm:$0xff]  ;;  %v676_v13 = vld [vmem:[%s757_s24 + $0x28] sm:$0xff]  ;;  %v677_v17 = vld [vmem:[%s757_s24 + $0x30] sm:$0xff] }
  0x11   : > { %368 = vmatpush.bf16.msra.mxu0 %v360_v6  ;;  %689 = vmatpush.bf16.msra.mxu1 %v360_v6  ;;  %v679_v10 = vld [vmem:[%s757_s24 + $0x40] sm:$0xff]  ;;  %v680_v14 = vld [vmem:[%s757_s24 + $0x48] sm:$0xff]  ;;  %v681_v18 = vld [vmem:[%s757_s24 + $0x50] sm:$0xff] }
  0x12   : > { %690 = vmatpush.bf16.msra.mxu2 %v360_v6  ;;  %691 = vmatpush.bf16.msra.mxu3 %v360_v6  ;;  %v683_v11 = vld [vmem:[%s757_s24 + $0x60] sm:$0xff]  ;;  %v684_v15 = vld [vmem:[%s757_s24 + $0x68] sm:$0xff]  ;;  %v685_v19 = vld [vmem:[%s757_s24 + $0x70] sm:$0xff] }
  0x13   : > { %v674_v20 = vld [vmem:[%s757_s24 + $0x18] sm:$0xff] }
  0x14   : > { %v678_v21 = vld [vmem:[%s757_s24 + $0x38] sm:$0xff] }
  0x15   : > { %369 = vmatpush.bf16.msra.mxu0 %v687_v7  ;;  %692 = vmatpush.bf16.msra.mxu1 %v687_v7  ;;  %v682_v22 = vld [vmem:[%s757_s24 + $0x58] sm:$0xff] }
  0x16   : > { %693 = vmatpush.bf16.msra.mxu2 %v687_v7  ;;  %694 = vmatpush.bf16.msra.mxu3 %v687_v7  ;;  %v686_v23 = vld [vmem:[%s757_s24 + $0x78] sm:$0xff] }
  0x18   : > { %653 = vmatmul.msk.bf16.vlgmr.msra.gmra.mxu0 %vm306_vm2, %v671_v8  ;;  %657 = vmatmul.msk.bf16.vlgmr.msra.gmra.mxu1 %vm306_vm2, %v675_v9 }
  0x19   : > { %661 = vmatmul.msk.bf16.vlgmr.msra.gmra.mxu2 %vm306_vm2, %v679_v10  ;;  %665 = vmatmul.msk.bf16.vlgmr.msra.gmra.mxu3 %vm306_vm2, %v683_v11 }
  0x28   : > { %654 = vmatmul.msk.bf16.gmra.mxu0 %vm306_vm2, %v672_v12  ;;  %658 = vmatmul.msk.bf16.gmra.mxu1 %vm306_vm2, %v676_v13 }
  0x29   : > { %662 = vmatmul.msk.bf16.gmra.mxu2 %vm306_vm2, %v680_v14  ;;  %666 = vmatmul.msk.bf16.gmra.mxu3 %vm306_vm2, %v684_v15 }
  0x38   : > { %655 = vmatmul.msk.bf16.gmra.mxu0 %vm306_vm2, %v673_v16  ;;  %659 = vmatmul.msk.bf16.gmra.mxu1 %vm306_vm2, %v677_v17 }
  0x39   : > { %663 = vmatmul.msk.bf16.gmra.mxu2 %vm306_vm2, %v681_v18  ;;  %667 = vmatmul.msk.bf16.gmra.mxu3 %vm306_vm2, %v685_v19 }
  0x48   : > { %656 = vmatmul.msk.bf16.gmra.mxu0 %vm306_vm2, %v674_v20  ;;  %660 = vmatmul.msk.bf16.gmra.mxu1 %vm306_vm2, %v678_v21 }
  0x49   : > { %664 = vmatmul.msk.bf16.gmra.mxu2 %vm306_vm2, %v682_v22  ;;  %668 = vmatmul.msk.bf16.gmra.mxu3 %vm306_vm2, %v686_v23 }
  0x95   : > { %v371_v25 = vpop.f32.mrf.mxu0  ;;  %v391_v26 = vpop.f32.mrf.mxu1 }
  0x96   : > { %v372_v27 = vadd.f32 %v794_v24, %v371_v25  ;;  %v392_v28 = vadd.f32 %v794_v24, %v391_v26 }
  0x98   : > { %v451_v29 = vmax.f32 %v372_v27, 0.0  ;;  %v459_v30 = vmax.f32 %v392_v28, 0.0 }
  0x9a   : > { %484 = vst.msk [vmem:[%s802_s30] sm:$0xff] %vm483_vm3, %v451_v29 }
  0x9b   : > { %492 = vst.msk [vmem:[%s802_s30 + $0x40] sm:$0xff] %vm483_vm3, %v459_v30 }
  0x9c   : > { %v411_v31 = vpop.f32.mrf.mxu2  ;;  %v431_v32 = vpop.f32.mrf.mxu3 }
  0x9d   : > { %v412_v33 = vadd.f32 %v794_v24, %v411_v31  ;;  %v432_v34 = vadd.f32 %v794_v24, %v431_v32  ;;  %v373_v35 = vpop.f32.mrf.mxu0  ;;  %v393_v36 = vpop.f32.mrf.mxu1 }
  0x9e   : > { %v374_v37 = vadd.f32 %v794_v24, %v373_v35  ;;  %v394_v38 = vadd.f32 %v794_v24, %v393_v36 }
  0x9f   : > { %v467_v39 = vmax.f32 %v412_v33, 0.0  ;;  %v475_v40 = vmax.f32 %v432_v34, 0.0 }
  0xa0   : > { %v452_v41 = vmax.f32 %v374_v37, 0.0  ;;  %v460_v42 = vmax.f32 %v394_v38, 0.0 }
  0xa1   : > { %500 = vst.msk [vmem:[%s802_s30 + $0x80] sm:$0xff] %vm483_vm3, %v467_v39 }
  0xa2   : > { %508 = vst.msk [vmem:[%s802_s30 + $0xc0] sm:$0xff] %vm483_vm3, %v475_v40 }
  0xa3   : > { %485 = vst.msk [vmem:[%s802_s30 + $0x8] sm:$0xff] %vm483_vm3, %v452_v41 }
  0xa4   : > { %493 = vst.msk [vmem:[%s802_s30 + $0x48] sm:$0xff] %vm483_vm3, %v460_v42  ;;  %v413_v43 = vpop.f32.mrf.mxu2  ;;  %v433_v44 = vpop.f32.mrf.mxu3 }
  0xa5   : > { %v414_v45 = vadd.f32 %v794_v24, %v413_v43  ;;  %v434_v46 = vadd.f32 %v794_v24, %v433_v44  ;;  %v376_v47 = vpop.f32.mrf.mxu0  ;;  %v396_v48 = vpop.f32.mrf.mxu1 }
  0xa6   : > { %v377_v49 = vadd.f32 %v794_v24, %v376_v47  ;;  %v397_v50 = vadd.f32 %v794_v24, %v396_v48 }
  0xa7   : > { %v468_v51 = vmax.f32 %v414_v45, 0.0  ;;  %v476_v52 = vmax.f32 %v434_v46, 0.0 }
  0xa8   : > { %v453_v53 = vmax.f32 %v377_v49, 0.0  ;;  %v461_v54 = vmax.f32 %v397_v50, 0.0 }
  0xa9   : > { %501 = vst.msk [vmem:[%s802_s30 + $0x88] sm:$0xff] %vm483_vm3, %v468_v51 }
  0xaa   : > { %509 = vst.msk [vmem:[%s802_s30 + $0xc8] sm:$0xff] %vm483_vm3, %v476_v52 }
  0xab   : > { %486 = vst.msk [vmem:[%s802_s30 + $0x10] sm:$0xff] %vm483_vm3, %v453_v53 }
  0xac   : > { %494 = vst.msk [vmem:[%s802_s30 + $0x50] sm:$0xff] %vm483_vm3, %v461_v54  ;;  %v416_v55 = vpop.f32.mrf.mxu2  ;;  %v436_v56 = vpop.f32.mrf.mxu3 }
  0xad   : > { %v417_v57 = vadd.f32 %v794_v24, %v416_v55  ;;  %v437_v58 = vadd.f32 %v794_v24, %v436_v56  ;;  %v378_v59 = vpop.f32.mrf.mxu0  ;;  %v398_v60 = vpop.f32.mrf.mxu1 }
  0xae   : > { %v379_v61 = vadd.f32 %v794_v24, %v378_v59  ;;  %v399_v62 = vadd.f32 %v794_v24, %v398_v60 }
  0xaf   : > { %v469_v63 = vmax.f32 %v417_v57, 0.0  ;;  %v477_v0 = vmax.f32 %v437_v58, 0.0 }
  0xb0   : > { %v454_v1 = vmax.f32 %v379_v61, 0.0  ;;  %v462_v2 = vmax.f32 %v399_v62, 0.0 }
  0xb1   : > { %502 = vst.msk [vmem:[%s802_s30 + $0x90] sm:$0xff] %vm483_vm3, %v469_v63 }
  0xb2   : > { %510 = vst.msk [vmem:[%s802_s30 + $0xd0] sm:$0xff] %vm483_vm3, %v477_v0 }
  0xb3   : > { %487 = vst.msk [vmem:[%s802_s30 + $0x18] sm:$0xff] %vm483_vm3, %v454_v1 }
  0xb4   : > { %495 = vst.msk [vmem:[%s802_s30 + $0x58] sm:$0xff] %vm483_vm3, %v462_v2  ;;  %v418_v3 = vpop.f32.mrf.mxu2  ;;  %v438_v4 = vpop.f32.mrf.mxu3 }
  0xb5   : > { %v419_v5 = vadd.f32 %v794_v24, %v418_v3  ;;  %v439_v6 = vadd.f32 %v794_v24, %v438_v4  ;;  %v381_v7 = vpop.f32.mrf.mxu0  ;;  %v401_v8 = vpop.f32.mrf.mxu1 }
  0xb6   : > { %v382_v9 = vadd.f32 %v794_v24, %v381_v7  ;;  %v402_v10 = vadd.f32 %v794_v24, %v401_v8 }
  0xb7   : > { %v470_v11 = vmax.f32 %v419_v5, 0.0  ;;  %v478_v12 = vmax.f32 %v439_v6, 0.0 }
  0xb8   : > { %v455_v13 = vmax.f32 %v382_v9, 0.0  ;;  %v463_v14 = vmax.f32 %v402_v10, 0.0 }
  0xb9   : > { %503 = vst.msk [vmem:[%s802_s30 + $0x98] sm:$0xff] %vm483_vm3, %v470_v11 }
  0xba   : > { %511 = vst.msk [vmem:[%s802_s30 + $0xd8] sm:$0xff] %vm483_vm3, %v478_v12 }
  0xbb   : > { %488 = vst.msk [vmem:[%s802_s30 + $0x20] sm:$0xff] %vm483_vm3, %v455_v13 }
  0xbc   : > { %496 = vst.msk [vmem:[%s802_s30 + $0x60] sm:$0xff] %vm483_vm3, %v463_v14  ;;  %v421_v15 = vpop.f32.mrf.mxu2  ;;  %v441_v16 = vpop.f32.mrf.mxu3 }
  0xbd   : > { %v422_v17 = vadd.f32 %v794_v24, %v421_v15  ;;  %v442_v18 = vadd.f32 %v794_v24, %v441_v16  ;;  %v383_v19 = vpop.f32.mrf.mxu0  ;;  %v403_v20 = vpop.f32.mrf.mxu1 }
  0xbe   : > { %v384_v21 = vadd.f32 %v794_v24, %v383_v19  ;;  %v404_v22 = vadd.f32 %v794_v24, %v403_v20 }
  0xbf   : > { %v471_v23 = vmax.f32 %v422_v17, 0.0  ;;  %v479_v25 = vmax.f32 %v442_v18, 0.0 }
  0xc0   : > { %v456_v26 = vmax.f32 %v384_v21, 0.0  ;;  %v464_v27 = vmax.f32 %v404_v22, 0.0 }
  0xc1   : > { %504 = vst.msk [vmem:[%s802_s30 + $0xa0] sm:$0xff] %vm483_vm3, %v471_v23 }
  0xc2   : > { %512 = vst.msk [vmem:[%s802_s30 + $0xe0] sm:$0xff] %vm483_vm3, %v479_v25 }
  0xc3   : > { %489 = vst.msk [vmem:[%s802_s30 + $0x28] sm:$0xff] %vm483_vm3, %v456_v26 }
  0xc4   : > { %497 = vst.msk [vmem:[%s802_s30 + $0x68] sm:$0xff] %vm483_vm3, %v464_v27  ;;  %v423_v28 = vpop.f32.mrf.mxu2  ;;  %v443_v29 = vpop.f32.mrf.mxu3 }
  0xc5   : > { %v424_v30 = vadd.f32 %v794_v24, %v423_v28  ;;  %v444_v31 = vadd.f32 %v794_v24, %v443_v29  ;;  %v386_v32 = vpop.f32.mrf.mxu0  ;;  %v406_v33 = vpop.f32.mrf.mxu1 }
  0xc6   : > { %v387_v34 = vadd.f32 %v794_v24, %v386_v32  ;;  %v407_v35 = vadd.f32 %v794_v24, %v406_v33 }
  0xc7   : > { %v472_v36 = vmax.f32 %v424_v30, 0.0  ;;  %v480_v37 = vmax.f32 %v444_v31, 0.0 }
  0xc8   : > { %v457_v38 = vmax.f32 %v387_v34, 0.0  ;;  %v465_v39 = vmax.f32 %v407_v35, 0.0 }
  0xc9   : > { %505 = vst.msk [vmem:[%s802_s30 + $0xa8] sm:$0xff] %vm483_vm3, %v472_v36 }
  0xca   : > { %513 = vst.msk [vmem:[%s802_s30 + $0xe8] sm:$0xff] %vm483_vm3, %v480_v37 }
  0xcb   : > { %490 = vst.msk [vmem:[%s802_s30 + $0x30] sm:$0xff] %vm483_vm3, %v457_v38 }
  0xcc   : > { %498 = vst.msk [vmem:[%s802_s30 + $0x70] sm:$0xff] %vm483_vm3, %v465_v39  ;;  %v426_v40 = vpop.f32.mrf.mxu2  ;;  %v446_v41 = vpop.f32.mrf.mxu3 }
  0xcd   : > { %v427_v42 = vadd.f32 %v794_v24, %v426_v40  ;;  %v447_v43 = vadd.f32 %v794_v24, %v446_v41  ;;  %v388_v44 = vpop.f32.mrf.mxu0  ;;  %v408_v45 = vpop.f32.mrf.mxu1 }
  0xce   : > { %v389_v46 = vadd.f32 %v794_v24, %v388_v44  ;;  %v409_v47 = vadd.f32 %v794_v24, %v408_v45 }
  0xcf   : > { %v473_v48 = vmax.f32 %v427_v42, 0.0  ;;  %v481_v49 = vmax.f32 %v447_v43, 0.0 }
  0xd0   : > { %v458_v50 = vmax.f32 %v389_v46, 0.0  ;;  %v466_v51 = vmax.f32 %v409_v47, 0.0 }
  0xd1   : > { %506 = vst.msk [vmem:[%s802_s30 + $0xb0] sm:$0xff] %vm483_vm3, %v473_v48 }
  0xd2   : > { %514 = vst.msk [vmem:[%s802_s30 + $0xf0] sm:$0xff] %vm483_vm3, %v481_v49 }
  0xd3   : > { %491 = vst.msk [vmem:[%s802_s30 + $0x38] sm:$0xff] %vm483_vm3, %v458_v50 }
  0xd4   : > { %499 = vst.msk [vmem:[%s802_s30 + $0x78] sm:$0xff] %vm483_vm3, %v466_v51  ;;  %v428_v52 = vpop.f32.mrf.mxu2  ;;  %v448_v53 = vpop.f32.mrf.mxu3 }
  0xd5   : > { %v429_v54 = vadd.f32 %v794_v24, %v428_v52  ;;  %v449_v55 = vadd.f32 %v794_v24, %v448_v53 }
  0xd7   : > { %v474_v56 = vmax.f32 %v429_v54, 0.0  ;;  %v482_v57 = vmax.f32 %v449_v55, 0.0 }
  0xd9   : > { %507 = vst.msk [vmem:[%s802_s30 + $0xb8] sm:$0xff] %vm483_vm3, %v474_v56 }
  0xda   : > { %515 = vst.msk [vmem:[%s802_s30 + $0xf8] sm:$0xff] %vm483_vm3, %v482_v57 }
  0xdb PF: > { %s13_s12 = sadd.s32 1, %s711_s12  }
  0xdc   : > { %p10_p4 = scmp.ge.s32.totalorder %s13_s12, 4  }
  0xde   :  { %12 = sbr.rel (!%p10_p4) target bundleno = 1 (0x1), region = 62 }

// kernel: dab_deformable_detr_forward.11
= control target key start
LH: loop header
LB: loop body
LE: loop exit
PB: predicated region body
PF: predicated region fallthrough
CT: control target
= control target key end

     0   :  { %vm179_vm0 = vcmask 130048   ;;  %vm318_vm1 = vcmask 195584   ;;  %s718_s1 = inlined_call_operand.vmem [shape: bf16[144,24], index: 1, kind: input, shape index: {}]   ;;  %s719_s0 = inlined_call_operand.vmem [shape: bf16[128,144], index: 0, kind: input, shape index: {}]   ;;  %s720_s2 = inlined_call_operand.vmem [shape: f32[1,24], index: 2, kind: input, shape index: {}]   ;;  %s721_s3 = inlined_call_operand.vmem [shape: f32[128,24], index: 3, kind: output, shape index: {}]  }
   0x1   :  { %v470_v0 = vld [vmem:[%s718_s1 + $0x38] sm:$0xff]  ;;  %v471_v1 = vld [vmem:[%s718_s1 + $0x40] sm:$0xff]  ;;  %v343_v3 = vld [vmem:[%s719_s0 + $0x8] sm:$0xf0] }
   0x2   :  { %v447_v2 = vld [vmem:[%s719_s0 + $0x4] sm:$0xf]  ;;  %204 = vmatpush.bf16.msra.mxu0 %v470_v0  ;;  %472 = vmatpush.bf16.msra.mxu2 %v470_v0  ;;  %v469_v5 = vld [vmem:[%s718_s1 + $0x30] sm:$0xff]  ;;  %v468_v6 = vld [vmem:[%s718_s1 + $0x28] sm:$0xff] }
   0x3   :  { %v346_v4 = vor.u32 %v447_v2, %v343_v3  ;;  %260 = vmatpush.bf16.msra.mxu1 %v471_v1  ;;  %480 = vmatpush.bf16.msra.mxu3 %v471_v1  ;;  %v457_v7 = vld [vmem:[%s719_s0 + $0x54] sm:$0xf]  ;;  %v383_v8 = vld [vmem:[%s719_s0 + $0x58] sm:$0xf0]  ;;  %v467_v10 = vld [vmem:[%s718_s1 + $0x20] sm:$0xff] }
   0x4   :  { %v386_v9 = vor.u32 %v457_v7, %v383_v8  ;;  %v466_v11 = vld [vmem:[%s718_s1 + $0x18] sm:$0xff]  ;;  %v449_v12 = vld [vmem:[%s719_s0 + $0x14] sm:$0xf]  ;;  %v464_v16 = vld [vmem:[%s718_s1 + $0x8] sm:$0xff] }
   0x5   :  { %v351_v13 = vld [vmem:[%s719_s0 + $0x18] sm:$0xf0]  ;;  %v465_v15 = vld [vmem:[%s718_s1 + $0x10] sm:$0xff]  ;;  %v459_v17 = vld [vmem:[%s719_s0 + $0x64] sm:$0xf] }
   0x6   :  { %439 = vmatmul.msk.bf16.vlgmr.msra.gmra.mxu1 %vm179_vm0, %v346_v4  ;;  %205 = vmatpush.bf16.msra.mxu0 %v469_v5  ;;  %v354_v14 = vor.u32 %v449_v12, %v351_v13  ;;  %v391_v18 = vld [vmem:[%s719_s0 + $0x68] sm:$0xf0]  ;;  %v463_v20 = vld [vmem:[%s718_s1] sm:$0xff]  ;;  %v448_v22 = vld [vmem:[%s719_s0 + $0x4] sm:$0xf0] }
   0x7   :  { %473 = vmatpush.bf16.msra.mxu2 %v469_v5  ;;  %444 = vmatmul.msk.bf16.vlgmr.msra.gmra.mxu3 %vm179_vm0, %v386_v9  ;;  %v394_v19 = vor.u32 %v459_v17, %v391_v18  ;;  %v341_v21 = vld [vmem:[%s719_s0] sm:$0xf]  ;;  %v456_v24 = vld [vmem:[%s719_s0 + $0x44] sm:$0xf0]  ;;  %v451_v27 = vld [vmem:[%s719_s0 + $0x24] sm:$0xf] }
   0x8   :  { %v373_v23 = vld [vmem:[%s719_s0 + $0x40] sm:$0xf]  ;;  %v342_v25 = vor.u32 %v448_v22, %v341_v21  ;;  %v359_v28 = vld [vmem:[%s719_s0 + $0x28] sm:$0xf0]  ;;  %v461_v30 = vld [vmem:[%s719_s0 + $0x74] sm:$0xf] }
   0x9   :  { %v374_v26 = vor.u32 %v456_v24, %v373_v23  ;;  %v362_v29 = vor.u32 %v451_v27, %v359_v28  ;;  %v399_v31 = vld [vmem:[%s719_s0 + $0x78] sm:$0xf0]  ;;  %v349_v33 = vld [vmem:[%s719_s0 + $0x10] sm:$0xf]  ;;  %v450_v34 = vld [vmem:[%s719_s0 + $0x14] sm:$0xf0] }
   0xa   :  { %206 = vmatpush.bf16.msra.mxu0 %v468_v6  ;;  %v402_v32 = vor.u32 %v461_v30, %v399_v31  ;;  %v381_v35 = vld [vmem:[%s719_s0 + $0x50] sm:$0xf]  ;;  %v458_v36 = vld [vmem:[%s719_s0 + $0x54] sm:$0xf0]  ;;  %v350_v37 = vor.u32 %v450_v34, %v349_v33  ;;  %v453_v39 = vld [vmem:[%s719_s0 + $0x34] sm:$0xf] }
   0xb   :  { %474 = vmatpush.bf16.msra.mxu2 %v468_v6  ;;  %v382_v38 = vor.u32 %v458_v36, %v381_v35  ;;  %v367_v40 = vld [vmem:[%s719_s0 + $0x38] sm:$0xf0]  ;;  %v357_v42 = vld [vmem:[%s719_s0 + $0x20] sm:$0xf]  ;;  %v452_v43 = vld [vmem:[%s719_s0 + $0x24] sm:$0xf0] }
   0xc   :  { %v370_v41 = vor.u32 %v453_v39, %v367_v40  ;;  %v389_v44 = vld [vmem:[%s719_s0 + $0x60] sm:$0xf]  ;;  %v460_v45 = vld [vmem:[%s719_s0 + $0x64] sm:$0xf0]  ;;  %v358_v46 = vor.u32 %v452_v43, %v357_v42  ;;  %v455_v48 = vld [vmem:[%s719_s0 + $0x44] sm:$0xf] }
   0xd   :  { %v390_v47 = vor.u32 %v460_v45, %v389_v44  ;;  %v375_v49 = vld [vmem:[%s719_s0 + $0x48] sm:$0xf0]  ;;  %v365_v51 = vld [vmem:[%s719_s0 + $0x30] sm:$0xf]  ;;  %v454_v52 = vld [vmem:[%s719_s0 + $0x34] sm:$0xf0] }
   0xe   :  { %207 = vmatpush.bf16.msra.mxu0 %v467_v10  ;;  %v378_v50 = vor.u32 %v455_v48, %v375_v49  ;;  %v397_v53 = vld [vmem:[%s719_s0 + $0x70] sm:$0xf]  ;;  %v462_v54 = vld [vmem:[%s719_s0 + $0x74] sm:$0xf0]  ;;  %v366_v55 = vor.u32 %v454_v52, %v365_v51  ;;  %v636_v61 = vld [vmem:[%s720_s2] ss:$0 sm:$0xff] }
   0xf   :  { %475 = vmatpush.bf16.msra.mxu2 %v467_v10  ;;  %v398_v56 = vor.u32 %v462_v54, %v397_v53 }
  0x12   :  { %208 = vmatpush.bf16.msra.mxu0 %v466_v11 }
  0x13   :  { %476 = vmatpush.bf16.msra.mxu2 %v466_v11 }
  0x16   :  { %440 = vmatmul.msk.bf16.gmra.mxu1 %vm179_vm0, %v354_v14  ;;  %209 = vmatpush.bf16.msra.mxu0 %v465_v15 }
  0x17   :  { %477 = vmatpush.bf16.msra.mxu2 %v465_v15  ;;  %445 = vmatmul.msk.bf16.gmra.mxu3 %vm179_vm0, %v394_v19 }
  0x1a   :  { %210 = vmatpush.bf16.msra.mxu0 %v464_v16 }
  0x1b   :  { %478 = vmatpush.bf16.msra.mxu2 %v464_v16 }
  0x1e   :  { %211 = vmatpush.bf16.msra.mxu0 %v463_v20 }
  0x1f   :  { %479 = vmatpush.bf16.msra.mxu2 %v463_v20 }
  0x21   :  { %212 = vmatmul.bf16.vlgmr.msra.gmra.mxu0 %v342_v25 }
  0x22   :  { %232 = vmatmul.bf16.vlgmr.msra.gmra.mxu2 %v374_v26 }
  0x26   :  { %441 = vmatmul.msk.bf16.gmra.mxu1 %vm179_vm0, %v362_v29 }
  0x27   :  { %446 = vmatmul.msk.bf16.gmra.mxu3 %vm179_vm0, %v402_v32 }
  0x31   :  { %217 = vmatmul.bf16.gmra.mxu0 %v350_v37 }
  0x32   :  { %237 = vmatmul.bf16.gmra.mxu2 %v382_v38 }
  0x36   :  { %442 = vmatmul.msk.bf16.gmra.mxu1 %vm179_vm0, %v370_v41 }
  0x41   :  { %222 = vmatmul.bf16.gmra.mxu0 %v358_v46 }
  0x42   :  { %242 = vmatmul.bf16.gmra.mxu2 %v390_v47 }
  0x46   :  { %443 = vmatmul.msk.bf16.gmra.mxu1 %vm179_vm0, %v378_v50 }
  0x51   :  { %227 = vmatmul.bf16.gmra.mxu0 %v366_v55 }
  0x52   :  { %247 = vmatmul.bf16.gmra.mxu2 %v398_v56 }
  0x83   :  { %v262_v57 = vpop.f32.mrf.mxu1 }
  0x8a   :  { %v287_v10 = vpop.f32.mrf.mxu3 }
  0x8b   :  { %v264_v58 = vpop.f32.mrf.mxu1 }
  0x92   :  { %v289_v20 = vpop.f32.mrf.mxu3 }
  0x93   :  { %v267_v59 = vpop.f32.mrf.mxu1 }
  0x9a   :  { %v292_v32 = vpop.f32.mrf.mxu3 }
  0x9b   :  { %v269_v60 = vpop.f32.mrf.mxu1 }
  0x9e   :  { %v213_v62 = vpop.f32.mrf.mxu0 }
  0x9f   :  { %v214_v63 = vadd.f32 %v636_v61, %v213_v62 }
  0xa1   :  { %v263_v0 = vadd.f32 %v262_v57, %v214_v63 }
  0xa2   :  { %v294_v48 = vpop.f32.mrf.mxu3 }
  0xa3   :  { %v302_v1 = vmax.f32 %v263_v0, 0.0  ;;  %v272_v2 = vpop.f32.mrf.mxu1 }
  0xa5   :  { %319 = vst.msk [vmem:[%s721_s3] sm:$0xff] %vm318_vm1, %v302_v1  ;;  %v233_v3 = vpop.f32.mrf.mxu2 }
  0xa6   :  { %v215_v4 = vpop.f32.mrf.mxu0  ;;  %v234_v33 = vadd.f32 %v636_v61, %v233_v3 }
  0xa7   :  { %v216_v5 = vadd.f32 %v636_v61, %v215_v4 }
  0xa9   :  { %v265_v6 = vadd.f32 %v264_v58, %v216_v5 }
  0xab   :  { %v303_v7 = vmax.f32 %v265_v6, 0.0  ;;  %v274_v8 = vpop.f32.mrf.mxu1 }
  0xad   :  { %320 = vst.msk [vmem:[%s721_s3 + $0x8] sm:$0xff] %vm318_vm1, %v303_v7  ;;  %v235_v9 = vpop.f32.mrf.mxu2 }
  0xae   :  { %v218_v11 = vpop.f32.mrf.mxu0  ;;  %v236_v45 = vadd.f32 %v636_v61, %v235_v9 }
  0xaf   :  { %v219_v12 = vadd.f32 %v636_v61, %v218_v11 }
  0xb1   :  { %v268_v13 = vadd.f32 %v267_v59, %v219_v12 }
  0xb3   :  { %v304_v14 = vmax.f32 %v268_v13, 0.0  ;;  %v277_v15 = vpop.f32.mrf.mxu1 }
  0xb5   :  { %321 = vst.msk [vmem:[%s721_s3 + $0x10] sm:$0xff] %vm318_vm1, %v304_v14  ;;  %v238_v16 = vpop.f32.mrf.mxu2 }
  0xb6   :  { %v239_v17 = vadd.f32 %v636_v61, %v238_v16  ;;  %v220_v18 = vpop.f32.mrf.mxu0 }
  0xb7   :  { %v221_v19 = vadd.f32 %v636_v61, %v220_v18 }
  0xb8   :  { %v288_v21 = vadd.f32 %v287_v10, %v239_v17 }
  0xb9   :  { %v270_v22 = vadd.f32 %v269_v60, %v221_v19  ;;  %v297_v60 = vpop.f32.mrf.mxu3 }
  0xba   :  { %v312_v23 = vmax.f32 %v288_v21, 0.0 }
  0xbb   :  { %v305_v24 = vmax.f32 %v270_v22, 0.0  ;;  %v279_v25 = vpop.f32.mrf.mxu1 }
  0xbc   :  { %329 = vst.msk [vmem:[%s721_s3 + $0x50] sm:$0xff] %vm318_vm1, %v312_v23 }
  0xbd   :  { %322 = vst.msk [vmem:[%s721_s3 + $0x18] sm:$0xff] %vm318_vm1, %v305_v24  ;;  %v240_v26 = vpop.f32.mrf.mxu2 }
  0xbe   :  { %v241_v27 = vadd.f32 %v636_v61, %v240_v26  ;;  %v223_v28 = vpop.f32.mrf.mxu0 }
  0xbf   :  { %v224_v29 = vadd.f32 %v636_v61, %v223_v28 }
  0xc0   :  { %v290_v30 = vadd.f32 %v289_v20, %v241_v27 }
  0xc1   :  { %v273_v31 = vadd.f32 %v272_v2, %v224_v29 }
  0xc2   :  { %v313_v34 = vmax.f32 %v290_v30, 0.0 }
  0xc3   :  { %v306_v35 = vmax.f32 %v273_v31, 0.0  ;;  %v282_v36 = vpop.f32.mrf.mxu1 }
  0xc4   :  { %330 = vst.msk [vmem:[%s721_s3 + $0x58] sm:$0xff] %vm318_vm1, %v313_v34  ;;  %v283_v37 = vadd.f32 %v282_v36, %v234_v33 }
  0xc5   :  { %323 = vst.msk [vmem:[%s721_s3 + $0x20] sm:$0xff] %vm318_vm1, %v306_v35  ;;  %v243_v38 = vpop.f32.mrf.mxu2 }
  0xc6   :  { %v310_v39 = vmax.f32 %v283_v37, 0.0  ;;  %v244_v40 = vadd.f32 %v636_v61, %v243_v38  ;;  %v225_v41 = vpop.f32.mrf.mxu0 }
  0xc7   :  { %v226_v42 = vadd.f32 %v636_v61, %v225_v41 }
  0xc8   :  { %327 = vst.msk [vmem:[%s721_s3 + $0x40] sm:$0xff] %vm318_vm1, %v310_v39  ;;  %v293_v43 = vadd.f32 %v292_v32, %v244_v40 }
  0xc9   :  { %v275_v44 = vadd.f32 %v274_v8, %v226_v42  ;;  %v299_v8 = vpop.f32.mrf.mxu3 }
  0xca   :  { %v314_v46 = vmax.f32 %v293_v43, 0.0 }
  0xcb   :  { %v307_v47 = vmax.f32 %v275_v44, 0.0  ;;  %v284_v49 = vpop.f32.mrf.mxu1 }
  0xcc   :  { %331 = vst.msk [vmem:[%s721_s3 + $0x60] sm:$0xff] %vm318_vm1, %v314_v46  ;;  %v285_v50 = vadd.f32 %v284_v49, %v236_v45 }
  0xcd   :  { %324 = vst.msk [vmem:[%s721_s3 + $0x28] sm:$0xff] %vm318_vm1, %v307_v47  ;;  %v245_v51 = vpop.f32.mrf.mxu2 }
  0xce   :  { %v311_v52 = vmax.f32 %v285_v50, 0.0  ;;  %v246_v53 = vadd.f32 %v636_v61, %v245_v51  ;;  %v228_v54 = vpop.f32.mrf.mxu0 }
  0xcf   :  { %v229_v55 = vadd.f32 %v636_v61, %v228_v54 }
  0xd0   :  { %328 = vst.msk [vmem:[%s721_s3 + $0x48] sm:$0xff] %vm318_vm1, %v311_v52  ;;  %v295_v56 = vadd.f32 %v294_v48, %v246_v53 }
  0xd1   :  { %v278_v57 = vadd.f32 %v277_v15, %v229_v55 }
  0xd2   :  { %v315_v58 = vmax.f32 %v295_v56, 0.0 }
  0xd3   :  { %v308_v59 = vmax.f32 %v278_v57, 0.0 }
  0xd4   :  { %332 = vst.msk [vmem:[%s721_s3 + $0x68] sm:$0xff] %vm318_vm1, %v315_v58 }
  0xd5   :  { %325 = vst.msk [vmem:[%s721_s3 + $0x30] sm:$0xff] %vm318_vm1, %v308_v59  ;;  %v248_v62 = vpop.f32.mrf.mxu2 }
  0xd6   :  { %v249_v63 = vadd.f32 %v636_v61, %v248_v62  ;;  %v230_v0 = vpop.f32.mrf.mxu0 }
  0xd7   :  { %v231_v1 = vadd.f32 %v636_v61, %v230_v0 }
  0xd8   :  { %v298_v2 = vadd.f32 %v297_v60, %v249_v63 }
  0xd9   :  { %v280_v3 = vadd.f32 %v279_v25, %v231_v1 }
  0xda   :  { %v316_v4 = vmax.f32 %v298_v2, 0.0 }
  0xdb   :  { %v309_v5 = vmax.f32 %v280_v3, 0.0 }
  0xdc   :  { %333 = vst.msk [vmem:[%s721_s3 + $0x70] sm:$0xff] %vm318_vm1, %v316_v4 }
  0xdd   :  { %326 = vst.msk [vmem:[%s721_s3 + $0x38] sm:$0xff] %vm318_vm1, %v309_v5  ;;  %v250_v6 = vpop.f32.mrf.mxu2 }
  0xde   :  { %v251_v7 = vadd.f32 %v636_v61, %v250_v6 }
  0xe0   :  { %v300_v9 = vadd.f32 %v299_v8, %v251_v7 }
  0xe2   :  { %v317_v10 = vmax.f32 %v300_v9, 0.0 }
  0xe4   :  { %334 = vst.msk [vmem:[%s721_s3 + $0x78] sm:$0xff] %vm318_vm1, %v317_v10 }

// kernel: dab_deformable_detr_forward.12
= control target key start
LH: loop header
LB: loop body
LE: loop exit
PB: predicated region body
PF: predicated region fallthrough
CT: control target
= control target key end

     0   :  { %vm156_vm0 = vcmask 1043456   ;;  %vm149_vm1 = vcmask 719872   ;;  %vm202_vm2 = vcmask 261120   ;;  %s418_s1 = inlined_call_operand.vmem [shape: bf16[216,32], index: 1, kind: input, shape index: {}]   ;;  %s419_s2 = inlined_call_operand.vmem [shape: f32[1,32], index: 2, kind: input, shape index: {}]   ;;  %s420_s0 = inlined_call_operand.vmem [shape: bf16[32,216], index: 0, kind: input, shape index: {}]   ;;  %s421_s3 = inlined_call_operand.vmem [shape: f32[32,32], index: 3, kind: output, shape index: {}]  }
   0x1   :  { %v292_v0 = vld [vmem:[%s418_s1 + $0x38] sm:$0xff]  ;;  %v45_v1 = vld [vmem:[%s418_s1 + $0x68] sm:$0xf]  ;;  %v291_v3 = vld [vmem:[%s418_s1 + $0x30] sm:$0xff] }
   0x2   :  { %v121_v2 = vunpack.c.l.b16 %v45_v1  ;;  %160 = vmatpush.bf16.msra.mxu0 %v292_v0  ;;  %298 = vmatpush.bf16.msra.mxu2 %v292_v0  ;;  %v297_v6 = vld [vmem:[%s418_s1 + $0x60] sm:$0xff]  ;;  %v290_v7 = vld [vmem:[%s418_s1 + $0x28] sm:$0xff]  ;;  %v296_v8 = vld [vmem:[%s418_s1 + $0x58] sm:$0xff] }
   0x3   :  { %v289_v9 = vld [vmem:[%s418_s1 + $0x20] sm:$0xff]  ;;  %v295_v10 = vld [vmem:[%s418_s1 + $0x50] sm:$0xff]  ;;  %v288_v11 = vld [vmem:[%s418_s1 + $0x18] sm:$0xff] }
   0x4   :  { %v135_v4 = vpack.c.b16 %v121_v2, %v121_v2  ;;  %v294_v12 = vld [vmem:[%s418_s1 + $0x48] sm:$0xff]  ;;  %v287_v13 = vld [vmem:[%s418_s1 + $0x10] sm:$0xff]  ;;  %v293_v14 = vld [vmem:[%s418_s1 + $0x40] sm:$0xff] }
   0x5   :  { %v286_v15 = vld [vmem:[%s418_s1 + $0x8] sm:$0xff]  ;;  %v283_v16 = vld [vmem:[%s420_s0 + $0x14] sm:$0xf]  ;;  %v223_v17 = vld [vmem:[%s420_s0 + $0x18] sm:$0xf0] }
   0x6   :  { %v158_v5 = vsel %vm156_vm0, %v135_v4, 0  ;;  %161 = vmatpush.bf16.msra.mxu0 %v291_v3  ;;  %299 = vmatpush.bf16.msra.mxu2 %v291_v3  ;;  %v281_v18 = vld [vmem:[%s420_s0 + $0x4] sm:$0xf]  ;;  %v215_v19 = vld [vmem:[%s420_s0 + $0x8] sm:$0xf0]  ;;  %v226_v20 = vor.u32 %v283_v16, %v223_v17 }
   0x7   :  { %306 = vmatpush.bf16.msra.mxu3 %v158_v5  ;;  %181 = vmatpush.bf16.msra.mxu1 %v158_v5  ;;  %v285_v21 = vld [vmem:[%s418_s1] sm:$0xff]  ;;  %v282_v23 = vld [vmem:[%s420_s0 + $0x4] sm:$0xf0]  ;;  %v218_v24 = vor.u32 %v281_v18, %v215_v19  ;;  %v221_v25 = vld [vmem:[%s420_s0 + $0x10] sm:$0xf] }
   0x8   :  { %v213_v22 = vld [vmem:[%s420_s0] sm:$0xf]  ;;  %v284_v26 = vld [vmem:[%s420_s0 + $0x14] sm:$0xf0] }
   0x9   :  { %v214_v27 = vor.u32 %v282_v23, %v213_v22  ;;  %v222_v28 = vor.u32 %v284_v26, %v221_v25  ;;  %v312_v29 = vld [vmem:[%s419_s2] ss:$0 sm:$0xff] }
   0xa   :  { %162 = vmatpush.bf16.msra.mxu0 %v290_v7  ;;  %300 = vmatpush.bf16.msra.mxu2 %v290_v7 }
   0xb   :  { %307 = vmatpush.bf16.msra.mxu3 %v297_v6  ;;  %182 = vmatpush.bf16.msra.mxu1 %v297_v6 }
   0xe   :  { %163 = vmatpush.bf16.msra.mxu0 %v289_v9  ;;  %301 = vmatpush.bf16.msra.mxu2 %v289_v9 }
   0xf   :  { %308 = vmatpush.bf16.msra.mxu3 %v296_v8  ;;  %183 = vmatpush.bf16.msra.mxu1 %v296_v8 }
  0x12   :  { %164 = vmatpush.bf16.msra.mxu0 %v288_v11  ;;  %302 = vmatpush.bf16.msra.mxu2 %v288_v11 }
  0x13   :  { %309 = vmatpush.bf16.msra.mxu3 %v295_v10  ;;  %184 = vmatpush.bf16.msra.mxu1 %v295_v10 }
  0x16   :  { %165 = vmatpush.bf16.msra.mxu0 %v287_v13  ;;  %303 = vmatpush.bf16.msra.mxu2 %v287_v13 }
  0x17   :  { %310 = vmatpush.bf16.msra.mxu3 %v294_v12  ;;  %185 = vmatpush.bf16.msra.mxu1 %v294_v12 }
  0x1a   :  { %166 = vmatpush.bf16.msra.mxu0 %v286_v15  ;;  %304 = vmatpush.bf16.msra.mxu2 %v286_v15 }
  0x1b   :  { %311 = vmatpush.bf16.msra.mxu3 %v293_v14  ;;  %186 = vmatpush.bf16.msra.mxu1 %v293_v14 }
  0x1e   :  { %280 = vmatmul.msk.bf16.vlgmr.msra.gmra.mxu3 %vm149_vm1, %v226_v20  ;;  %167 = vmatpush.bf16.msra.mxu0 %v285_v21 }
  0x1f   :  { %279 = vmatmul.msk.bf16.vlgmr.msra.gmra.mxu1 %vm149_vm1, %v218_v24  ;;  %305 = vmatpush.bf16.msra.mxu2 %v285_v21 }
  0x21   :  { %168 = vmatmul.bf16.vlgmr.msra.gmra.mxu0 %v214_v27 }
  0x22   :  { %173 = vmatmul.bf16.vlgmr.msra.gmra.mxu2 %v222_v28 }
  0x9c   :  { %v188_v31 = vpop.f32.mrf.mxu1 }
  0x9e   :  { %v169_v30 = vpop.f32.mrf.mxu0 }
  0x9f   :  { %v170_v32 = vadd.f32 %v312_v29, %v169_v30 }
  0xa1   :  { %v189_v33 = vadd.f32 %v188_v31, %v170_v32  ;;  %v193_v35 = vpop.f32.mrf.mxu3 }
  0xa3   :  { %v198_v34 = vmax.f32 %v189_v33, 0.0 }
  0xa4   :  { %v190_v41 = vpop.f32.mrf.mxu1 }
  0xa5   :  { %203 = vst.msk [vmem:[%s421_s3] sm:$0xff] %vm202_vm2, %v198_v34  ;;  %v174_v36 = vpop.f32.mrf.mxu2 }
  0xa6   :  { %v175_v37 = vadd.f32 %v312_v29, %v174_v36  ;;  %v171_v38 = vpop.f32.mrf.mxu0 }
  0xa7   :  { %v172_v39 = vadd.f32 %v312_v29, %v171_v38 }
  0xa8   :  { %v194_v40 = vadd.f32 %v193_v35, %v175_v37 }
  0xa9   :  { %v191_v42 = vadd.f32 %v190_v41, %v172_v39  ;;  %v195_v47 = vpop.f32.mrf.mxu3 }
  0xaa   :  { %v200_v43 = vmax.f32 %v194_v40, 0.0 }
  0xab   :  { %v199_v44 = vmax.f32 %v191_v42, 0.0 }
  0xac   :  { %205 = vst.msk [vmem:[%s421_s3 + $0x10] sm:$0xff] %vm202_vm2, %v200_v43 }
  0xad   :  { %204 = vst.msk [vmem:[%s421_s3 + $0x8] sm:$0xff] %vm202_vm2, %v199_v44  ;;  %v176_v45 = vpop.f32.mrf.mxu2 }
  0xae   :  { %v177_v46 = vadd.f32 %v312_v29, %v176_v45 }
  0xb0   :  { %v196_v48 = vadd.f32 %v195_v47, %v177_v46 }
  0xb2   :  { %v201_v49 = vmax.f32 %v196_v48, 0.0 }
  0xb4   :  { %206 = vst.msk [vmem:[%s421_s3 + $0x18] sm:$0xff] %vm202_vm2, %v201_v49 }

// kernel: dab_deformable_detr_forward.13
= control target key start
LH: loop header
LB: loop body
LE: loop exit
PB: predicated region body
PF: predicated region fallthrough
CT: control target
= control target key end

     0   :  { %vm175_vm0 = vcmask 261120   ;;  %vm219_vm1 = vcmask 392192   ;;  %s403_s1 = inlined_call_operand.vmem [shape: bf16[288,48], index: 1, kind: input, shape index: {}]   ;;  %s404_s0 = inlined_call_operand.vmem [shape: bf16[8,288], index: 0, kind: input, shape index: {}]   ;;  %s405_s2 = inlined_call_operand.vmem [shape: f32[1,48], index: 2, kind: input, shape index: {}]   ;;  %s406_s3 = inlined_call_operand.vmem [shape: f32[8,48], index: 3, kind: output, shape index: {}]  }
   0x1   :  { %v305_v0 = vld [vmem:[%s403_s1 + $0x38] sm:$0xff]  ;;  %v304_v2 = vld [vmem:[%s403_s1 + $0x30] sm:$0xff]  ;;  %v315_v4 = vld [vmem:[%s403_s1 + $0x88] sm:$0xff] }
   0x2   :  { %v313_v1 = vld [vmem:[%s403_s1 + $0x78] sm:$0xff]  ;;  %179 = vmatpush.bf16.msra.mxu0 %v305_v0  ;;  %v312_v3 = vld [vmem:[%s403_s1 + $0x70] sm:$0xff]  ;;  %211 = vmatpush.bf16.msra.mxu2 %v315_v4  ;;  %v314_v5 = vld [vmem:[%s403_s1 + $0x80] sm:$0xff] }
   0x3   :  { %192 = vmatpush.bf16.msra.mxu1 %v313_v1  ;;  %v16_v6 = vld [vmem:[%s404_s0 + $0x8] sm:$0xf]  ;;  %v302_v11 = vld [vmem:[%s403_s1 + $0x20] sm:$0xff]  ;;  %v301_v13 = vld [vmem:[%s403_s1 + $0x18] sm:$0xff] }
   0x4   :  { %v61_v7 = vunpack.c.l.b16 %v16_v6  ;;  %v303_v8 = vld [vmem:[%s403_s1 + $0x28] sm:$0xff]  ;;  %v310_v12 = vld [vmem:[%s403_s1 + $0x60] sm:$0xff]  ;;  %v309_v14 = vld [vmem:[%s403_s1 + $0x58] sm:$0xff] }
   0x5   :  { %v311_v9 = vld [vmem:[%s403_s1 + $0x68] sm:$0xff]  ;;  %v300_v15 = vld [vmem:[%s403_s1 + $0x10] sm:$0xff]  ;;  %v15_v19 = vld [vmem:[%s404_s0] sm:$0xff] }
   0x6   :  { %180 = vmatpush.bf16.msra.mxu0 %v304_v2  ;;  %v64_v10 = vpack.c.b16 %v61_v7, %v61_v7  ;;  %212 = vmatpush.bf16.msra.mxu2 %v314_v5  ;;  %v308_v16 = vld [vmem:[%s403_s1 + $0x50] sm:$0xff]  ;;  %v299_v17 = vld [vmem:[%s403_s1 + $0x8] sm:$0xff]  ;;  %v59_v20 = vunpack.c.l.b16 %v15_v19  ;;  %v60_v21 = vunpack.c.h.b16 %v15_v19  ;;  %v298_v22 = vld [vmem:[%s403_s1] sm:$0xff] }
   0x7   :  { %193 = vmatpush.bf16.msra.mxu1 %v312_v3  ;;  %v307_v18 = vld [vmem:[%s403_s1 + $0x48] sm:$0xff]  ;;  %v306_v23 = vld [vmem:[%s403_s1 + $0x40] sm:$0xff] }
   0x8   :  { %v62_v24 = vpack.c.b16 %v59_v20, %v59_v20  ;;  %v63_v25 = vpack.c.b16 %v60_v21, %v60_v21  ;;  %v316_v28 = vld [vmem:[%s405_s2] ss:$0 sm:$0xff] }
   0x9   :  { %297 = vmatmul.msk.bf16.vlgmr.msra.gmra.mxu2 %vm175_vm0, %v64_v10 }
   0xa   :  { %181 = vmatpush.bf16.msra.mxu0 %v303_v8 }
   0xb   :  { %194 = vmatpush.bf16.msra.mxu1 %v311_v9 }
   0xe   :  { %182 = vmatpush.bf16.msra.mxu0 %v302_v11 }
   0xf   :  { %195 = vmatpush.bf16.msra.mxu1 %v310_v12 }
  0x12   :  { %183 = vmatpush.bf16.msra.mxu0 %v301_v13 }
  0x13   :  { %196 = vmatpush.bf16.msra.mxu1 %v309_v14 }
  0x16   :  { %184 = vmatpush.bf16.msra.mxu0 %v300_v15 }
  0x17   :  { %197 = vmatpush.bf16.msra.mxu1 %v308_v16 }
  0x1a   :  { %185 = vmatpush.bf16.msra.mxu0 %v299_v17 }
  0x1b   :  { %198 = vmatpush.bf16.msra.mxu1 %v307_v18 }
  0x1e   :  { %186 = vmatpush.bf16.msra.mxu0 %v298_v22 }
  0x1f   :  { %199 = vmatpush.bf16.msra.mxu1 %v306_v23 }
  0x21   :  { %187 = vmatmul.bf16.vlgmr.msra.gmra.mxu0 %v62_v24 }
  0x22   :  { %200 = vmatmul.bf16.vlgmr.msra.gmra.mxu1 %v63_v25 }
  0x8c   :  { %v214_v26 = vpop.f32.mrf.mxu2 }
  0x94   :  { %v216_v27 = vpop.f32.mrf.mxu2 }
  0x9e   :  { %v188_v29 = vpop.f32.mrf.mxu0 }
  0x9f   :  { %v201_v30 = vpop.f32.mrf.mxu1  ;;  %v189_v31 = vadd.f32 %v316_v28, %v188_v29 }
  0xa1   :  { %v202_v32 = vadd.f32 %v201_v30, %v189_v31 }
  0xa3   :  { %v215_v33 = vadd.f32 %v214_v26, %v202_v32 }
  0xa5   :  { %v218_v34 = vmax.f32 %v215_v33, 0.0 }
  0xa6   :  { %v190_v35 = vpop.f32.mrf.mxu0 }
  0xa7   :  { %v203_v36 = vpop.f32.mrf.mxu1  ;;  %220 = vst.msk [vmem:[%s406_s3] sm:$0xff] %vm219_vm1, %v218_v34 }

// kernel: dab_deformable_detr_forward.17
= control target key start
LH: loop header
LB: loop body
LE: loop exit
PB: predicated region body
PF: predicated region fallthrough
CT: control target
= control target key end

     0   :  { %vm52_vm0 = vcmask 523264   ;;  %vm69_vm1 = vcmask 261120   ;;  %s138_s1 = inlined_call_operand.vmem [shape: bf16[64,32], index: 1, kind: input, shape index: {}]   ;;  %s139_s2 = inlined_call_operand.vmem [shape: f32[1,32], index: 2, kind: input, shape index: {}]   ;;  %s140_s0 = inlined_call_operand.vmem [shape: bf16[8,64], index: 0, kind: input, shape index: {}]   ;;  %s141_s3 = inlined_call_operand.vmem [shape: f32[8,32], index: 3, kind: output, shape index: {}]  }
   0x1   :  { %v95_v0 = vld [vmem:[%s138_s1 + $0x18] sm:$0xff]  ;;  %v94_v1 = vld [vmem:[%s138_s1 + $0x10] sm:$0xff]  ;;  %v93_v2 = vld [vmem:[%s138_s1 + $0x8] sm:$0xff] }
   0x2   :  { %60 = vmatpush.bf16.msra.mxu0 %v95_v0  ;;  %v92_v3 = vld [vmem:[%s138_s1] sm:$0xff] }
   0x3   :  { %v15_v4 = vld [vmem:[%s140_s0] sm:$0xf] }
   0x4   :  { %v96_v5 = vld [vmem:[%s139_s2] ss:$0 sm:$0xff] }
   0x6   :  { %61 = vmatpush.bf16.msra.mxu0 %v94_v1 }
   0xa   :  { %62 = vmatpush.bf16.msra.mxu0 %v93_v2 }
   0xe   :  { %63 = vmatpush.bf16.msra.mxu0 %v92_v3 }
  0x11   :  { %91 = vmatmul.msk.bf16.vlgmr.msra.gmra.mxu0 %vm52_vm0, %v15_v4 }
  0x8e   :  { %v65_v6 = vpop.f32.mrf.mxu0 }
  0x8f   :  { %v66_v7 = vadd.f32 %v96_v5, %v65_v6 }
  0x91   :  { %70 = vst.msk [vmem:[%s141_s3] sm:$0xff] %vm69_vm1, %v66_v7 }
  0x96   :  { %v67_v8 = vpop.f32.mrf.mxu0 }

// kernel: dab_deformable_detr_forward.14
= control target key start
LH: loop header
LB: loop body
LE: loop exit
PB: predicated region body
PF: predicated region fallthrough
CT: control target
= control target key end

     0   :  { %vm250_vm0 = vcmask 392192   ;;  %vm307_vm1 = vcmask 523264   ;;  %s563_s1 = inlined_call_operand.vmem [shape: bf16[432,64], index: 1, kind: input, shape index: {}]   ;;  %s564_s0 = inlined_call_operand.vmem [shape: bf16[8,432], index: 0, kind: input, shape index: {}]   ;;  %s565_s2 = inlined_call_operand.vmem [shape: f32[1,64], index: 2, kind: input, shape index: {}]   ;;  %s566_s3 = inlined_call_operand.vmem [shape: f32[8,64], index: 3, kind: output, shape index: {}]  }
   0x1   :  { %v429_v0 = vld [vmem:[%s563_s1 + $0x38] sm:$0xff]  ;;  %v428_v3 = vld [vmem:[%s563_s1 + $0x30] sm:$0xff]  ;;  %v427_v7 = vld [vmem:[%s563_s1 + $0x28] sm:$0xff] }
   0x2   :  { %v437_v1 = vld [vmem:[%s563_s1 + $0x78] sm:$0xff]  ;;  %254 = vmatpush.bf16.msra.mxu0 %v429_v0  ;;  %v436_v4 = vld [vmem:[%s563_s1 + $0x70] sm:$0xff]  ;;  %v435_v8 = vld [vmem:[%s563_s1 + $0x68] sm:$0xff] }
   0x3   :  { %v445_v2 = vld [vmem:[%s563_s1 + $0xb8] sm:$0xff]  ;;  %267 = vmatpush.bf16.msra.mxu1 %v437_v1  ;;  %v444_v5 = vld [vmem:[%s563_s1 + $0xb0] sm:$0xff]  ;;  %v443_v9 = vld [vmem:[%s563_s1 + $0xa8] sm:$0xff] }
   0x4   :  { %280 = vmatpush.bf16.msra.mxu2 %v445_v2  ;;  %v448_v6 = vld [vmem:[%s563_s1 + $0xd0] sm:$0xff]  ;;  %v447_v10 = vld [vmem:[%s563_s1 + $0xc8] sm:$0xff]  ;;  %v426_v12 = vld [vmem:[%s563_s1 + $0x20] sm:$0xff] }
   0x5   :  { %298 = vmatpush.bf16.msra.mxu3 %v448_v6  ;;  %v16_v11 = vld [vmem:[%s564_s0 + $0x8] sm:$0xff]  ;;  %v434_v13 = vld [vmem:[%s563_s1 + $0x60] sm:$0xff]  ;;  %v425_v17 = vld [vmem:[%s563_s1 + $0x18] sm:$0xff] }
   0x6   :  { %255 = vmatpush.bf16.msra.mxu0 %v428_v3  ;;  %v442_v14 = vld [vmem:[%s563_s1 + $0xa0] sm:$0xff]  ;;  %v80_v16 = vunpack.c.h.b16 %v16_v11  ;;  %v433_v18 = vld [vmem:[%s563_s1 + $0x58] sm:$0xff]  ;;  %v424_v21 = vld [vmem:[%s563_s1 + $0x10] sm:$0xff]  ;;  %v79_v32 = vunpack.c.l.b16 %v16_v11 }
   0x7   :  { %268 = vmatpush.bf16.msra.mxu1 %v436_v4  ;;  %v446_v15 = vld [vmem:[%s563_s1 + $0xc0] sm:$0xff]  ;;  %v441_v19 = vld [vmem:[%s563_s1 + $0x98] sm:$0xff]  ;;  %v432_v22 = vld [vmem:[%s563_s1 + $0x50] sm:$0xff] }
   0x8   :  { %281 = vmatpush.bf16.msra.mxu2 %v444_v5  ;;  %v84_v20 = vpack.c.b16 %v80_v16, %v80_v16  ;;  %v440_v23 = vld [vmem:[%s563_s1 + $0x90] sm:$0xff]  ;;  %v423_v24 = vld [vmem:[%s563_s1 + $0x8] sm:$0xff]  ;;  %v15_v26 = vld [vmem:[%s564_s0] sm:$0xff]  ;;  %v83_v36 = vpack.c.b16 %v79_v32, %v79_v32 }
   0x9   :  { %299 = vmatpush.bf16.msra.mxu3 %v447_v10  ;;  %v431_v25 = vld [vmem:[%s563_s1 + $0x48] sm:$0xff]  ;;  %v77_v28 = vunpack.c.l.b16 %v15_v26  ;;  %v78_v29 = vunpack.c.h.b16 %v15_v26  ;;  %v422_v30 = vld [vmem:[%s563_s1] sm:$0xff] }
   0xa   :  { %256 = vmatpush.bf16.msra.mxu0 %v427_v7  ;;  %v439_v27 = vld [vmem:[%s563_s1 + $0x88] sm:$0xff]  ;;  %v430_v31 = vld [vmem:[%s563_s1 + $0x40] sm:$0xff] }
   0xb   :  { %269 = vmatpush.bf16.msra.mxu1 %v435_v8  ;;  %v438_v33 = vld [vmem:[%s563_s1 + $0x80] sm:$0xff]  ;;  %v81_v34 = vpack.c.b16 %v77_v28, %v77_v28  ;;  %v82_v35 = vpack.c.b16 %v78_v29, %v78_v29 }
   0xc   :  { %282 = vmatpush.bf16.msra.mxu2 %v443_v9  ;;  %v449_v38 = vld [vmem:[%s565_s2] ss:$0 sm:$0xff] }
   0xd   :  { %300 = vmatpush.bf16.msra.mxu3 %v446_v15 }
   0xe   :  { %257 = vmatpush.bf16.msra.mxu0 %v426_v12 }
   0xf   :  { %270 = vmatpush.bf16.msra.mxu1 %v434_v13 }
  0x10   :  { %283 = vmatpush.bf16.msra.mxu2 %v442_v14  ;;  %421 = vmatmul.msk.bf16.vlgmr.msra.gmra.mxu3 %vm250_vm0, %v84_v20 }
  0x12   :  { %258 = vmatpush.bf16.msra.mxu0 %v425_v17 }
  0x13   :  { %271 = vmatpush.bf16.msra.mxu1 %v433_v18 }
  0x14   :  { %284 = vmatpush.bf16.msra.mxu2 %v441_v19 }
  0x16   :  { %259 = vmatpush.bf16.msra.mxu0 %v424_v21 }
  0x17   :  { %272 = vmatpush.bf16.msra.mxu1 %v432_v22 }
  0x18   :  { %285 = vmatpush.bf16.msra.mxu2 %v440_v23 }
  0x1a   :  { %260 = vmatpush.bf16.msra.mxu0 %v423_v24 }
  0x1b   :  { %273 = vmatpush.bf16.msra.mxu1 %v431_v25 }
  0x1c   :  { %286 = vmatpush.bf16.msra.mxu2 %v439_v27 }
  0x1e   :  { %261 = vmatpush.bf16.msra.mxu0 %v422_v30 }
  0x1f   :  { %274 = vmatpush.bf16.msra.mxu1 %v430_v31 }
  0x20   :  { %287 = vmatpush.bf16.msra.mxu2 %v438_v33 }
  0x21   :  { %262 = vmatmul.bf16.vlgmr.msra.gmra.mxu0 %v81_v34 }
  0x22   :  { %275 = vmatmul.bf16.vlgmr.msra.gmra.mxu1 %v82_v35 }
  0x23   :  { %288 = vmatmul.bf16.vlgmr.msra.gmra.mxu2 %v83_v36 }
  0x93   :  { %v302_v37 = vpop.f32.mrf.mxu3 }
  0x9b   :  { %v304_v42 = vpop.f32.mrf.mxu3 }
  0x9e   :  { %v263_v39 = vpop.f32.mrf.mxu0 }
  0x9f   :  { %v276_v40 = vpop.f32.mrf.mxu1  ;;  %v264_v41 = vadd.f32 %v449_v38, %v263_v39 }
  0xa1   :  { %v277_v43 = vadd.f32 %v276_v40, %v264_v41 }
  0xa6   :  { %v289_v44 = vpop.f32.mrf.mxu2  ;;  %v265_v46 = vpop.f32.mrf.mxu0 }
  0xa7   :  { %v290_v45 = vadd.f32 %v289_v44, %v277_v43  ;;  %v278_v47 = vpop.f32.mrf.mxu1 }
  0xa9   :  { %v303_v48 = vadd.f32 %v302_v37, %v290_v45 }
  0xab   :  { %v306_v49 = vmax.f32 %v303_v48, 0.0 }
  0xad   :  { %308 = vst.msk [vmem:[%s566_s3] sm:$0xff] %vm307_vm1, %v306_v49 }
  0xae   :  { %v291_v50 = vpop.f32.mrf.mxu2 }

// kernel: dab_deformable_detr_forward.16
= control target key start
LH: loop header
LB: loop body
LE: loop exit
PB: predicated region body
PF: predicated region fallthrough
CT: control target
= control target key end

     0   :  { %vm44_vm0 = vcmask 392192   ;;  %vm61_vm1 = vcmask 261120   ;;  %s122_s1 = inlined_call_operand.vmem [shape: bf16[48,32], index: 1, kind: input, shape index: {}]   ;;  %s123_s2 = inlined_call_operand.vmem [shape: f32[1,32], index: 2, kind: input, shape index: {}]   ;;  %s124_s0 = inlined_call_operand.vmem [shape: bf16[8,48], index: 0, kind: input, shape index: {}]   ;;  %s125_s3 = inlined_call_operand.vmem [shape: f32[8,32], index: 3, kind: output, shape index: {}]  }
   0x1   :  { %v82_v0 = vld [vmem:[%s122_s1 + $0x10] sm:$0xff]  ;;  %v81_v1 = vld [vmem:[%s122_s1 + $0x8] sm:$0xff]  ;;  %v80_v2 = vld [vmem:[%s122_s1] sm:$0xff] }
   0x2   :  { %53 = vmatpush.bf16.msra.mxu0 %v82_v0  ;;  %v15_v3 = vld [vmem:[%s124_s0] sm:$0xf] }
   0x3   :  { %v83_v4 = vld [vmem:[%s123_s2] ss:$0 sm:$0xff] }
   0x6   :  { %54 = vmatpush.bf16.msra.mxu0 %v81_v1 }
   0xa   :  { %55 = vmatpush.bf16.msra.mxu0 %v80_v2 }
   0xd   :  { %79 = vmatmul.msk.bf16.vlgmr.msra.gmra.mxu0 %vm44_vm0, %v15_v3 }
  0x8a   :  { %v57_v5 = vpop.f32.mrf.mxu0 }
  0x8b   :  { %v58_v6 = vadd.f32 %v83_v4, %v57_v5 }
  0x8d   :  { %62 = vst.msk [vmem:[%s125_s3] sm:$0xff] %vm61_vm1, %v58_v6 }
  0x92   :  { %v59_v7 = vpop.f32.mrf.mxu0 }

// kernel: dab_deformable_detr_forward.15
= control target key start
LH: loop header
LB: loop body
LE: loop exit
PB: predicated region body
PF: predicated region fallthrough
CT: control target
= control target key end

     0   :  { %vm49_vm0 = vcmask 261120   ;;  %s161_s1 = inlined_call_operand.vmem [shape: bf16[32,32], index: 1, kind: input, shape index: {}]   ;;  %s162_s2 = inlined_call_operand.vmem [shape: f32[1,32], index: 2, kind: input, shape index: {}]   ;;  %s163_s0 = inlined_call_operand.vmem [shape: bf16[32,32], index: 0, kind: input, shape index: {}]   ;;  %s164_s3 = inlined_call_operand.vmem [shape: f32[32,32], index: 3, kind: output, shape index: {}]  }
   0x1   :  { %v104_v0 = vld [vmem:[%s161_s1 + $0x8] sm:$0xff]  ;;  %v103_v1 = vld [vmem:[%s161_s1] sm:$0xff] }
   0x2   :  { %62 = vmatpush.bf16.msra.mxu0 %v104_v0  ;;  %105 = vmatpush.bf16.msra.mxu1 %v104_v0  ;;  %v101_v2 = vld [vmem:[%s163_s0] sm:$0xff]  ;;  %v102_v3 = vld [vmem:[%s163_s0 + $0x8] sm:$0xff] }
   0x3   :  { %v107_v4 = vld [vmem:[%s162_s2] ss:$0 sm:$0xff] }
   0x6   :  { %63 = vmatpush.bf16.msra.mxu0 %v103_v1  ;;  %106 = vmatpush.bf16.msra.mxu1 %v103_v1 }
   0x9   :  { %99 = vmatmul.msk.bf16.vlgmr.msra.gmra.mxu0 %vm49_vm0, %v101_v2  ;;  %100 = vmatmul.msk.bf16.vlgmr.msra.gmra.mxu1 %vm49_vm0, %v102_v3 }
  0x86   :  { %v65_v5 = vpop.f32.mrf.mxu0  ;;  %v70_v6 = vpop.f32.mrf.mxu1 }
  0x87   :  { %v66_v7 = vadd.f32 %v107_v4, %v65_v5  ;;  %v71_v8 = vadd.f32 %v107_v4, %v70_v6 }
  0x89   :  { %75 = vst.msk [vmem:[%s164_s3] sm:$0xff] %vm49_vm0, %v66_v7 }
  0x8a   :  { %77 = vst.msk [vmem:[%s164_s3 + $0x10] sm:$0xff] %vm49_vm0, %v71_v8 }
  0x8e   :  { %v67_v9 = vpop.f32.mrf.mxu0  ;;  %v72_v10 = vpop.f32.mrf.mxu1 }
  0x8f   :  { %v68_v11 = vadd.f32 %v107_v4, %v67_v9  ;;  %v73_v12 = vadd.f32 %v107_v4, %v72_v10 }
  0x91   :  { %76 = vst.msk [vmem:[%s164_s3 + $0x8] sm:$0xff] %vm49_vm0, %v68_v11 }
  0x92   :  { %78 = vst.msk [vmem:[%s164_s3 + $0x18] sm:$0xff] %vm49_vm0, %v73_v12 }

// kernel: sin.0
= control target key start
LH: loop header
LB: loop body
LE: loop exit
PB: predicated region body
PF: predicated region fallthrough
CT: control target
= control target key end

     0   :  { %v169_v12 = vmov 683565275   ;;  %v170_v14 = vmov 2475754826   ;;  %v171_v16 = vmov 2131351028   ;;  %s238_s0 = inlined_call_operand.vmem [shape: f32[8], index: 0, kind: input, shape index: {}]   ;;  %s239_s1 = inlined_call_operand.vmem [shape: f32[8], index: 1, kind: output, shape index: {}]  }
   0x1   :  { %v189_v0 = vld [vmem:[%s238_s0] sm:$0x1]  ;;  %v172_v18 = vmov 2102212464   ;;  %v173_v20 = vmov 920167782  }
   0x2   :  { %v6_v1 = vand.u32 2139095040, %v189_v0  ;;  %v3_v3 = vand.u32 2147483647, %v189_v0  ;;  %v174_v26 = vmov 1326507024   ;;  %vm5_vm12 = vcmp.lt.s32.totalorder %v189_v0, 0 }
   0x4   :  { %v7_v2 = vshrl.u32 %v6_v1, 23  ;;  %v10_v6 = vand.u32 8388607, %v3_v3  ;;  %v175_v1 = vmov 0   ;;  %vm4_vm13 = vcmp.le.f32.partialorder %v3_v3, 0.7853982 }
   0x6   :  { %v159_v4 = vadd.s32 4294967169, %v7_v2  ;;  %v11_v9 = vor.u32 8388608, %v10_v6 }
   0x8   :  { %v13_v5 = vadd.s32 1, %v159_v4  ;;  %v198_v28 = vshll.u32 %v11_v9, 8 }
   0xa   :  { %vm14_vm0 = vcmp.gt.s32.totalorder %v13_v5, 0  ;;  %v52_v40 = vand.u32 65535, %v198_v28  ;;  %v53_v41 = vshrl.u32 %v198_v28, 16 }
   0xb   :  { %v15_v7 = vsel %vm14_vm0, %v13_v5, 0 }
   0xc   :  { %v17_v8 = vand.u32 31, %v15_v7  ;;  %v195_v10 = vshrl.u32 %v15_v7, 5 }
   0xe   :  { %v18_v11 = vsub.s32 32, %v17_v8  ;;  %v20_v13 = vshll.u32 %v169_v12, %v17_v8  ;;  %v23_v15 = vshll.u32 %v170_v14, %v17_v8  ;;  %v26_v17 = vshll.u32 %v171_v16, %v17_v8 }
   0xf   :  { %v29_v19 = vshll.u32 %v172_v18, %v17_v8  ;;  %v32_v21 = vshll.u32 %v173_v20, %v17_v8  ;;  %vm35_vm1 = vcmp.lt.s32.totalorder %v195_v10, 1  ;;  %vm38_vm2 = vcmp.lt.s32.totalorder %v195_v10, 4 }
  0x10   :  { %v21_v22 = vshrl.u32 %v170_v14, %v18_v11  ;;  %v24_v23 = vshrl.u32 %v171_v16, %v18_v11  ;;  %v27_v24 = vshrl.u32 %v172_v18, %v18_v11  ;;  %v30_v25 = vshrl.u32 %v173_v20, %v18_v11 }
  0x11   :  { %v33_v27 = vshrl.u32 %v174_v26, %v18_v11  ;;  %vm37_vm3 = vcmp.lt.s32.totalorder %v195_v10, 3  ;;  %vm36_vm4 = vcmp.lt.s32.totalorder %v195_v10, 2  ;;  %v19_v48 = vshrl.u32 %v169_v12, %v18_v11 }
  0x12   :  { %v22_v29 = vor.u32 %v21_v22, %v20_v13  ;;  %v25_v30 = vor.u32 %v24_v23, %v23_v15  ;;  %v28_v31 = vor.u32 %v27_v24, %v26_v17  ;;  %v31_v32 = vor.u32 %v30_v25, %v29_v19 }
  0x13   :  { %v34_v33 = vor.u32 %v33_v27, %v32_v21 }
  0x14   :  { %v43_v34 = vsel %vm35_vm1, %v22_v29, %v25_v30  ;;  %v47_v35 = vsel %vm35_vm1, %v25_v30, %v28_v31  ;;  %v44_v36 = vsel %vm38_vm2, %v31_v32, 920167782  ;;  %v39_v61 = vsel %vm35_vm1, %v19_v48, %v22_v29 }
  0x15   :  { %v48_v37 = vsel %vm38_vm2, %v34_v33, 1326507024  ;;  %v45_v38 = vsel %vm37_vm3, %v28_v31, %v44_v36  ;;  %v40_v63 = vsel %vm38_vm2, %v28_v31, 2102212464  ;;  %vm146_vm1 = vweird.f32 %v189_v0 }
  0x16   :  { %v49_v39 = vsel %vm37_vm3, %v31_v32, %v48_v37  ;;  %v46_v42 = vsel %vm36_vm4, %v43_v34, %v45_v38  ;;  %v41_v12 = vsel %vm37_vm3, %v25_v30, %v40_v63 }
  0x17   :  { %v50_v43 = vsel %vm36_vm4, %v47_v35, %v49_v39  ;;  %v76_v46 = vand.u32 65535, %v46_v42  ;;  %v77_v47 = vshrl.u32 %v46_v42, 16  ;;  %v42_v10 = vsel %vm36_vm4, %v39_v61, %v41_v12 }
  0x18   :  { %v54_v44 = vand.u32 65535, %v50_v43  ;;  %v55_v45 = vshrl.u32 %v50_v43, 16  ;;  %v96_v23 = vmul.u32 %v198_v28, %v42_v10 }
  0x19   :  { %v78_v52 = vmul.u32 %v76_v46, %v52_v40  ;;  %v79_v53 = vmul.u32 %v77_v47, %v52_v40  ;;  %v80_v54 = vmul.u32 %v76_v46, %v53_v41  ;;  %v81_v58 = vmul.u32 %v77_v47, %v53_v41 }
  0x1a   :  { %v56_v49 = vmul.u32 %v54_v44, %v52_v40  ;;  %v57_v50 = vmul.u32 %v55_v45, %v52_v40  ;;  %v58_v51 = vmul.u32 %v54_v44, %v53_v41  ;;  %v59_v55 = vmul.u32 %v55_v45, %v53_v41 }
  0x1b   :  { %v82_v59 = vshll.u32 %v79_v53, 16  ;;  %v84_v60 = vshll.u32 %v80_v54, 16  ;;  %v83_v9 = vshrl.u32 %v79_v53, 16  ;;  %v85_v16 = vshrl.u32 %v80_v54, 16 }
  0x1c   :  { %v60_v56 = vshll.u32 %v57_v50, 16  ;;  %v62_v57 = vshll.u32 %v58_v51, 16  ;;  %v61_v5 = vshrl.u32 %v57_v50, 16  ;;  %v63_v13 = vshrl.u32 %v58_v51, 16 }
  0x1d   :  { %vm86_vm6 = vc.u32 %v78_v52, %v82_v59  ;;  %v88_v4 = vadd.s32 %v82_v59, %v78_v52 }
  0x1e   :  { %vm64_vm5 = vc.u32 %v56_v49, %v60_v56  ;;  %v66_v62 = vadd.s32 %v60_v56, %v56_v49  ;;  %v87_v7 = vsel %vm86_vm6, 1, %v175_v1 }
  0x1f   :  { %v65_v2 = vsel %vm64_vm5, 1, %v175_v1  ;;  %v89_v11 = vadd.s32 %v87_v7, %v81_v58  ;;  %vm90_vm8 = vc.u32 %v88_v4, %v84_v60  ;;  %v92_v19 = vadd.s32 %v88_v4, %v84_v60 }
  0x20   :  { %v67_v6 = vadd.s32 %v65_v2, %v59_v55  ;;  %vm68_vm7 = vc.u32 %v66_v62, %v62_v57  ;;  %v91_v15 = vsel %vm90_vm8, 1, %v175_v1 }
  0x21   :  { %v69_v8 = vsel %vm68_vm7, 1, %v175_v1  ;;  %v93_v17 = vadd.s32 %v91_v15, %v89_v11 }
  0x22   :  { %v71_v14 = vadd.s32 %v69_v8, %v67_v6 }
  0x23   :  { %v94_v20 = vadd.s32 %v93_v17, %v83_v9 }
  0x24   :  { %v72_v18 = vadd.s32 %v71_v14, %v61_v5 }
  0x25   :  { %v95_v22 = vadd.s32 %v94_v20, %v85_v16 }
  0x26   :  { %v73_v21 = vadd.s32 %v72_v18, %v63_v13 }
  0x27   :  { %v99_v24 = vadd.s32 1, %v95_v22 }
  0x28   :  { %vm98_vm9 = vc.u32 %v73_v21, %v92_v19  ;;  %v97_v35 = vadd.s32 %v92_v19, %v73_v21 }
  0x29   :  { %v100_v25 = vsel %vm98_vm9, %v99_v24, %v95_v22 }
  0x2a   :  { %v101_v26 = vadd.s32 %v100_v25, %v96_v23 }
  0x2c   :  { %v102_v27 = vadd.s32 536870912, %v101_v26 }
  0x2e   :  { %v103_v28 = vshrl.u32 %v102_v27, 30 }
  0x30   :  { %v104_v29 = vshll.u32 %v103_v28, 30  ;;  %v127_v48 = vsub.s32 4, %v103_v28 }
  0x32   :  { %v105_v30 = vsub.s32 %v101_v26, %v104_v29  ;;  %v128_v50 = vsel %vm5_vm12, %v127_v48, %v103_v28 }
  0x33   :  { %v130_v53 = vsel %vm4_vm13, 0, %v128_v50 }
  0x34   :  { %vm106_vm10 = vcmp.lt.s32.totalorder %v105_v30, 0  ;;  %v107_v31 = vsub.s32 0, %v105_v30  ;;  %v147_v58 = vadd.s32 3, %v130_v53 }
  0x36   :  { %v108_v32 = vsel %vm106_vm10, %v107_v31, %v105_v30  ;;  %v148_v63 = vand.u32 3, %v147_v58 }
  0x37   :  { %v109_v33 = vclz %v108_v32 }
  0x38   :  { %vm153_vm14 = vcmp.eq.s32.totalorder %v148_v63, 2  ;;  %vm150_vm15 = vcmp.eq.s32.totalorder %v148_v63, 0  ;;  %vm149_vm0 = vcmp.lt.s32.totalorder %v148_v63, 2 }
  0x39   :  { %v160_v34 = vadd.s32 4294967294, %v109_v33 }
  0x3b   :  { %vm161_vm11 = vcmp.lt.s32.totalorder %v160_v34, 0 }
  0x3c   :  { %v112_v36 = vsel %vm161_vm11, 0, %v160_v34 }
  0x3d   :  { %v113_v37 = vsub.s32 32, %v112_v36  ;;  %v114_v38 = vshll.u32 %v105_v30, %v112_v36  ;;  %v117_v39 = vsub.s32 4294967266, %v112_v36 }
  0x3f   :  { %v115_v40 = vshrl.u32 %v97_v35, %v113_v37  ;;  %v118_v41 = vadd.s32 127, %v117_v39 }
  0x41   :  { %v116_v42 = vor.u32 %v115_v40, %v114_v38  ;;  %v119_v43 = vshll.u32 %v118_v41, 23 }
  0x43   :  { %v120_v44 = vor.u32 4788187, %v119_v43  ;;  %v123_v45 = vcvt.s32.f32 %v116_v42 }
  0x45   :  { %v121_v46 = vand.u32 2147483647, %v120_v44 }
  0x47   :  { %v124_v47 = vmul.f32 %v123_v45, %v121_v46 }
  0x49   :  { %v125_v3 = vxor.u32 2147483648, %v124_v47 }
  0x4b   :  { %v126_v49 = vsel %vm5_vm12, %v125_v3, %v124_v47 }
  0x4c   :  { %v129_v51 = vsel %vm4_vm13, %v189_v0, %v126_v49 }
  0x4d   :  { %v131_v52 = vmul.f32 %v129_v51, %v129_v51 }
  0x4f   :  { %v132_v54 = vmul.f32 -0.001358992, %v131_v52  ;;  %v139_v55 = vmul.f32 -0.00019511016, %v131_v52 }
  0x51   :  { %v133_v56 = vadd.f32 0.041655596, %v132_v54  ;;  %v140_v57 = vadd.f32 0.008332121, %v139_v55 }
  0x53   :  { %v134_v59 = vmul.f32 %v133_v56, %v131_v52  ;;  %v141_v60 = vmul.f32 %v140_v57, %v131_v52 }
  0x55   :  { %v135_v61 = vadd.f32 -0.4999988, %v134_v59  ;;  %v142_v62 = vadd.f32 -0.16666654, %v141_v60 }
  0x57   :  { %v136_v1 = vmul.f32 %v135_v61, %v131_v52  ;;  %v143_v2 = vmul.f32 %v142_v62, %v131_v52 }
  0x59   :  { %v137_v4 = vadd.f32 1.0, %v136_v1  ;;  %v144_v5 = vadd.f32 1.0, %v143_v2 }
  0x5b   :  { %v145_v6 = vmul.f32 %v144_v5, %v129_v51  ;;  %v154_v7 = vxor.u32 2147483648, %v137_v4 }
  0x5d   :  { %v151_v8 = vxor.u32 2147483648, %v145_v6  ;;  %v155_v9 = vsel %vm153_vm14, %v154_v7, %v145_v6 }
  0x5f   :  { %v152_v0 = vsel %vm150_vm15, %v137_v4, %v151_v8 }
  0x60   :  { %v156_v11 = vsel %vm149_vm0, %v152_v0, %v155_v9 }
  0x61   :  { %v157_v12 = vsel %vm146_vm1, nan, %v156_v11 }
  0x62   :  { %158 = vst [vmem:[%s239_s1] sm:$0x1] %v157_v12 }

// kernel: cos.0
= control target key start
LH: loop header
LB: loop body
LE: loop exit
PB: predicated region body
PF: predicated region fallthrough
CT: control target
= control target key end

     0   :  { %v168_v12 = vmov 683565275   ;;  %v169_v14 = vmov 2475754826   ;;  %v170_v16 = vmov 2131351028   ;;  %s245_s0 = inlined_call_operand.vmem [shape: f32[8], index: 0, kind: input, shape index: {}]   ;;  %s246_s1 = inlined_call_operand.vmem [shape: f32[8], index: 1, kind: output, shape index: {}]  }
   0x1   :  { %v188_v0 = vld [vmem:[%s245_s0] sm:$0x1]  ;;  %v171_v18 = vmov 2102212464   ;;  %v172_v20 = vmov 920167782  }
   0x2   :  { %v6_v1 = vand.u32 2139095040, %v188_v0  ;;  %v3_v3 = vand.u32 2147483647, %v188_v0  ;;  %v173_v26 = vmov 1326507024   ;;  %vm5_vm12 = vcmp.lt.s32.totalorder %v188_v0, 0 }
   0x4   :  { %v7_v2 = vshrl.u32 %v6_v1, 23  ;;  %v10_v6 = vand.u32 8388607, %v3_v3  ;;  %v174_v1 = vmov 0   ;;  %vm232_vm13 = vcmp.le.f32.partialorder %v3_v3, 0.7853982 }
   0x6   :  { %v158_v4 = vadd.s32 4294967169, %v7_v2  ;;  %v11_v9 = vor.u32 8388608, %v10_v6 }
   0x8   :  { %v13_v5 = vadd.s32 1, %v158_v4  ;;  %v197_v28 = vshll.u32 %v11_v9, 8 }
   0xa   :  { %vm14_vm0 = vcmp.gt.s32.totalorder %v13_v5, 0  ;;  %v52_v40 = vand.u32 65535, %v197_v28  ;;  %v53_v41 = vshrl.u32 %v197_v28, 16 }
   0xb   :  { %v15_v7 = vsel %vm14_vm0, %v13_v5, 0 }
   0xc   :  { %v17_v8 = vand.u32 31, %v15_v7  ;;  %v194_v10 = vshrl.u32 %v15_v7, 5 }
   0xe   :  { %v18_v11 = vsub.s32 32, %v17_v8  ;;  %v20_v13 = vshll.u32 %v168_v12, %v17_v8  ;;  %v23_v15 = vshll.u32 %v169_v14, %v17_v8  ;;  %v26_v17 = vshll.u32 %v170_v16, %v17_v8 }
   0xf   :  { %v29_v19 = vshll.u32 %v171_v18, %v17_v8  ;;  %v32_v21 = vshll.u32 %v172_v20, %v17_v8  ;;  %vm35_vm1 = vcmp.lt.s32.totalorder %v194_v10, 1  ;;  %vm38_vm2 = vcmp.lt.s32.totalorder %v194_v10, 4 }
  0x10   :  { %v21_v22 = vshrl.u32 %v169_v14, %v18_v11  ;;  %v24_v23 = vshrl.u32 %v170_v16, %v18_v11  ;;  %v27_v24 = vshrl.u32 %v171_v18, %v18_v11  ;;  %v30_v25 = vshrl.u32 %v172_v20, %v18_v11 }
  0x11   :  { %v33_v27 = vshrl.u32 %v173_v26, %v18_v11  ;;  %vm37_vm3 = vcmp.lt.s32.totalorder %v194_v10, 3  ;;  %vm36_vm4 = vcmp.lt.s32.totalorder %v194_v10, 2  ;;  %v19_v48 = vshrl.u32 %v168_v12, %v18_v11 }
  0x12   :  { %v22_v29 = vor.u32 %v21_v22, %v20_v13  ;;  %v25_v30 = vor.u32 %v24_v23, %v23_v15  ;;  %v28_v31 = vor.u32 %v27_v24, %v26_v17  ;;  %v31_v32 = vor.u32 %v30_v25, %v29_v19 }
  0x13   :  { %v34_v33 = vor.u32 %v33_v27, %v32_v21 }
  0x14   :  { %v43_v34 = vsel %vm35_vm1, %v22_v29, %v25_v30  ;;  %v47_v35 = vsel %vm35_vm1, %v25_v30, %v28_v31  ;;  %v44_v36 = vsel %vm38_vm2, %v31_v32, 920167782  ;;  %v39_v61 = vsel %vm35_vm1, %v19_v48, %v22_v29 }
  0x15   :  { %v48_v37 = vsel %vm38_vm2, %v34_v33, 1326507024  ;;  %v45_v38 = vsel %vm37_vm3, %v28_v31, %v44_v36  ;;  %v40_v63 = vsel %vm38_vm2, %v28_v31, 2102212464  ;;  %vm146_vm1 = vweird.f32 %v188_v0 }
  0x16   :  { %v49_v39 = vsel %vm37_vm3, %v31_v32, %v48_v37  ;;  %v46_v42 = vsel %vm36_vm4, %v43_v34, %v45_v38  ;;  %v41_v12 = vsel %vm37_vm3, %v25_v30, %v40_v63 }
  0x17   :  { %v50_v43 = vsel %vm36_vm4, %v47_v35, %v49_v39  ;;  %v76_v46 = vand.u32 65535, %v46_v42  ;;  %v77_v47 = vshrl.u32 %v46_v42, 16  ;;  %v42_v10 = vsel %vm36_vm4, %v39_v61, %v41_v12 }
  0x18   :  { %v54_v44 = vand.u32 65535, %v50_v43  ;;  %v55_v45 = vshrl.u32 %v50_v43, 16  ;;  %v96_v23 = vmul.u32 %v197_v28, %v42_v10 }
  0x19   :  { %v78_v52 = vmul.u32 %v76_v46, %v52_v40  ;;  %v79_v53 = vmul.u32 %v77_v47, %v52_v40  ;;  %v80_v54 = vmul.u32 %v76_v46, %v53_v41  ;;  %v81_v58 = vmul.u32 %v77_v47, %v53_v41 }
  0x1a   :  { %v56_v49 = vmul.u32 %v54_v44, %v52_v40  ;;  %v57_v50 = vmul.u32 %v55_v45, %v52_v40  ;;  %v58_v51 = vmul.u32 %v54_v44, %v53_v41  ;;  %v59_v55 = vmul.u32 %v55_v45, %v53_v41 }
  0x1b   :  { %v82_v59 = vshll.u32 %v79_v53, 16  ;;  %v84_v60 = vshll.u32 %v80_v54, 16  ;;  %v83_v9 = vshrl.u32 %v79_v53, 16  ;;  %v85_v16 = vshrl.u32 %v80_v54, 16 }
  0x1c   :  { %v60_v56 = vshll.u32 %v57_v50, 16  ;;  %v62_v57 = vshll.u32 %v58_v51, 16  ;;  %v61_v5 = vshrl.u32 %v57_v50, 16  ;;  %v63_v13 = vshrl.u32 %v58_v51, 16 }
  0x1d   :  { %vm86_vm6 = vc.u32 %v78_v52, %v82_v59  ;;  %v88_v4 = vadd.s32 %v82_v59, %v78_v52 }
  0x1e   :  { %vm64_vm5 = vc.u32 %v56_v49, %v60_v56  ;;  %v66_v62 = vadd.s32 %v60_v56, %v56_v49  ;;  %v87_v7 = vsel %vm86_vm6, 1, %v174_v1 }
  0x1f   :  { %v65_v2 = vsel %vm64_vm5, 1, %v174_v1  ;;  %v89_v11 = vadd.s32 %v87_v7, %v81_v58  ;;  %vm90_vm8 = vc.u32 %v88_v4, %v84_v60  ;;  %v92_v19 = vadd.s32 %v88_v4, %v84_v60 }
  0x20   :  { %v67_v6 = vadd.s32 %v65_v2, %v59_v55  ;;  %vm68_vm7 = vc.u32 %v66_v62, %v62_v57  ;;  %v91_v15 = vsel %vm90_vm8, 1, %v174_v1 }
  0x21   :  { %v69_v8 = vsel %vm68_vm7, 1, %v174_v1  ;;  %v93_v17 = vadd.s32 %v91_v15, %v89_v11 }
  0x22   :  { %v71_v14 = vadd.s32 %v69_v8, %v67_v6 }
  0x23   :  { %v94_v20 = vadd.s32 %v93_v17, %v83_v9 }
  0x24   :  { %v72_v18 = vadd.s32 %v71_v14, %v61_v5 }
  0x25   :  { %v95_v22 = vadd.s32 %v94_v20, %v85_v16 }
  0x26   :  { %v73_v21 = vadd.s32 %v72_v18, %v63_v13 }
  0x27   :  { %v99_v24 = vadd.s32 1, %v95_v22 }
  0x28   :  { %vm98_vm9 = vc.u32 %v73_v21, %v92_v19  ;;  %v97_v35 = vadd.s32 %v92_v19, %v73_v21 }
  0x29   :  { %v100_v25 = vsel %vm98_vm9, %v99_v24, %v95_v22 }
  0x2a   :  { %v101_v26 = vadd.s32 %v100_v25, %v96_v23 }
  0x2c   :  { %v102_v27 = vadd.s32 536870912, %v101_v26 }
  0x2e   :  { %v103_v28 = vshrl.u32 %v102_v27, 30 }
  0x30   :  { %v104_v29 = vshll.u32 %v103_v28, 30  ;;  %v127_v50 = vsub.s32 4, %v103_v28 }
  0x32   :  { %v105_v30 = vsub.s32 %v101_v26, %v104_v29  ;;  %v128_v55 = vsel %vm5_vm12, %v127_v50, %v103_v28 }
  0x33   :  { %v130_v58 = vsel %vm232_vm13, 0, %v128_v55 }
  0x34   :  { %vm106_vm10 = vcmp.lt.s32.totalorder %v105_v30, 0  ;;  %v107_v31 = vsub.s32 0, %v105_v30  ;;  %v147_v63 = vand.u32 3, %v130_v58 }
  0x36   :  { %v108_v32 = vsel %vm106_vm10, %v107_v31, %v105_v30  ;;  %vm152_vm14 = vcmp.eq.s32.totalorder %v147_v63, 2  ;;  %vm149_vm15 = vcmp.eq.s32.totalorder %v147_v63, 0  ;;  %vm148_vm0 = vcmp.lt.s32.totalorder %v147_v63, 2 }
  0x37   :  { %v109_v33 = vclz %v108_v32 }
  0x39   :  { %v159_v34 = vadd.s32 4294967294, %v109_v33 }
  0x3b   :  { %vm160_vm11 = vcmp.lt.s32.totalorder %v159_v34, 0 }
  0x3c   :  { %v112_v36 = vsel %vm160_vm11, 0, %v159_v34 }
  0x3d   :  { %v113_v37 = vsub.s32 32, %v112_v36  ;;  %v114_v38 = vshll.u32 %v105_v30, %v112_v36  ;;  %v117_v39 = vsub.s32 4294967266, %v112_v36 }
  0x3f   :  { %v115_v40 = vshrl.u32 %v97_v35, %v113_v37  ;;  %v118_v41 = vadd.s32 127, %v117_v39 }
  0x41   :  { %v116_v42 = vor.u32 %v115_v40, %v114_v38  ;;  %v119_v43 = vshll.u32 %v118_v41, 23 }
  0x43   :  { %v120_v44 = vor.u32 4788187, %v119_v43  ;;  %v123_v45 = vcvt.s32.f32 %v116_v42 }
  0x45   :  { %v121_v46 = vand.u32 2147483647, %v120_v44 }
  0x47   :  { %v124_v47 = vmul.f32 %v123_v45, %v121_v46 }
  0x49   :  { %v125_v48 = vxor.u32 2147483648, %v124_v47 }
  0x4b   :  { %v126_v49 = vsel %vm5_vm12, %v125_v48, %v124_v47 }
  0x4c   :  { %v129_v51 = vsel %vm232_vm13, %v188_v0, %v126_v49 }
  0x4d   :  { %v131_v52 = vmul.f32 %v129_v51, %v129_v51 }
  0x4f   :  { %v132_v53 = vmul.f32 -0.001358992, %v131_v52  ;;  %v139_v54 = vmul.f32 -0.00019511016, %v131_v52 }
  0x51   :  { %v133_v56 = vadd.f32 0.041655596, %v132_v53  ;;  %v140_v57 = vadd.f32 0.008332121, %v139_v54 }
  0x53   :  { %v134_v59 = vmul.f32 %v133_v56, %v131_v52  ;;  %v141_v60 = vmul.f32 %v140_v57, %v131_v52 }
  0x55   :  { %v135_v61 = vadd.f32 -0.4999988, %v134_v59  ;;  %v142_v62 = vadd.f32 -0.16666654, %v141_v60 }
  0x57   :  { %v136_v1 = vmul.f32 %v135_v61, %v131_v52  ;;  %v143_v2 = vmul.f32 %v142_v62, %v131_v52 }
  0x59   :  { %v137_v4 = vadd.f32 1.0, %v136_v1  ;;  %v144_v5 = vadd.f32 1.0, %v143_v2 }
  0x5b   :  { %v145_v6 = vmul.f32 %v144_v5, %v129_v51  ;;  %v153_v7 = vxor.u32 2147483648, %v137_v4 }
  0x5d   :  { %v150_v8 = vxor.u32 2147483648, %v145_v6  ;;  %v154_v9 = vsel %vm152_vm14, %v153_v7, %v145_v6 }
  0x5f   :  { %v151_v0 = vsel %vm149_vm15, %v137_v4, %v150_v8 }
  0x60   :  { %v155_v11 = vsel %vm148_vm0, %v151_v0, %v154_v9 }
  0x61   :  { %v156_v12 = vsel %vm146_vm1, nan, %v155_v11 }
  0x62   :  { %157 = vst [vmem:[%s246_s1] sm:$0x1] %v156_v12 }

// kernel: dab_deformable_detr_forward.18
= control target key start
LH: loop header
LB: loop body
LE: loop exit
PB: predicated region body
PF: predicated region fallthrough
CT: control target
= control target key end

     0   :  { %vm66_vm0 = vcmask 261120   ;;  %vm130_vm1 = vcmask 1043456   ;;  %vm131_vm2 = vcmask 523268   ;;  %s278_s1 = inlined_call_operand.vmem [shape: bf16[32,192], index: 1, kind: input, shape index: {}]   ;;  %s279_s0 = inlined_call_operand.vmem [shape: bf16[48,32], index: 0, kind: input, shape index: {}]   ;;  %s280_s2 = inlined_call_operand.vmem [shape: f32[1,192], index: 2, kind: input, shape index: {}]   ;;  %s281_s3 = inlined_call_operand.vmem [shape: bf16[48,192], index: 3, kind: output, shape index: {}]  }
   0x1   :  { %v165_v0 = vld [vmem:[%s278_s1 + $0x10] sm:$0xf]  ;;  %v183_v1 = vld [vmem:[%s278_s1 + $0x14] sm:$0xf0]  ;;  %v182_v2 = vld [vmem:[%s278_s1 + $0x14] sm:$0xf] }
   0x2   :  { %v166_v3 = vor.u32 %v183_v1, %v165_v0  ;;  %v167_v4 = vld [vmem:[%s278_s1 + $0x18] sm:$0xf0]  ;;  %v157_v5 = vld [vmem:[%s278_s1] sm:$0xf]  ;;  %v181_v6 = vld [vmem:[%s278_s1 + $0x4] sm:$0xf0] }
   0x3   :  { %v170_v7 = vor.u32 %v182_v2, %v167_v4  ;;  %v180_v8 = vld [vmem:[%s278_s1 + $0x4] sm:$0xf]  ;;  %v159_v9 = vld [vmem:[%s278_s1 + $0x8] sm:$0xf0]  ;;  %v158_v10 = vor.u32 %v181_v6, %v157_v5  ;;  %v179_v14 = vld [vmem:[%s279_s0 + $0x10] sm:$0xff] }
   0x4   :  { %184 = vmatpush.bf16.msra.mxu2 %v166_v3  ;;  %82 = vmatpush.bf16.msra.mxu0 %v166_v3  ;;  %v162_v11 = vor.u32 %v180_v8, %v159_v9  ;;  %v178_v12 = vld [vmem:[%s279_s0 + $0x8] sm:$0xff]  ;;  %v177_v13 = vld [vmem:[%s279_s0] sm:$0xff]  ;;  %vm244_vm3 = vmor %vm131_vm2, %vm130_vm1 }
   0x5   :  { %186 = vmatpush.bf16.msra.mxu3 %v170_v7  ;;  %106 = vmatpush.bf16.msra.mxu1 %v170_v7  ;;  %v25_v15 = vld [vmem:[%s280_s2] sm:$0x3] }
   0x6   :  { %v27_v16 = vperm.slane %v25_v15, 0  ;;  %v28_v17 = vperm.slane %v25_v15, 1 }
   0x8   :  { %185 = vmatpush.bf16.msra.mxu2 %v158_v10  ;;  %83 = vmatpush.bf16.msra.mxu0 %v158_v10 }
   0x9   :  { %187 = vmatpush.bf16.msra.mxu3 %v162_v11  ;;  %107 = vmatpush.bf16.msra.mxu1 %v162_v11 }
   0xb   :  { %172 = vmatmul.msk.bf16.vlgmr.msra.gmra.mxu2 %vm66_vm0, %v178_v12  ;;  %171 = vmatmul.msk.bf16.vlgmr.msra.gmra.mxu0 %vm66_vm0, %v177_v13 }
   0xc   :  { %175 = vmatmul.msk.bf16.vlgmr.msra.gmra.mxu3 %vm66_vm0, %v178_v12  ;;  %174 = vmatmul.msk.bf16.vlgmr.msra.gmra.mxu1 %vm66_vm0, %v177_v13 }
  0x1b   :  { %173 = vmatmul.msk.bf16.gmra.mxu2 %vm66_vm0, %v179_v14 }
  0x1c   :  { %176 = vmatmul.msk.bf16.gmra.mxu3 %vm66_vm0, %v179_v14 }
  0x88   :  { %v85_v18 = vpop.f32.mrf.mxu0 }
  0x89   :  { %v86_v19 = vadd.f32 %v85_v18, %v27_v16  ;;  %v109_v20 = vpop.f32.mrf.mxu1 }
  0x8a   :  { %v110_v21 = vadd.f32 %v109_v20, %v28_v17 }
  0x8c   :  { %v124_v22 = vpack.c.bf16 %v110_v21, %v86_v19 }
  0x8e   :  { %v90_v24 = vpop.f32.mrf.mxu2  ;;  %133 = vst.msk [vmem:[%s281_s3] sm:$0xff] %vm244_vm3, %v124_v22 }
  0x8f   :  { %v91_v25 = vadd.f32 %v90_v24, %v27_v16  ;;  %v114_v26 = vpop.f32.mrf.mxu3 }
  0x90   :  { %v115_v27 = vadd.f32 %v114_v26, %v28_v17  ;;  %v87_v28 = vpop.f32.mrf.mxu0 }
  0x91   :  { %v88_v29 = vadd.f32 %v87_v28, %v27_v16  ;;  %v111_v30 = vpop.f32.mrf.mxu1 }
  0x92   :  { %v126_v31 = vpack.c.bf16 %v115_v27, %v91_v25  ;;  %v112_v32 = vadd.f32 %v111_v30, %v28_v17 }
  0x94   :  { %135 = vst.msk [vmem:[%s281_s3 + $0x10] sm:$0xff] %vm244_vm3, %v126_v31  ;;  %v125_v33 = vpack.c.bf16 %v112_v32, %v88_v29 }
  0x96   :  { %v92_v34 = vpop.f32.mrf.mxu2  ;;  %134 = vst.msk [vmem:[%s281_s3 + $0x8] sm:$0xff] %vm244_vm3, %v125_v33 }
  0x97   :  { %v93_v35 = vadd.f32 %v92_v34, %v27_v16  ;;  %v116_v36 = vpop.f32.mrf.mxu3 }
  0x98   :  { %v117_v37 = vadd.f32 %v116_v36, %v28_v17 }
  0x9a   :  { %v127_v38 = vpack.c.bf16 %v117_v37, %v93_v35 }
  0x9c   :  { %136 = vst.msk [vmem:[%s281_s3 + $0x18] sm:$0xff] %vm244_vm3, %v127_v38 }
  0x9e   :  { %v95_v39 = vpop.f32.mrf.mxu2 }
  0x9f   :  { %v96_v40 = vadd.f32 %v95_v39, %v27_v16  ;;  %v119_v41 = vpop.f32.mrf.mxu3 }
  0xa0   :  { %v120_v42 = vadd.f32 %v119_v41, %v28_v17 }
  0xa2   :  { %v128_v43 = vpack.c.bf16 %v120_v42, %v96_v40 }
  0xa4   :  { %137 = vst.msk [vmem:[%s281_s3 + $0x20] sm:$0xff] %vm244_vm3, %v128_v43 }
  0xa6   :  { %v97_v44 = vpop.f32.mrf.mxu2 }
  0xa7   :  { %v98_v45 = vadd.f32 %v97_v44, %v27_v16  ;;  %v121_v46 = vpop.f32.mrf.mxu3 }
  0xa8   :  { %v122_v47 = vadd.f32 %v121_v46, %v28_v17 }
  0xaa   :  { %v129_v48 = vpack.c.bf16 %v122_v47, %v98_v45 }
  0xac   :  { %138 = vst.msk [vmem:[%s281_s3 + $0x28] sm:$0xff] %vm244_vm3, %v129_v48 }

// kernel: dab_deformable_detr_forward.19
= control target key start
LH: loop header
LB: loop body
LE: loop exit
PB: predicated region body
PF: predicated region fallthrough
CT: control target
= control target key end

     0   :  { %s2701_s27 = smov 0   ;;  %s3078_s0 = inlined_call_operand.vmem [shape: bf16[3,2,21,32], index: 0, kind: input, shape index: {}]   ;;  %s3079_s1 = inlined_call_operand.vmem [shape: bf16[3,2,21,32], index: 1, kind: input, shape index: {}]   ;;  %s3080_s2 = inlined_call_operand.vmem [shape: f32[32,32], index: 2, kind: input, shape index: {}]   ;;  %s3081_s3 = inlined_call_operand.vmem [shape: f32[32,32], index: 3, kind: input, shape index: {}]   ;;  %s3082_s4 = inlined_call_operand.vmem [shape: f32[32,4], index: 4, kind: input, shape index: {}]   ;;  %s3083_s5 = inlined_call_operand.vmem [shape: bf16[3,32,32], index: 5, kind: input, shape index: {}]   ;;  %s3084_s6 = inlined_call_operand.vmem [shape: f32[3,1,32], index: 6, kind: input, shape index: {}]   ;;  %s3085_s7 = inlined_call_operand.vmem [shape: bf16[3,32,32], index: 7, kind: input, shape index: {}]   ;;  %s3086_s8 = inlined_call_operand.vmem [shape: f32[3,1,32], index: 8, kind: input, shape index: {}]   ;;  %s3087_s9 = inlined_call_operand.vmem [shape: f32[3,1,32], index: 9, kind: input, shape index: {}]   ;;  %s3088_s10 = inlined_call_operand.vmem [shape: f32[3,1,32], index: 10, kind: input, shape index: {}]   ;;  %s3089_s11 = inlined_call_operand.vmem [shape: bf16[3,32,64], index: 11, kind: input, shape index: {}]   ;;  %s3090_s12 = inlined_call_operand.vmem [shape: f32[3,1,64], index: 12, kind: input, shape index: {}]   ;;  %s3091_s13 = inlined_call_operand.vmem [shape: bf16[3,64,32], index: 13, kind: input, shape index: {}]   ;;  %s3092_s14 = inlined_call_operand.vmem [shape: f32[3,1,32], index: 14, kind: input, shape index: {}]   ;;  %s3093_s15 = inlined_call_operand.vmem [shape: f32[3,1,32], index: 15, kind: input, shape index: {}]   ;;  %s3094_s16 = inlined_call_operand.vmem [shape: f32[3,1,32], index: 16, kind: input, shape index: {}]   ;;  %s3095_s17 = inlined_call_operand.vmem [shape: bf16[32,8], index: 17, kind: input, shape index: {}]   ;;  %s3096_s18 = inlined_call_operand.vmem [shape: f32[1,8], index: 18, kind: input, shape index: {}]   ;;  %s3097_s19 = inlined_call_operand.vmem [shape: bf16[32,32], index: 19, kind: input, shape index: {}]   ;;  %s3098_s20 = inlined_call_operand.vmem [shape: f32[1,32], index: 20, kind: input, shape index: {}]   ;;  %s3099_s21 = inlined_call_operand.vmem [shape: bf16[32,32], index: 21, kind: input, shape index: {}]   ;;  %s3100_s22 = inlined_call_operand.vmem [shape: f32[1,32], index: 22, kind: input, shape index: {}]   ;;  %s3101_s23 = inlined_call_operand.vmem [shape: bf16[32,4], index: 23, kind: input, shape index: {}]   ;;  %s3102_s24 = inlined_call_operand.vmem [shape: f32[3,1,4], index: 24, kind: input, shape index: {}]   ;;  %s3103_s25 = inlined_call_operand.vmem [shape: f32[3,32,8], index: 25, kind: output, shape index: {0}]   ;;  %s3104_s26 = inlined_call_operand.vmem [shape: f32[3,32,4], index: 26, kind: output, shape index: {1}]  }
   0x1   :  { %3115 = sst [smem:[#allocation7_spill]] %s3078_s0 }
   0x2   :  { %3116 = sst [smem:[#allocation8_spill]] %s3079_s1 }
   0x3   :  { %3117 = sst [smem:[#allocation9_spill]] %s3080_s2 }
   0x4   :  { %3118 = sst [smem:[#allocation10_spill]] %s3081_s3 }
   0x5   :  { %3119 = sst [smem:[#allocation11_spill]] %s3082_s4 }
   0x6   :  { %3120 = sst [smem:[#allocation12_spill]] %s3083_s5 }
   0x7   :  { %3121 = sst [smem:[#allocation13_spill]] %s3084_s6 }
   0x8   :  { %3122 = sst [smem:[#allocation14_spill]] %s3085_s7 }
   0x9   :  { %3123 = sst [smem:[#allocation15_spill]] %s3086_s8 }
   0xa   :  { %3124 = sst [smem:[#allocation16_spill]] %s3087_s9 }
   0xb   :  { %3125 = sst [smem:[#allocation17_spill]] %s3088_s10 }
   0xc   :  { %3126 = sst [smem:[#allocation18_spill]] %s3095_s17 }
   0xd   :  { %3127 = sst [smem:[#allocation19_spill]] %s3096_s18 }
   0xe   :  { %3128 = sst [smem:[#allocation20_spill]] %s3097_s19 }
   0xf   :  { %3129 = sst [smem:[#allocation21_spill]] %s3098_s20 }
  0x10   :  { %3130 = sst [smem:[#allocation22_spill]] %s3099_s21 }
  0x11   :  { %3131 = sst [smem:[#allocation23_spill]] %s3100_s22 }
  0x12   :  { %3132 = sst [smem:[#allocation24_spill]] %s3101_s23 }
  0x13   :  { %3133 = sst [smem:[#allocation25_spill]] %s3103_s25 }
  0x14   :  { %3134 = sst [smem:[#allocation26_spill]] %s3104_s26 }
  0x15 LB: > { %3135 = sst [smem:[#allocation4_spill]] %s2562_s27  ;;  %s2297_s3 = sadd.s32 4294967295, %s2562_s27   ;;  %s2562_s27 = sphi %s2701_s27, %s37_s27  }
  0x16   : > { %p2301_p0 = scmp.ge.s32.totalorder %s2562_s27, 1  ;;  %p837_p1 = scmp.lt.s32.totalorder %s2562_s27, 4 }
  0x18   : > { %p838_p2 = pnand %p2301_p0, %p837_p1 }
  0x1a   : > { %841 = sbr.rel (%p838_p2) target bundleno = 2178 (0x882), region = 120 }
  0x1f   : > { %p964_p3 = scmp.lt.s32.totalorder %s2297_s3, 2  ;;  %s3136_s0 = sld [smem:[#allocation12_spill]] }
  0x20   : > { %s3139_s27 = sld [smem:[#allocation7_spill]]  ;;  %p2316_p4 = scmp.ne.s32.totalorder %s2297_s3, 0 }
  0x21   : > { %s2709_s7 = scalar_select %p964_p3, %s2297_s3, 2 }
  0x22   : > { %s3141_s23 = sld [smem:[#allocation8_spill]] }
  0x23   : > { %s2467_s28 = smul.u32 24, %s2709_s7  ;;  %s2437_s8 = sshll.u32 %s2709_s7, 4 }
  0x24   : > { %s3142_s4 = sld [smem:[#allocation14_spill]]  ;;  %s1014_s1 = scalar_lea.vmem %s3093_s15, %s2709_s7 }
  0x25   : > { %s2716_s9 = scalar_lea.vmem %s3136_s0, %s2437_s8  ;;  %s1017_s20 = scalar_lea.vmem %s3094_s16, %s2709_s7 }
  0x26   : > { %3137 = sst [smem:[#allocation5_spill]] %s2716_s9  ;;  %s2725_s22 = scalar_lea.vmem %s3139_s27, %s2467_s28 }
  0x27   : > { %3140 = sst [smem:[#allocation6_spill]] %s2725_s22 }
  0x28   : > { %s2730_s21 = scalar_lea.vmem %s3141_s23, %s2467_s28  ;;  %s2752_s23 = scalar_lea.vmem %s3089_s11, %s2437_s8 }
  0x29   : > { %s1020_s28 = scalar_lea.vmem %s3102_s24, %s2709_s7  ;;  %s3146_s26 = sld [smem:[#allocation25_spill]] }
  0x2a   : > { %s2735_s29 = scalar_lea.vmem %s3142_s4, %s2437_s8  ;;  %s2440_s4 = sshll.u32 %s2709_s7, 5 }
  0x2b   : > { %s2766_s5 = scalar_lea.vmem %s3091_s13, %s2440_s4  ;;  %s3147_s6 = sld [smem:[#allocation26_spill]] }
  0x2c   : > { %s3148_s8 = sld [smem:[#allocation10_spill]] (!%p2316_p4) }
  0x2d   : > { %1035 = sbr.rel (%p2316_p4) target bundleno = 60 (0x3c), region = 124 }
  0x2f   : > { %s2783_s0 = scalar_lea.vmem %s3146_s26, %s2440_s4 }
  0x31   : > { %s2788_s30 = scalar_lea.vmem %s3147_s6, %s2440_s4  ;;  %s3149_s4 = sld [smem:[#allocation11_spill]] (!%p2316_p4) }
  0x32   : > { %v1036_v0 = vld [vmem:[%s3148_s8] sm:$0xff]  ;;  %vm1040_vm0 = vcmask 261120   ;;  %v1037_v1 = vld [vmem:[%s3148_s8 + $0x8] sm:$0xff]  ;;  %v1038_v2 = vld [vmem:[%s3148_s8 + $0x10] sm:$0xff]  ;;  %vm1049_vm1 = vcmask 31744  }
  0x33   : > { %1041 = vst.msk [vmem:[#allocation2] sm:$0xff] %vm1040_vm0, %v1036_v0  ;;  %v1039_v3 = vld [vmem:[%s3148_s8 + $0x18] sm:$0xff] }
  0x34   : > { %1042 = vst.msk [vmem:[#allocation2 + $0x8] sm:$0xff] %vm1040_vm0, %v1037_v1 }
  0x35   : > { %1043 = vst.msk [vmem:[#allocation2 + $0x10] sm:$0xff] %vm1040_vm0, %v1038_v2 }
  0x36   : > { %1044 = vst.msk [vmem:[#allocation2 + $0x18] sm:$0xff] %vm1040_vm0, %v1039_v3 }
  0x37   : > { %v1045_v4 = vld [vmem:[%s3149_s4] sm:$0xff]  ;;  %v1046_v5 = vld [vmem:[%s3149_s4 + $0x8] sm:$0xff]  ;;  %v1047_v6 = vld [vmem:[%s3149_s4 + $0x10] sm:$0xff] }
  0x38   : > { %1050 = vst.msk [vmem:[#allocation3] sm:$0xff] %vm1049_vm1, %v1045_v4  ;;  %v1048_v7 = vld [vmem:[%s3149_s4 + $0x18] sm:$0xff] }
  0x39   : > { %1051 = vst.msk [vmem:[#allocation3 + $0x8] sm:$0xff] %vm1049_vm1, %v1046_v5 }
  0x3a   : > { %1052 = vst.msk [vmem:[#allocation3 + $0x10] sm:$0xff] %vm1049_vm1, %v1047_v6 }
  0x3b   : > { %1053 = vst.msk [vmem:[#allocation3 + $0x18] sm:$0xff] %vm1049_vm1, %v1048_v7 }
  0x3c PF: > { %s3150_s19 = sld [smem:[#allocation5_spill]]  ;;  %v2816_v10 = vld [vmem:[#allocation2] sm:$0xff]  ;;  %v2818_v11 = vld [vmem:[#allocation2 + $0x8] sm:$0xff]  ;;  %v2828_v16 = vld [vmem:[#allocation2 + $0x10] sm:$0xff]  ;;  %vm1088_vm2 = vcmask 261120   ;;  %vm1154_vm3 = vcmask 171008  }
  0x3d   : > { %s3151_s25 = sld [smem:[#allocation6_spill]]  ;;  %v2830_v17 = vld [vmem:[#allocation2 + $0x18] sm:$0xff]  ;;  %vm1190_vm4 = vcmask 1041408   ;;  %vm1191_vm5 = vcmask 1042432  }
  0x3e   : > { %s3152_s3 = sld [smem:[#allocation9_spill]] }
  0x3f   : > { %s3153_s9 = sld [smem:[#allocation13_spill]] }
  0x40   : > { %s3155_s6 = sld [smem:[#allocation15_spill]] }
  0x41   : > { %s3157_s10 = sld [smem:[#allocation16_spill]] }
  0x42   : > { %v2444_v8 = vld [vmem:[%s3150_s19 + $0x8] sm:$0xff]  ;;  %v2443_v9 = vld [vmem:[%s3150_s19] sm:$0xff]  ;;  %s3159_s17 = sld [smem:[#allocation17_spill]] }
  0x43   : > { %1101 = vmatpush.bf16.msra.mxu0 %v2444_v8  ;;  %2465 = vmatpush.bf16.msra.mxu2 %v2444_v8  ;;  %v1116_v21 = vld [vmem:[%s3151_s25 + $0x8] sm:$0x7]  ;;  %v2339_v28 = vld [vmem:[%s3151_s25 + $0x14] sm:$0x7]  ;;  %v2445_v32 = vld [vmem:[%s3151_s25] sm:$0xff]  ;;  %s3164_s27 = sld [smem:[#allocation18_spill]] }
  0x44   : > { %v1058_v12 = vld [vmem:[%s3152_s3] sm:$0xff]  ;;  %v1059_v13 = vld [vmem:[%s3152_s3 + $0x8] sm:$0xff]  ;;  %v1060_v18 = vld [vmem:[%s3152_s3 + $0x10] sm:$0xff]  ;;  %v1126_v23 = vunpack.c.l.b16 %v1116_v21  ;;  %v1225_v29 = vunpack.c.l.b16 %v2339_v28  ;;  %v1133_v33 = vsel %vm1088_vm2, %v2445_v32, 0 }
  0x45   : > { %v1062_v14 = vadd.f32 %v1058_v12, %v2816_v10  ;;  %v1063_v15 = vadd.f32 %v1059_v13, %v2818_v11  ;;  %v1061_v19 = vld [vmem:[%s3152_s3 + $0x18] sm:$0xff]  ;;  %v1064_v20 = vadd.f32 %v1060_v18, %v2828_v16  ;;  %v2447_v34 = vld [vmem:[%s3151_s25 + $0xc] sm:$0xff]  ;;  %s3154_s26 = scalar_lea.vmem %s3153_s9, %s2709_s7  ;;  %v2342_v21 = vld [vmem:[%s2730_s21 + $0x14] sm:$0x7]  ;;  %s3169_s25 = sld [smem:[#allocation19_spill]] }
  0x46   : > { %v1065_v22 = vadd.f32 %v1061_v19, %v2830_v17  ;;  %v1128_v26 = vpack.c.b16 %v1126_v23, %v1126_v23  ;;  %v1227_v30 = vpack.c.b16 %v1225_v29, %v1225_v29  ;;  %v1232_v35 = vsel %vm1088_vm2, %v2447_v34, 0  ;;  %v2478_v37 = vld [vmem:[%s3154_s26] ss:$0 sm:$0xff]  ;;  %v1119_v19 = vld [vmem:[%s2730_s21 + $0x8] sm:$0x7]  ;;  %s3156_s2 = scalar_lea.vmem %s3155_s6, %s2709_s7  ;;  %s3162_s6 = scalar_lea.vmem %s3092_s14, %s2709_s7 }
  0x47   : > { %v1070_v24 = vpack.c.bf16 %v1063_v15, %v1062_v14  ;;  %1102 = vmatpush.bf16.msra.mxu0 %v2443_v9  ;;  %2466 = vmatpush.bf16.msra.mxu2 %v2443_v9  ;;  %v2564_v23 = vmov 65535   ;;  %s3158_s22 = scalar_lea.vmem %s3157_s10, %s2709_s7  ;;  %s3166_s10 = sld [smem:[#allocation22_spill]] }
  0x48   : > { %v1071_v25 = vpack.c.bf16 %v1065_v22, %v1064_v20  ;;  %v1136_v27 = vsel %vm1088_vm2, %v1128_v26, 0  ;;  %v1235_v31 = vsel %vm1088_vm2, %v1227_v30, 0  ;;  %v1183_v20 = vunpack.c.l.b16 %v1119_v19  ;;  %v2446_v30 = vld [vmem:[%s2730_s21] sm:$0xff]  ;;  %s3160_s19 = scalar_lea.vmem %s3159_s17, %s2709_s7  ;;  %s3167_s17 = sld [smem:[#allocation24_spill]] }
  0x49   : > { %1144 = vmatpush.bf16.xpose.msra.mxu1 %v1136_v27  ;;  %1243 = vmatpush.bf16.xpose.msra.mxu3 %v1235_v31  ;;  %v2448_v31 = vld [vmem:[%s2730_s21 + $0xc] sm:$0xff]  ;;  %s3161_s21 = scalar_lea.vmem %s3090_s12, %s2709_s7  ;;  %s3165_s18 = smov %s3164_s27 }
  0x4a   : > { %2325 = vmatmul.msk.bf16.vlgmr.msra.gmra.mxu0 %vm1088_vm2, %v1070_v24  ;;  %2326 = vmatmul.msk.bf16.vlgmr.msra.gmra.mxu2 %vm1088_vm2, %v1071_v25  ;;  %v1185_v22 = vpack.c.b16 %v1183_v20, %v1183_v20  ;;  %v1192_v24 = vsel %vm1190_vm4, 4294967295, %v2564_v23  ;;  %v1281_v25 = vunpack.c.l.b16 %v2342_v21  ;;  %vm1556_vm4 = vcmask 523264   ;;  %s3168_s26 = sld [smem:[#allocation21_spill]] }
  0x4b   : > { %v1193_v26 = vsel %vm1191_vm5, %v1192_v24, 0 }
  0x4c   : > { %v1195_v27 = vand.u32 %v1193_v26, %v1185_v22  ;;  %v1283_v28 = vpack.c.b16 %v1281_v25, %v1281_v25 }
  0x4e   : > { %1203 = vmatpush.bf16.msrb.mxu2 %v1195_v27  ;;  %v1289_v29 = vand.u32 %v1283_v28, %v1193_v26 }
  0x51   : > { %1145 = vmatpush.bf16.xpose.msra.mxu1 %v1133_v33  ;;  %1244 = vmatpush.bf16.xpose.msra.mxu3 %v1232_v35  ;;  %v2450_v33 = vld [vmem:[%s2735_s29 + $0x8] sm:$0xff] }
  0x52   : > { %1204 = vmatpush.bf16.msrb.mxu2 %v2446_v30 }
  0x56   : > { %1297 = vmatpush.bf16.msra.mxu2 %v1289_v29 }
  0x59   : > { %1339 = vmatpush.bf16.msrb.mxu1 %v2450_v33 }
  0x5a   : > { %1298 = vmatpush.bf16.msra.mxu2 %v2448_v31 }
  0xc7   : > { %v1104_v36 = vpop.f32.mrf.mxu0 }
  0xc8   : > { %v1105_v40 = vadd.f32 %v2478_v37, %v1104_v36 }
  0xcd   : > { %v1109_v38 = vpop.f32.mrf.mxu2 }
  0xce   : > { %v1110_v44 = vadd.f32 %v2478_v37, %v1109_v38 }
  0xcf   : > { %v1106_v39 = vpop.f32.mrf.mxu0 }
  0xd0   : > { %v1107_v41 = vadd.f32 %v2478_v37, %v1106_v39 }
  0xd2   : > { %v1120_v42 = vpack.c.bf16 %v1107_v41, %v1105_v40 }
  0xd4   : > { %2331 = vmatmul.msk.bf16.vlgmr.msra.gmra.mxu1 %vm1088_vm2, %v1120_v42 }
  0xd5   : > { %v1111_v43 = vpop.f32.mrf.mxu2 }
  0xd6   : > { %v1112_v45 = vadd.f32 %v2478_v37, %v1111_v43 }
  0xd8   : > { %v1219_v46 = vpack.c.bf16 %v1112_v45, %v1110_v44 }
  0xda   : > { %2347 = vmatmul.msk.bf16.vlgmr.msra.gmra.mxu3 %vm1088_vm2, %v1219_v46 }
 0x151   : > { %v1147_v47 = vpop.f32.mrf.mxu1 }
 0x152   : > { %v1152_v48 = vmul.f32 0.17677669, %v1147_v47  ;;  %v2449_v47 = vld [vmem:[%s2735_s29] sm:$0xff] }
 0x153   : > { %1340 = vmatpush.bf16.msrb.mxu1 %v2449_v47 }
 0x154   : > { %v1155_v49 = vsel %vm1154_vm3, %v1152_v48, -inf }
 0x155   : > { %1156 = vmax.xlane.f32.xlu0 %v1155_v49 }
 0x159   : > { %v1149_v50 = vpop.f32.mrf.mxu1 }
 0x15a   : > { %v1153_v51 = vmul.f32 0.17677669, %v1149_v50 }
 0x15c   : > { %v1158_v52 = vsel %vm1154_vm3, %v1153_v51, -inf }
 0x15d   : > { %v1246_v53 = vpop.f32.mrf.mxu3  ;;  %1159 = vmax.xlane.f32.xlu0 %v1158_v52 }
 0x15e   : > { %v1251_v54 = vmul.f32 0.17677669, %v1246_v53 }
 0x160   : > { %v1253_v55 = vsel %vm1154_vm3, %v1251_v54, -inf }
 0x161   : > { %1254 = vmax.xlane.f32.xlu1 %v1253_v55 }
 0x165   : > { %v1248_v56 = vpop.f32.mrf.mxu3 }
 0x166   : > { %v1252_v57 = vmul.f32 0.17677669, %v1248_v56 }
 0x168   : > { %v1256_v58 = vsel %vm1154_vm3, %v1252_v57, -inf }
 0x169   : > { %1257 = vmax.xlane.f32.xlu1 %v1256_v58 }
 0x1c8   : > { %v1157_v59 = vpop.xlane.xlu0 %1156 }
 0x1c9   : > { %v1161_v60 = vsub.f32 %v1152_v48, %v1157_v59 }
 0x1cb   : > { %v1163_v61 = vmul.f32 1.442695, %v1161_v60 }
 0x1cd   : > { %2490 = vpow2.f32 %v1163_v61 }
 0x1d0   : > { %v1160_v62 = vpop.xlane.xlu0 %1159 }
 0x1d1   : > { %v1162_v63 = vsub.f32 %v1153_v51, %v1160_v62 }
 0x1d3   : > { %v2491_v0 = vpop.eup %2490  ;;  %v1165_v1 = vmul.f32 1.442695, %v1162_v63 }
 0x1d4   : > { %v1255_v2 = vpop.xlane.xlu1 %1254  ;;  %v1167_v3 = vsel %vm1154_vm3, %v2491_v0, 0.0 }
 0x1d5   : > { %2492 = vpow2.f32 %v1165_v1  ;;  %v1259_v4 = vsub.f32 %v1251_v54, %v1255_v2  ;;  %1168 = vadd.xlane.f32.xlu2 %v1167_v3  ;;  %v2479_v54 = vld [vmem:[%s3156_s2] ss:$0 sm:$0xff] }
 0x1d7   : > { %v1261_v5 = vmul.f32 1.442695, %v1259_v4 }
 0x1d9   : > { %2494 = vpow2.f32 %v1261_v5 }
 0x1db   : > { %v2493_v6 = vpop.eup %2492 }
 0x1dc   : > { %v1258_v7 = vpop.xlane.xlu1 %1257  ;;  %v1170_v8 = vsel %vm1154_vm3, %v2493_v6, 0.0 }
 0x1dd   : > { %v1260_v9 = vsub.f32 %v1252_v57, %v1258_v7  ;;  %1171 = vadd.xlane.f32.xlu2 %v1170_v8 }
 0x1df   : > { %v2495_v12 = vpop.eup %2494  ;;  %v1263_v13 = vmul.f32 1.442695, %v1260_v9 }
 0x1e0   : > { %v1265_v14 = vsel %vm1154_vm3, %v2495_v12, 0.0 }
 0x1e1   : > { %2496 = vpow2.f32 %v1263_v13  ;;  %1266 = vadd.xlane.f32.xlu0 %v1265_v14 }
 0x1e7   : > { %v2497_v15 = vpop.eup %2496 }
 0x1e8   : > { %v1268_v18 = vsel %vm1154_vm3, %v2497_v15, 0.0 }
 0x1e9   : > { %1269 = vadd.xlane.f32.xlu1 %v1268_v18 }
 0x248   : > { %v1169_v32 = vpop.xlane.xlu2 %1168 }
 0x249   : > { %2498 = vrcp.f32 %v1169_v32 }
 0x24f   : > { %v2499_v35 = vpop.eup %2498 }
 0x250   : > { %v1172_v34 = vpop.xlane.xlu2 %1171  ;;  %v1175_v37 = vmul.f32 %v2499_v35, %v2491_v0 }
 0x251   : > { %2500 = vrcp.f32 %v1172_v34  ;;  %v2452_v34 = vld [vmem:[%s2752_s23 + $0x8] sm:$0xff] }
 0x252   : > { %1501 = vmatpush.bf16.msrb.mxu3 %v2452_v34 }
 0x254   : > { %v1267_v40 = vpop.xlane.xlu0 %1266 }
 0x257   : > { %v2501_v36 = vpop.eup %2500 }
 0x258   : > { %v1176_v38 = vmul.f32 %v2501_v36, %v2493_v6  ;;  %v2565_v6 = vmov 32.0  }
 0x25a   : > { %v1177_v39 = vpack.c.bf16 %v1176_v38, %v1175_v37  ;;  %v2451_v37 = vld [vmem:[%s2752_s23] sm:$0xff]  ;;  %s3163_s23 = sld [smem:[#allocation20_spill]] }
 0x25b   : > { %1502 = vmatpush.bf16.msrb.mxu3 %v2451_v37 }
 0x25c   : > { %v1270_v41 = vpop.xlane.xlu1 %1269  ;;  %2336 = vmatmul.msk.bf16.vlgmr.msrb.gmra.mxu2 %vm1154_vm3, %v1177_v39 }
 0x25d   : > { %2502 = vrcp.f32 %v1270_v41 }
 0x25e   : > { %2504 = vrcp.f32 %v1267_v40 }
 0x25f   : > { %2506 = vrcp.f32 %v2565_v6 }
 0x263   : > { %v2503_v42 = vpop.eup %2502 }
 0x264   : > { %v2505_v43 = vpop.eup %2504  ;;  %v1274_v44 = vmul.f32 %v2503_v42, %v2497_v15 }
 0x265   : > { %v1273_v45 = vmul.f32 %v2505_v43, %v2495_v12 }
 0x267   : > { %v1275_v46 = vpack.c.bf16 %v1274_v44, %v1273_v45 }
 0x26c   : > { %2352 = vmatmul.msk.bf16.vlgmr.msra.gmra.mxu2 %vm1154_vm3, %v1275_v46 }
 0x2df   : > { %v1206_v48 = vpop.f32.mrf.mxu2 }
 0x2e7   : > { %v1208_v49 = vpop.f32.mrf.mxu2 }
 0x2e8   : > { %v1309_v50 = vpack.c.bf16 %v1208_v49, %v1206_v48 }
 0x2ea   : > { %2361 = vmatmul.msk.bf16.vlgmr.msrb.gmra.mxu1 %vm1088_vm2, %v1309_v50 }
 0x2ef   : > { %v1300_v51 = vpop.f32.mrf.mxu2 }
 0x2f7   : > { %v1302_v52 = vpop.f32.mrf.mxu2 }
 0x2f8   : > { %v1310_v53 = vpack.c.bf16 %v1302_v52, %v1300_v51 }
 0x2fa   : > { %2362 = vmatmul.msk.bf16.gmra.mxu1 %vm1088_vm2, %v1310_v53 }
 0x367   : > { %v1342_v55 = vpop.f32.mrf.mxu1 }
 0x368   : > { %v1343_v56 = vadd.f32 %v2479_v54, %v1342_v55 }
 0x36a   : > { %v1352_v57 = vadd.f32 %v1343_v56, %v2816_v10 }
 0x36c   : > { %v1358_v58 = vsel %vm1088_vm2, %v1352_v57, 0.0 }
 0x36d   : > { %1359 = vadd.xlane.f32.xlu2 %v1358_v58 }
 0x36f   : > { %v1344_v59 = vpop.f32.mrf.mxu1 }
 0x370   : > { %v1345_v60 = vadd.f32 %v2479_v54, %v1344_v59 }
 0x372   : > { %v1353_v61 = vadd.f32 %v1345_v60, %v2818_v11  ;;  %v2507_v11 = vpop.eup %2506 }
 0x373   : > { %v1371_v7 = vmul.f32 32.0, %v2507_v11  ;;  %vm1375_vm6 = vweird.f32 %v2507_v11 }
 0x374   : > { %v1361_v62 = vsel %vm1088_vm2, %v1353_v61, 0.0 }
 0x375   : > { %1362 = vadd.xlane.f32.xlu0 %v1361_v62  ;;  %v1372_v8 = vsub.f32 1.0, %v1371_v7 }
 0x377   : > { %v1347_v63 = vpop.f32.mrf.mxu1  ;;  %v1373_v9 = vmul.f32 %v2507_v11, %v1372_v8 }
 0x378   : > { %v1348_v0 = vadd.f32 %v2479_v54, %v1347_v63  ;;  %v2480_v63 = vld [vmem:[%s3158_s22] ss:$0 sm:$0xff]  ;;  %s3170_s22 = sld [smem:[#allocation23_spill]] }
 0x379   : > { %v1374_v12 = vadd.f32 %v2507_v11, %v1373_v9 }
 0x37a   : > { %v1354_v1 = vadd.f32 %v1348_v0, %v2828_v16 }
 0x37b   : > { %v2888_v13 = vsel %vm1375_vm6, %v2507_v11, %v1374_v12 }
 0x37c   : > { %v1364_v2 = vsel %vm1088_vm2, %v1354_v1, 0.0 }
 0x37d   : > { %1365 = vadd.xlane.f32.xlu1 %v1364_v2 }
 0x37f   : > { %v1349_v3 = vpop.f32.mrf.mxu1 }
 0x380   : > { %v1350_v4 = vadd.f32 %v2479_v54, %v1349_v3  ;;  %v2456_v54 = vld [vmem:[%s2766_s5 + $0x18] sm:$0xff] }
 0x381   : > { %1567 = vmatpush.bf16.msrb.mxu0 %v2456_v54 }
 0x382   : > { %v1355_v10 = vadd.f32 %v1350_v4, %v2830_v17 }
 0x384   : > { %v1367_v5 = vsel %vm1088_vm2, %v1355_v10, 0.0 }
 0x385   : > { %1368 = vadd.xlane.f32.xlu2 %v1367_v5  ;;  %v2481_v5 = vld [vmem:[%s3160_s19] ss:$0 sm:$0xff] }
 0x3e0   : > { %v1360_v16 = vpop.xlane.xlu2 %1359 }
 0x3e1   : > { %v1377_v14 = vmul.f32 %v2888_v13, %v1360_v16 }
 0x3e3   : > { %v1381_v15 = vsub.f32 %v1352_v57, %v1377_v14 }
 0x3e5   : > { %v1385_v18 = vmul.f32 %v1381_v15, %v1381_v15 }
 0x3e7   : > { %v1389_v17 = vsel %vm1088_vm2, %v1385_v18, 0.0 }
 0x3e8   : > { %1390 = vadd.xlane.f32.xlu0 %v1389_v17  ;;  %v1363_v19 = vpop.xlane.xlu0 %1362 }
 0x3e9   : > { %v1378_v20 = vmul.f32 %v2888_v13, %v1363_v19 }
 0x3eb   : > { %v2893_v21 = vsub.f32 %v1353_v61, %v1378_v20 }
 0x3ed   : > { %v1386_v22 = vmul.f32 %v2893_v21, %v2893_v21 }
 0x3ef   : > { %v1392_v23 = vsel %vm1088_vm2, %v1386_v22, 0.0 }
 0x3f0   : > { %v1366_v24 = vpop.xlane.xlu1 %1365  ;;  %1393 = vadd.xlane.f32.xlu1 %v1392_v23 }
 0x3f1   : > { %v1379_v25 = vmul.f32 %v2888_v13, %v1366_v24 }
 0x3f3   : > { %v2899_v26 = vsub.f32 %v1354_v1, %v1379_v25 }
 0x3f5   : > { %v1387_v27 = vmul.f32 %v2899_v26, %v2899_v26 }
 0x3f7   : > { %v1395_v28 = vsel %vm1088_vm2, %v1387_v27, 0.0 }
 0x3f8   : > { %v1369_v29 = vpop.xlane.xlu2 %1368  ;;  %1396 = vadd.xlane.f32.xlu2 %v1395_v28 }
 0x3f9   : > { %v1380_v30 = vmul.f32 %v2888_v13, %v1369_v29 }
 0x3fb   : > { %v2905_v31 = vsub.f32 %v1355_v10, %v1380_v30 }
 0x3fd   : > { %v1388_v32 = vmul.f32 %v2905_v31, %v2905_v31 }
 0x3ff   : > { %v1398_v33 = vsel %vm1088_vm2, %v1388_v32, 0.0  ;;  %v2455_v32 = vld [vmem:[%s2766_s5 + $0x10] sm:$0xff] }
 0x400   : > { %1399 = vadd.xlane.f32.xlu0 %v1398_v33  ;;  %1568 = vmatpush.bf16.msrb.mxu0 %v2455_v32  ;;  %v2454_v33 = vld [vmem:[%s2766_s5 + $0x8] sm:$0xff] }
 0x404   : > { %1569 = vmatpush.bf16.msrb.mxu0 %v2454_v33 }
 0x45b   : > { %v1391_v35 = vpop.xlane.xlu0 %1390 }
 0x45c   : > { %v1401_v36 = vmul.f32 %v1391_v35, %v2888_v13  ;;  %v2482_v35 = vld [vmem:[%s3161_s21] ss:$0 sm:$0xff] }
 0x45e   : > { %v1405_v38 = vadd.f32 1e-05, %v1401_v36 }
 0x460   : > { %2508 = vrsqrt.f32 %v1405_v38  ;;  %vm1415_vm8 = vweird.f32 %v1405_v38 }
 0x463   : > { %v1394_v39 = vpop.xlane.xlu1 %1393 }
 0x464   : > { %v1402_v40 = vmul.f32 %v1394_v39, %v2888_v13 }
 0x466   : > { %v2509_v41 = vpop.eup %2508  ;;  %v1406_v42 = vadd.f32 1e-05, %v1402_v40 }
 0x467   : > { %v1410_v43 = vmul.f32 %v2509_v41, %v1405_v38  ;;  %vm1416_vm7 = vweird.f32 %v2509_v41 }
 0x468   : > { %2510 = vrsqrt.f32 %v1406_v42  ;;  %vm1417_vm9 = vmor %vm1415_vm8, %vm1416_vm7  ;;  %vm1425_vm11 = vweird.f32 %v1406_v42 }
 0x469   : > { %v1411_v44 = vmul.f32 %v2509_v41, %v1410_v43 }
 0x46b   : > { %v1412_v45 = vmul.f32 0.5, %v1411_v44  ;;  %v1397_v46 = vpop.xlane.xlu2 %1396 }
 0x46c   : > { %v1403_v47 = vmul.f32 %v1397_v46, %v2888_v13 }
 0x46d   : > { %v1413_v48 = vsub.f32 1.5, %v1412_v45 }
 0x46e   : > { %v2511_v49 = vpop.eup %2510  ;;  %v1407_v50 = vadd.f32 1e-05, %v1403_v47 }
 0x46f   : > { %v1414_v51 = vmul.f32 %v2509_v41, %v1413_v48  ;;  %v1420_v52 = vmul.f32 %v2511_v49, %v1406_v42  ;;  %vm1426_vm10 = vweird.f32 %v2511_v49  ;;  %v2483_v48 = vld [vmem:[%s3162_s6] ss:$0 sm:$0xff] }
 0x470   : > { %2512 = vrsqrt.f32 %v1407_v50  ;;  %vm1427_vm12 = vmor %vm1425_vm11, %vm1426_vm10  ;;  %vm1435_vm14 = vweird.f32 %v1407_v50 }
 0x471   : > { %v1421_v53 = vmul.f32 %v2511_v49, %v1420_v52  ;;  %v1418_v55 = vsel %vm1417_vm9, %v2509_v41, %v1414_v51 }
 0x472   : > { %v1449_v61 = vmul.f32 %v1418_v55, %v1381_v15 }
 0x473   : > { %v1422_v56 = vmul.f32 0.5, %v1421_v53  ;;  %v1400_v57 = vpop.xlane.xlu0 %1399 }
 0x474   : > { %v1404_v58 = vmul.f32 %v1400_v57, %v2888_v13  ;;  %v1456_v10 = vmul.f32 %v2480_v63, %v1449_v61 }
 0x475   : > { %v1423_v59 = vsub.f32 1.5, %v1422_v56 }
 0x476   : > { %v2513_v60 = vpop.eup %2512  ;;  %v1408_v62 = vadd.f32 1e-05, %v1404_v58  ;;  %v1463_v9 = vadd.f32 %v2481_v5, %v1456_v10 }
 0x477   : > { %v1424_v0 = vmul.f32 %v2511_v49, %v1423_v59  ;;  %v1430_v1 = vmul.f32 %v2513_v60, %v1407_v50  ;;  %vm1436_vm13 = vweird.f32 %v2513_v60 }
 0x478   : > { %2514 = vrsqrt.f32 %v1408_v62  ;;  %vm1437_vm15 = vmor %vm1435_vm14, %vm1436_vm13  ;;  %vm1445_vm1 = vweird.f32 %v1408_v62 }
 0x479   : > { %v1428_v2 = vsel %vm1427_vm12, %v2511_v49, %v1424_v0  ;;  %v1431_v3 = vmul.f32 %v2513_v60, %v1430_v1 }
 0x47a   : > { %v1450_v4 = vmul.f32 %v1428_v2, %v2893_v21 }
 0x47b   : > { %v1432_v6 = vmul.f32 0.5, %v1431_v3 }
 0x47c   : > { %v1457_v11 = vmul.f32 %v2480_v63, %v1450_v4 }
 0x47d   : > { %v1433_v7 = vsub.f32 1.5, %v1432_v6 }
 0x47e   : > { %v2515_v8 = vpop.eup %2514  ;;  %v1464_v12 = vadd.f32 %v2481_v5, %v1457_v11 }
 0x47f   : > { %v1434_v16 = vmul.f32 %v2513_v60, %v1433_v7  ;;  %v1440_v14 = vmul.f32 %v2515_v8, %v1408_v62  ;;  %vm1446_vm0 = vweird.f32 %v2515_v8 }
 0x480   : > { %v1471_v15 = vpack.c.bf16 %v1464_v12, %v1463_v9  ;;  %vm1447_vm3 = vmor %vm1445_vm1, %vm1446_vm0  ;;  %vm1741_vm1 = vcmask 64512  }
 0x481   : > { %v1441_v18 = vmul.f32 %v2515_v8, %v1440_v14  ;;  %v1438_v17 = vsel %vm1437_vm15, %v2513_v60, %v1434_v16 }
 0x482   : > { %2371 = vmatmul.msk.bf16.vlgmr.msrb.gmra.mxu3 %vm1088_vm2, %v1471_v15  ;;  %v1451_v21 = vmul.f32 %v1438_v17, %v2899_v26  ;;  %v2453_v26 = vld [vmem:[%s2766_s5] sm:$0xff] }
 0x483   : > { %v1442_v19 = vmul.f32 0.5, %v1441_v18  ;;  %1570 = vmatpush.bf16.msrb.mxu0 %v2453_v26 }
 0x484   : > { %v1458_v25 = vmul.f32 %v2480_v63, %v1451_v21 }
 0x485   : > { %v1443_v20 = vsub.f32 1.5, %v1442_v19 }
 0x486   : > { %v1465_v28 = vadd.f32 %v2481_v5, %v1458_v25 }
 0x487   : > { %v1444_v22 = vmul.f32 %v2515_v8, %v1443_v20 }
 0x489   : > { %v1448_v23 = vsel %vm1447_vm3, %v2515_v8, %v1444_v22  ;;  %v2460_v22 = vld [vmem:[%s3163_s23 + $0x8] sm:$0xff] }
 0x48a   : > { %v1452_v24 = vmul.f32 %v1448_v23, %v2905_v31  ;;  %v2458_v23 = vld [vmem:[%s3164_s27 + $0x8] sm:$0xff]  ;;  %1772 = vmatpush.bf16.msra.mxu1 %v2460_v22 }
 0x48b   : > { %1728 = vmatpush.bf16.msrb.mxu2 %v2458_v23  ;;  %v2464_v22 = vld [vmem:[%s3167_s17 + $0x8] sm:$0xff]  ;;  %v2486_v23 = vld [vmem:[%s3168_s26] ss:$0 sm:$0xff] }
 0x48c   : > { %v1459_v27 = vmul.f32 %v2480_v63, %v1452_v24  ;;  %1874 = vmatpush.bf16.msra.mxu0 %v2464_v22 }
 0x48e   : > { %v1466_v29 = vadd.f32 %v2481_v5, %v1459_v27  ;;  %v2459_v27 = vld [vmem:[%s3163_s23] sm:$0xff] }
 0x48f   : > { %1773 = vmatpush.bf16.msra.mxu1 %v2459_v27 }
 0x490   : > { %v1472_v30 = vpack.c.bf16 %v1466_v29, %v1465_v28 }
 0x492   : > { %2372 = vmatmul.msk.bf16.gmra.mxu3 %vm1088_vm2, %v1472_v30 }
 0x505   : > { %v1504_v34 = vpop.f32.mrf.mxu3 }
 0x506   : > { %v1505_v31 = vadd.f32 %v2482_v35, %v1504_v34 }
 0x508   : > { %v1514_v38 = vmax.f32 %v1505_v31, 0.0 }
 0x50d   : > { %v1506_v36 = vpop.f32.mrf.mxu3 }
 0x50e   : > { %v1507_v37 = vadd.f32 %v2482_v35, %v1506_v36 }
 0x510   : > { %v1515_v39 = vmax.f32 %v1507_v37, 0.0 }
 0x512   : > { %v1526_v40 = vpack.c.bf16 %v1515_v39, %v1514_v38 }
 0x514   : > { %2389 = vmatmul.msk.bf16.vlgmr.msrb.gmra.mxu0 %vm1556_vm4, %v1526_v40 }
 0x515   : > { %v1509_v41 = vpop.f32.mrf.mxu3 }
 0x516   : > { %v1510_v42 = vadd.f32 %v2482_v35, %v1509_v41 }
 0x518   : > { %v1516_v45 = vmax.f32 %v1510_v42, 0.0 }
 0x51d   : > { %v1511_v43 = vpop.f32.mrf.mxu3 }
 0x51e   : > { %v1512_v44 = vadd.f32 %v2482_v35, %v1511_v43  ;;  %v2484_v43 = vld [vmem:[%s1014_s1] ss:$0 sm:$0xff] }
 0x520   : > { %v1517_v46 = vmax.f32 %v1512_v44, 0.0 }
 0x522   : > { %v1527_v47 = vpack.c.bf16 %v1517_v46, %v1516_v45  ;;  %v2485_v46 = vld [vmem:[%s1017_s20] ss:$0 sm:$0xff] }
 0x524   : > { %2390 = vmatmul.msk.bf16.gmra.mxu0 %vm1556_vm4, %v1527_v47 }
 0x591   : > { %v1572_v49 = vpop.f32.mrf.mxu0 }
 0x592   : > { %v1573_v50 = vadd.f32 %v2483_v48, %v1572_v49 }
 0x594   : > { %v1582_v51 = vadd.f32 %v1573_v50, %v1463_v9 }
 0x596   : > { %v1588_v52 = vsel %vm1088_vm2, %v1582_v51, 0.0 }
 0x597   : > { %1589 = vadd.xlane.f32.xlu1 %v1588_v52 }
 0x599   : > { %v1574_v53 = vpop.f32.mrf.mxu0 }
 0x59a   : > { %v1575_v54 = vadd.f32 %v2483_v48, %v1574_v53  ;;  %v2461_v53 = vld [vmem:[%s3166_s10] sm:$0xff] }
 0x59c   : > { %v1583_v55 = vadd.f32 %v1575_v54, %v1464_v12 }
 0x59e   : > { %v1591_v56 = vsel %vm1088_vm2, %v1583_v55, 0.0 }
 0x59f   : > { %1592 = vadd.xlane.f32.xlu2 %v1591_v56 }
 0x5a1   : > { %v1577_v57 = vpop.f32.mrf.mxu0 }
 0x5a2   : > { %v1578_v58 = vadd.f32 %v2483_v48, %v1577_v57 }
 0x5a4   : > { %v1584_v59 = vadd.f32 %v1578_v58, %v1465_v28  ;;  %v2457_v28 = vld [vmem:[%s3165_s18] sm:$0xff] }
 0x5a5   : > { %1729 = vmatpush.bf16.msrb.mxu2 %v2457_v28 }
 0x5a6   : > { %v1594_v60 = vsel %vm1088_vm2, %v1584_v59, 0.0 }
 0x5a7   : > { %1595 = vadd.xlane.f32.xlu0 %v1594_v60 }
 0x5a9   : > { %v1579_v61 = vpop.f32.mrf.mxu0 }
 0x5aa   : > { %v1580_v62 = vadd.f32 %v2483_v48, %v1579_v61  ;;  %v2462_v48 = vld [vmem:[%s3166_s10 + $0x8] sm:$0xff] }
 0x5ab   : > { %1823 = vmatpush.bf16.msra.mxu3 %v2462_v48 }
 0x5ac   : > { %v1585_v63 = vadd.f32 %v1580_v62, %v1466_v29 }
 0x5ae   : > { %v1597_v0 = vsel %vm1088_vm2, %v1585_v63, 0.0 }
 0x5af   : > { %1598 = vadd.xlane.f32.xlu1 %v1597_v0  ;;  %1824 = vmatpush.bf16.msra.mxu3 %v2461_v53 }
 0x60a   : > { %v1590_v1 = vpop.xlane.xlu1 %1589 }
 0x60b   : > { %v1600_v2 = vmul.f32 %v1590_v1, %v2888_v13 }
 0x60d   : > { %v1604_v3 = vsub.f32 %v1582_v51, %v1600_v2 }
 0x60f   : > { %v1608_v4 = vmul.f32 %v1604_v3, %v1604_v3 }
 0x611   : > { %v1612_v10 = vsel %vm1088_vm2, %v1608_v4, 0.0 }
 0x612   : > { %v1593_v5 = vpop.xlane.xlu2 %1592  ;;  %1613 = vadd.xlane.f32.xlu2 %v1612_v10 }
 0x613   : > { %v1601_v6 = vmul.f32 %v1593_v5, %v2888_v13 }
 0x615   : > { %v2952_v11 = vsub.f32 %v1583_v55, %v1601_v6 }
 0x617   : > { %v1609_v7 = vmul.f32 %v2952_v11, %v2952_v11 }
 0x619   : > { %v1615_v8 = vsel %vm1088_vm2, %v1609_v7, 0.0 }
 0x61a   : > { %1616 = vadd.xlane.f32.xlu0 %v1615_v8  ;;  %v1596_v9 = vpop.xlane.xlu0 %1595 }
 0x61b   : > { %v1602_v12 = vmul.f32 %v1596_v9, %v2888_v13 }
 0x61d   : > { %v2958_v16 = vsub.f32 %v1584_v59, %v1602_v12 }
 0x61f   : > { %v1610_v14 = vmul.f32 %v2958_v16, %v2958_v16 }
 0x621   : > { %v1618_v15 = vsel %vm1088_vm2, %v1610_v14, 0.0 }
 0x622   : > { %v1599_v18 = vpop.xlane.xlu1 %1598  ;;  %1619 = vadd.xlane.f32.xlu1 %v1618_v15 }
 0x623   : > { %v1603_v17 = vmul.f32 %v1599_v18, %v2888_v13 }
 0x625   : > { %v2964_v19 = vsub.f32 %v1585_v63, %v1603_v17 }
 0x627   : > { %v1611_v20 = vmul.f32 %v2964_v19, %v2964_v19 }
 0x629   : > { %v1621_v21 = vsel %vm1088_vm2, %v1611_v20, 0.0 }
 0x62a   : > { %1622 = vadd.xlane.f32.xlu2 %v1621_v21 }
 0x685   : > { %v1614_v24 = vpop.xlane.xlu2 %1613 }
 0x686   : > { %v1624_v25 = vmul.f32 %v1614_v24, %v2888_v13  ;;  %v2463_v24 = vld [vmem:[%s3167_s17] sm:$0xff] }
 0x687   : > { %1875 = vmatpush.bf16.msra.mxu0 %v2463_v24 }
 0x688   : > { %v1628_v29 = vadd.f32 1e-05, %v1624_v25 }
 0x68a   : > { %2516 = vrsqrt.f32 %v1628_v29  ;;  %vm1638_vm6 = vweird.f32 %v1628_v29 }
 0x68d   : > { %v1617_v30 = vpop.xlane.xlu0 %1616 }
 0x68e   : > { %v1625_v32 = vmul.f32 %v1617_v30, %v2888_v13 }
 0x690   : > { %v2517_v33 = vpop.eup %2516  ;;  %v1629_v26 = vadd.f32 1e-05, %v1625_v32 }
 0x691   : > { %v1633_v34 = vmul.f32 %v2517_v33, %v1628_v29  ;;  %vm1639_vm5 = vweird.f32 %v2517_v33 }
 0x692   : > { %2518 = vrsqrt.f32 %v1629_v26  ;;  %vm1640_vm7 = vmor %vm1638_vm6, %vm1639_vm5  ;;  %vm1648_vm9 = vweird.f32 %v1629_v26 }
 0x693   : > { %v1634_v35 = vmul.f32 %v2517_v33, %v1633_v34 }
 0x695   : > { %v1635_v31 = vmul.f32 0.5, %v1634_v35  ;;  %v1620_v36 = vpop.xlane.xlu1 %1619 }
 0x696   : > { %v1626_v37 = vmul.f32 %v1620_v36, %v2888_v13 }
 0x697   : > { %v1636_v38 = vsub.f32 1.5, %v1635_v31 }
 0x698   : > { %v2519_v39 = vpop.eup %2518  ;;  %v1630_v40 = vadd.f32 1e-05, %v1626_v37 }
 0x699   : > { %v1637_v41 = vmul.f32 %v2517_v33, %v1636_v38  ;;  %v1643_v42 = vmul.f32 %v2519_v39, %v1629_v26  ;;  %vm1649_vm8 = vweird.f32 %v2519_v39 }
 0x69a   : > { %2520 = vrsqrt.f32 %v1630_v40  ;;  %vm1650_vm10 = vmor %vm1648_vm9, %vm1649_vm8  ;;  %vm1658_vm12 = vweird.f32 %v1630_v40 }
 0x69b   : > { %v1641_v44 = vsel %vm1640_vm7, %v2517_v33, %v1637_v41  ;;  %v1644_v45 = vmul.f32 %v2519_v39, %v1643_v42 }
 0x69c   : > { %v1672_v47 = vmul.f32 %v1641_v44, %v1604_v3 }
 0x69d   : > { %v1645_v49 = vmul.f32 0.5, %v1644_v45  ;;  %v1623_v50 = vpop.xlane.xlu2 %1622 }
 0x69e   : > { %v1679_v51 = vmul.f32 %v2484_v43, %v1672_v47  ;;  %v1627_v52 = vmul.f32 %v1623_v50, %v2888_v13  ;;  %v2488_v47 = vld [vmem:[%s3170_s22] ss:$0 sm:$0xff] }
 0x69f   : > { %v1646_v54 = vsub.f32 1.5, %v1645_v49 }
 0x6a0   : > { %v2521_v55 = vpop.eup %2520  ;;  %v1686_v56 = vadd.f32 %v2485_v46, %v1679_v51  ;;  %v1631_v57 = vadd.f32 1e-05, %v1627_v52 }
 0x6a1   : > { %v1647_v58 = vmul.f32 %v2519_v39, %v1646_v54  ;;  %v1653_v59 = vmul.f32 %v2521_v55, %v1630_v40  ;;  %vm1659_vm11 = vweird.f32 %v2521_v55 }
 0x6a2   : > { %1690 = vst.msk [vmem:[#allocation2] sm:$0xff] %vm1088_vm2, %v1686_v56  ;;  %2522 = vrsqrt.f32 %v1631_v57  ;;  %vm1660_vm13 = vmor %vm1658_vm12, %vm1659_vm11  ;;  %vm1668_vm15 = vweird.f32 %v1631_v57 }
 0x6a3   : > { %v1651_v60 = vsel %vm1650_vm10, %v2519_v39, %v1647_v58  ;;  %v1654_v13 = vmul.f32 %v2521_v55, %v1653_v59 }
 0x6a4   : > { %v1673_v61 = vmul.f32 %v1651_v60, %v2952_v11 }
 0x6a5   : > { %v1655_v62 = vmul.f32 0.5, %v1654_v13  ;;  %v1887_v13 = vld [vmem:[#allocation3] sm:$0xff] }
 0x6a6   : > { %v1680_v63 = vmul.f32 %v2484_v43, %v1673_v61  ;;  %v1891_v61 = vmax.f32 %v1887_v13, 0.0 }
 0x6a7   : > { %v1656_v0 = vsub.f32 1.5, %v1655_v62 }
 0x6a8   : > { %v2523_v1 = vpop.eup %2522  ;;  %v1687_v2 = vadd.f32 %v2485_v46, %v1680_v63  ;;  %v1895_v62 = vmin.f32 %v1891_v61, 1.0  ;;  %v1888_v63 = vld [vmem:[#allocation3 + $0x8] sm:$0xff] }
 0x6a9   : > { %v1657_v3 = vmul.f32 %v2521_v55, %v1656_v0  ;;  %v1663_v4 = vmul.f32 %v2523_v1, %v1631_v57  ;;  %vm1669_vm14 = vweird.f32 %v2523_v1 }
 0x6aa   : > { %1691 = vst.msk [vmem:[#allocation2 + $0x8] sm:$0xff] %vm1088_vm2, %v1687_v2  ;;  %v1698_v10 = vpack.c.bf16 %v1687_v2, %v1686_v56  ;;  %vm1670_vm0 = vmor %vm1668_vm15, %vm1669_vm14  ;;  %v1903_v0 = vsub.f32 1.0, %v1895_v62 }
 0x6ab   : > { %v1661_v5 = vsel %vm1660_vm13, %v2521_v55, %v1657_v3  ;;  %v1664_v6 = vmul.f32 %v2523_v1, %v1663_v4  ;;  %v1889_v4 = vld [vmem:[#allocation3 + $0x10] sm:$0xff] }
 0x6ac   : > { %v1674_v7 = vmul.f32 %v1661_v5, %v2958_v16  ;;  %2399 = vmatmul.msk.bf16.vlgmr.msrb.gmra.mxu2 %vm1088_vm2, %v1698_v10  ;;  %2409 = vmatmul.msk.bf16.vlgmr.msra.gmra.mxu1 %vm1088_vm2, %v1698_v10  ;;  %v1907_v2 = vmax.f32 %v1903_v0, 0.001  ;;  %v1893_v5 = vmax.f32 %v1889_v4, 0.0 }
 0x6ad   : > { %v1665_v11 = vmul.f32 0.5, %v1664_v6 }
 0x6ae   : > { %v1681_v8 = vmul.f32 %v2484_v43, %v1674_v7  ;;  %2524 = vrcp.f32 %v1907_v2  ;;  %v3042_v7 = vmin.f32 %v1893_v5, 1.0 }
 0x6af   : > { %v1666_v9 = vsub.f32 1.5, %v1665_v11  ;;  %v1890_v11 = vld [vmem:[#allocation3 + $0x18] sm:$0xff] }
 0x6b0   : > { %v1688_v12 = vadd.f32 %v2485_v46, %v1681_v8 }
 0x6b1   : > { %v1667_v14 = vmul.f32 %v2523_v1, %v1666_v9  ;;  %v1905_v9 = vsub.f32 1.0, %v3042_v7 }
 0x6b2   : > { %1692 = vst.msk [vmem:[#allocation2 + $0x10] sm:$0xff] %vm1088_vm2, %v1688_v12 }
 0x6b3   : > { %v1671_v15 = vsel %vm1670_vm0, %v2523_v1, %v1667_v14  ;;  %v1892_v1 = vmax.f32 %v1888_v63, 0.0 }
 0x6b4   : > { %v1675_v18 = vmul.f32 %v1671_v15, %v2964_v19  ;;  %v2487_v19 = vld [vmem:[%s3169_s25] ss:$0 sm:$0xff]  ;;  %v2525_v8 = vpop.eup %2524  ;;  %v1909_v15 = vmax.f32 %v1905_v9, 0.001 }
 0x6b5   : > { %v3039_v3 = vmin.f32 %v1892_v1, 1.0  ;;  %v1912_v14 = vmul.f32 %v2525_v8, %v1907_v2  ;;  %vm1917_vm3 = vweird.f32 %v2525_v8 }
 0x6b6   : > { %v1682_v17 = vmul.f32 %v2484_v43, %v1675_v18  ;;  %vm1946_vm10 = vweird.f32 %v1909_v15 }
 0x6b7   : > { %v1904_v10 = vsub.f32 1.0, %v3039_v3 }
 0x6b8   : > { %v1689_v20 = vadd.f32 %v2485_v46, %v1682_v17  ;;  %v1913_v17 = vsub.f32 1.0, %v1912_v14 }
 0x6b9   : > { %v1908_v6 = vmax.f32 %v1904_v10, 0.001 }
 0x6ba   : > { %1693 = vst.msk [vmem:[#allocation2 + $0x18] sm:$0xff] %vm1088_vm2, %v1689_v20  ;;  %v1699_v16 = vpack.c.bf16 %v1689_v20, %v1688_v12  ;;  %v1894_v12 = vmax.f32 %v1890_v11, 0.0 }
 0x6bb   : > { %2526 = vrcp.f32 %v1908_v6  ;;  %vm1931_vm6 = vweird.f32 %v1908_v6 }
 0x6bc   : > { %2400 = vmatmul.msk.bf16.gmra.mxu2 %vm1088_vm2, %v1699_v16  ;;  %2410 = vmatmul.msk.bf16.gmra.mxu1 %vm1088_vm2, %v1699_v16  ;;  %v3045_v18 = vmin.f32 %v1894_v12, 1.0  ;;  %2528 = vrcp.f32 %v1909_v15 }
 0x6be   : > { %v1906_v16 = vsub.f32 1.0, %v3045_v18  ;;  %v1902_v10 = vmax.f32 %v3045_v18, 0.001 }
 0x6c1   : > { %v2527_v20 = vpop.eup %2526 }
 0x6c2   : > { %v1927_v22 = vmul.f32 %v2527_v20, %v1908_v6  ;;  %vm1932_vm7 = vweird.f32 %v2527_v20 }
 0x6c3   : > { %vm1933_vm8 = vmor %vm1931_vm6, %vm1932_vm7 }
 0x729   : > { %v1775_v21 = vpop.f32.mrf.mxu1 }
 0x72a   : > { %v1776_v27 = vadd.f32 %v2486_v23, %v1775_v21  ;;  %v1914_v21 = vmul.f32 %v2525_v8, %v1913_v17 }
 0x72c   : > { %v1785_v32 = vmax.f32 %v1776_v27, 0.0  ;;  %v1915_v24 = vadd.f32 %v2525_v8, %v1914_v21  ;;  %v1928_v27 = vsub.f32 1.0, %v1927_v22 }
 0x72f   : > { %v1731_v25 = vpop.f32.mrf.mxu2 }
 0x730   : > { %v1732_v28 = vadd.f32 %v2487_v19, %v1731_v25  ;;  %v1920_v25 = vand.u32 2147483647, %v1907_v2 }
 0x731   : > { %v1777_v29 = vpop.f32.mrf.mxu1 }
 0x732   : > { %1742 = vst.msk [vmem:[%s2783_s0] sm:$0xff] %vm1741_vm1, %v1732_v28  ;;  %v1778_v30 = vadd.f32 %v2486_v23, %v1777_v29  ;;  %v2529_v28 = vpop.eup %2528  ;;  %vm1921_vm5 = vcmp.eq.f32.partialorder %v1920_v25, 8.507059e+37 }
 0x733   : > { %vm1947_vm11 = vweird.f32 %v2529_v28 }
 0x734   : > { %v1786_v33 = vmax.f32 %v1778_v30, 0.0  ;;  %vm1948_vm12 = vmor %vm1946_vm10, %vm1947_vm11 }
 0x736   : > { %v1793_v26 = vpack.c.bf16 %v1786_v33, %v1785_v32  ;;  %v1929_v32 = vmul.f32 %v2527_v20, %v1928_v27  ;;  %v1942_v33 = vmul.f32 %v2529_v28, %v1909_v15 }
 0x737   : > { %v1733_v34 = vpop.f32.mrf.mxu2 }
 0x738   : > { %v1734_v35 = vadd.f32 %v2487_v19, %v1733_v34  ;;  %2419 = vmatmul.msk.bf16.vlgmr.msra.gmra.mxu3 %vm1088_vm2, %v1793_v26  ;;  %v1899_v26 = vmax.f32 %v1895_v62, 0.001 }
 0x739   : > { %v1780_v31 = vpop.f32.mrf.mxu1 }
 0x73a   : > { %1743 = vst.msk [vmem:[%s2783_s0 + $0x8] sm:$0xff] %vm1741_vm1, %v1734_v35  ;;  %v1781_v37 = vadd.f32 %v2486_v23, %v1780_v31  ;;  %v1937_v35 = vand.u32 2147483648, %v1908_v6  ;;  %v1930_v31 = vadd.f32 %v2527_v20, %v1929_v32 }
 0x73c   : > { %v1787_v41 = vmax.f32 %v1781_v37, 0.0  ;;  %v1943_v37 = vsub.f32 1.0, %v1942_v33 }
 0x73f   : > { %v1736_v36 = vpop.f32.mrf.mxu2 }
 0x740   : > { %v1737_v38 = vadd.f32 %v2487_v19, %v1736_v36  ;;  %v1935_v36 = vand.u32 2147483647, %v1908_v6 }
 0x741   : > { %v1782_v39 = vpop.f32.mrf.mxu1 }
 0x742   : > { %1744 = vst.msk [vmem:[%s2783_s0 + $0x10] sm:$0xff] %vm1741_vm1, %v1737_v38  ;;  %v1783_v40 = vadd.f32 %v2486_v23, %v1782_v39  ;;  %v1922_v23 = vand.u32 2147483648, %v1907_v2  ;;  %vm1936_vm9 = vcmp.eq.f32.partialorder %v1935_v36, 8.507059e+37 }
 0x744   : > { %v1788_v42 = vmax.f32 %v1783_v40, 0.0  ;;  %v1923_v29 = vor.u32 1.1754944e-38, %v1922_v23  ;;  %v1938_v40 = vor.u32 1.1754944e-38, %v1937_v35 }
 0x746   : > { %v1794_v43 = vpack.c.bf16 %v1788_v42, %v1787_v41  ;;  %v1934_v41 = vsel %vm1933_vm8, %v2527_v20, %v1930_v31  ;;  %v1944_v42 = vmul.f32 %v2529_v28, %v1943_v37 }
 0x747   : > { %v1738_v44 = vpop.f32.mrf.mxu2 }
 0x748   : > { %v1739_v45 = vadd.f32 %v2487_v19, %v1738_v44  ;;  %2420 = vmatmul.msk.bf16.gmra.mxu3 %vm1088_vm2, %v1794_v43  ;;  %v3048_v19 = vmax.f32 %v1906_v16, 0.001  ;;  %v1900_v44 = vmax.f32 %v3039_v3, 0.001 }
 0x74a   : > { %1745 = vst.msk [vmem:[%s2783_s0 + $0x18] sm:$0xff] %vm1741_vm1, %v1739_v45  ;;  %2530 = vrcp.f32 %v3048_v19  ;;  %v1939_v45 = vsel %vm1936_vm9, %v1938_v40, %v1934_v41  ;;  %vm1961_vm14 = vweird.f32 %v3048_v19  ;;  %v1965_v61 = vand.u32 2147483647, %v3048_v19 }
 0x74c   : > { %vm1966_vm1 = vcmp.eq.f32.partialorder %v1965_v61, 8.507059e+37 }
 0x750   : > { %v2531_v38 = vpop.eup %2530 }
 0x751   : > { %v1957_v43 = vmul.f32 %v2531_v38, %v3048_v19  ;;  %vm1962_vm15 = vweird.f32 %v2531_v38 }
 0x752   : > { %vm1963_vm0 = vmor %vm1961_vm14, %vm1962_vm15 }
 0x7bb   : > { %v1826_v46 = vpop.f32.mrf.mxu3 }
 0x7bc   : > { %v1827_v48 = vadd.f32 %v2488_v47, %v1826_v46  ;;  %v1952_v46 = vand.u32 2147483648, %v1909_v15 }
 0x7be   : > { %v1836_v51 = vmax.f32 %v1827_v48, 0.0  ;;  %v1950_v48 = vand.u32 2147483647, %v1909_v15 }
 0x7c0   : > { %vm1951_vm13 = vcmp.eq.f32.partialorder %v1950_v48, 8.507059e+37 }
 0x7c3   : > { %v1828_v49 = vpop.f32.mrf.mxu3 }
 0x7c4   : > { %v1829_v50 = vadd.f32 %v2488_v47, %v1828_v49  ;;  %v1958_v49 = vsub.f32 1.0, %v1957_v43 }
 0x7c6   : > { %v1837_v52 = vmax.f32 %v1829_v50, 0.0  ;;  %v1940_v50 = vmul.f32 %v1939_v45, %v1900_v44 }
 0x7c8   : > { %v1844_v53 = vpack.c.bf16 %v1837_v52, %v1836_v51  ;;  %v1953_v51 = vor.u32 1.1754944e-38, %v1952_v46 }
 0x7ca   : > { %2429 = vmatmul.msk.bf16.vlgmr.msra.gmra.mxu0 %vm1088_vm2, %v1844_v53 }
 0x7cb   : > { %v1831_v54 = vpop.f32.mrf.mxu3 }
 0x7cc   : > { %v1832_v55 = vadd.f32 %v2488_v47, %v1831_v54  ;;  %v1959_v54 = vmul.f32 %v2531_v38, %v1958_v49 }
 0x7ce   : > { %v1838_v58 = vmax.f32 %v1832_v55, 0.0  ;;  %v2489_v55 = vld [vmem:[%s1020_s28] ss:$0 sm:$0xff]  ;;  %v1960_v13 = vadd.f32 %v2531_v38, %v1959_v54 }
 0x7d0   : > { %v1964_v3 = vsel %vm1963_vm0, %v2531_v38, %v1960_v13 }
 0x7d3   : > { %v1833_v56 = vpop.f32.mrf.mxu3 }
 0x7d4   : > { %v1834_v57 = vadd.f32 %v2488_v47, %v1833_v56  ;;  %v1945_v47 = vadd.f32 %v2529_v28, %v1944_v42  ;;  %v1901_v56 = vmax.f32 %v3042_v7, 0.001 }
 0x7d6   : > { %v1839_v59 = vmax.f32 %v1834_v57, 0.0  ;;  %v1949_v53 = vsel %vm1948_vm12, %v2529_v28, %v1945_v47 }
 0x7d8   : > { %v1845_v60 = vpack.c.bf16 %v1839_v59, %v1838_v58  ;;  %v1954_v58 = vsel %vm1951_vm13, %v1953_v51, %v1949_v53  ;;  %v1967_v59 = vand.u32 2147483648, %v3048_v19 }
 0x7d9   : > { %v1955_v63 = vmul.f32 %v1954_v58, %v1901_v56 }
 0x7da   : > { %2430 = vmatmul.msk.bf16.gmra.mxu0 %vm1088_vm2, %v1845_v60  ;;  %vm1916_vm2 = vweird.f32 %v1907_v2  ;;  %v1968_v1 = vor.u32 1.1754944e-38, %v1967_v59 }
 0x7db   : > { %vm1918_vm4 = vmor %vm1916_vm2, %vm1917_vm3 }
 0x7dc   : > { %v1919_v30 = vsel %vm1918_vm4, %v2525_v8, %v1915_v24  ;;  %v1969_v6 = vsel %vm1966_vm1, %v1968_v1, %v1964_v3 }
 0x7dd   : > { %v1924_v34 = vsel %vm1921_vm5, %v1923_v29, %v1919_v30  ;;  %v1970_v8 = vmul.f32 %v1969_v6, %v1902_v10  ;;  %vm2059_vm5 = vcmask 31744  }
 0x7de   : > { %v1925_v39 = vmul.f32 %v1924_v34, %v1899_v26 }
 0x7e0   : > { %2532 = vlog2.f32 %v1925_v39 }
 0x7e1   : > { %2534 = vlog2.f32 %v1940_v50 }
 0x7e2   : > { %2536 = vlog2.f32 %v1955_v63 }
 0x7e6   : > { %v2533_v52 = vpop.eup %2532 }
 0x7e7   : > { %v1972_v57 = vmul.f32 0.6931472, %v2533_v52  ;;  %v2535_v2 = vpop.eup %2534 }
 0x7e8   : > { %v1974_v5 = vmul.f32 0.6931472, %v2535_v2  ;;  %v2537_v12 = vpop.eup %2536 }
 0x7e9   : > { %v1976_v20 = vmul.f32 0.6931472, %v2537_v12 }
 0x847   : > { %v1877_v60 = vpop.f32.mrf.mxu0 }
 0x848   : > { %v1878_v62 = vadd.f32 %v2489_v55, %v1877_v60 }
 0x84a   : > { %v1979_v0 = vadd.f32 %v1972_v57, %v1878_v62 }
 0x84c   : > { %v2431_v4 = vmul.f32 -1.442695, %v1979_v0 }
 0x84e   : > { %2538 = vpow2.f32 %v2431_v4 }
 0x84f   : > { %v1879_v7 = vpop.f32.mrf.mxu0  ;;  %2540 = vlog2.f32 %v1970_v8 }
 0x850   : > { %v1880_v11 = vadd.f32 %v2489_v55, %v1879_v7 }
 0x852   : > { %v1980_v9 = vadd.f32 %v1974_v5, %v1880_v11 }
 0x854   : > { %v2539_v14 = vpop.eup %2538  ;;  %v2432_v15 = vmul.f32 -1.442695, %v1980_v9 }
 0x855   : > { %v1995_v17 = vadd.f32 1.0, %v2539_v14  ;;  %v2541_v23 = vpop.eup %2540 }
 0x856   : > { %2542 = vpow2.f32 %v2432_v15  ;;  %v1978_v28 = vmul.f32 0.6931472, %v2541_v23 }
 0x857   : > { %2544 = vrcp.f32 %v1995_v17  ;;  %v1882_v16 = vpop.f32.mrf.mxu0  ;;  %v2010_v33 = vand.u32 2147483648, %v1995_v17  ;;  %v2008_v34 = vand.u32 2147483647, %v1995_v17  ;;  %vm2004_vm3 = vweird.f32 %v1995_v17 }
 0x858   : > { %v1883_v21 = vadd.f32 %v2489_v55, %v1882_v16 }
 0x859   : > { %v2011_v39 = vor.u32 1.1754944e-38, %v2010_v33  ;;  %vm2009_vm6 = vcmp.eq.f32.partialorder %v2008_v34, 8.507059e+37 }
 0x85a   : > { %v1981_v22 = vadd.f32 %v1976_v20, %v1883_v21 }
 0x85c   : > { %v2543_v18 = vpop.eup %2542  ;;  %v2433_v19 = vmul.f32 -1.442695, %v1981_v22 }
 0x85d   : > { %v2545_v24 = vpop.eup %2544  ;;  %v1996_v25 = vadd.f32 1.0, %v2543_v18 }
 0x85e   : > { %v2000_v27 = vmul.f32 %v2545_v24, %v1995_v17  ;;  %2546 = vpow2.f32 %v2433_v19  ;;  %vm2005_vm2 = vweird.f32 %v2545_v24 }
 0x85f   : > { %2548 = vrcp.f32 %v1996_v25  ;;  %v1884_v29 = vpop.f32.mrf.mxu0  ;;  %vm2006_vm4 = vmor %vm2004_vm3, %vm2005_vm2  ;;  %v2025_v45 = vand.u32 2147483648, %v1996_v25  ;;  %v2023_v47 = vand.u32 2147483647, %v1996_v25  ;;  %vm2019_vm8 = vweird.f32 %v1996_v25 }
 0x860   : > { %v2001_v30 = vsub.f32 1.0, %v2000_v27  ;;  %v1885_v32 = vadd.f32 %v2489_v55, %v1884_v29 }
 0x861   : > { %v2026_v51 = vor.u32 1.1754944e-38, %v2025_v45  ;;  %vm2024_vm10 = vcmp.eq.f32.partialorder %v2023_v47, 8.507059e+37 }
 0x862   : > { %v2002_v26 = vmul.f32 %v2545_v24, %v2001_v30  ;;  %v1982_v35 = vadd.f32 %v1978_v28, %v1885_v32 }
 0x864   : > { %v2547_v31 = vpop.eup %2546  ;;  %v2003_v36 = vadd.f32 %v2545_v24, %v2002_v26  ;;  %v2434_v37 = vmul.f32 -1.442695, %v1982_v35 }
 0x865   : > { %v2549_v38 = vpop.eup %2548  ;;  %v1997_v40 = vadd.f32 1.0, %v2547_v31 }
 0x866   : > { %v2007_v41 = vsel %vm2006_vm4, %v2545_v24, %v2003_v36  ;;  %v2015_v42 = vmul.f32 %v2549_v38, %v1996_v25  ;;  %2550 = vpow2.f32 %v2434_v37  ;;  %vm2020_vm7 = vweird.f32 %v2549_v38 }
 0x867   : > { %v2012_v43 = vsel %vm2009_vm6, %v2011_v39, %v2007_v41  ;;  %2552 = vrcp.f32 %v1997_v40  ;;  %vm2021_vm9 = vmor %vm2019_vm8, %vm2020_vm7  ;;  %v2040_v57 = vand.u32 2147483648, %v1997_v40  ;;  %v2038_v59 = vand.u32 2147483647, %v1997_v40 }
 0x868   : > { %2060 = vst.msk [vmem:[#allocation3] sm:$0xff] %vm2059_vm5, %v2012_v43  ;;  %v2016_v44 = vsub.f32 1.0, %v2015_v42  ;;  %vm2034_vm12 = vweird.f32 %v1997_v40 }
 0x869   : > { %2064 = vst.msk [vmem:[%s2788_s30] sm:$0xff] %vm2059_vm5, %v2012_v43  ;;  %v2041_v61 = vor.u32 1.1754944e-38, %v2040_v57  ;;  %vm2039_vm14 = vcmp.eq.f32.partialorder %v2038_v59, 8.507059e+37 }
 0x86a   : > { %v2017_v46 = vmul.f32 %v2549_v38, %v2016_v44 }
 0x86c   : > { %v2551_v48 = vpop.eup %2550  ;;  %v2018_v49 = vadd.f32 %v2549_v38, %v2017_v46 }
 0x86d   : > { %v2553_v50 = vpop.eup %2552  ;;  %v1998_v52 = vadd.f32 1.0, %v2551_v48 }
 0x86e   : > { %v2022_v53 = vsel %vm2021_vm9, %v2549_v38, %v2018_v49  ;;  %v2030_v54 = vmul.f32 %v2553_v50, %v1997_v40  ;;  %vm2035_vm11 = vweird.f32 %v2553_v50 }
 0x86f   : > { %v2027_v55 = vsel %vm2024_vm10, %v2026_v51, %v2022_v53  ;;  %2554 = vrcp.f32 %v1998_v52  ;;  %vm2036_vm13 = vmor %vm2034_vm12, %vm2035_vm11  ;;  %v2055_v2 = vand.u32 2147483648, %v1998_v52  ;;  %v2053_v4 = vand.u32 2147483647, %v1998_v52 }
 0x870   : > { %2061 = vst.msk [vmem:[#allocation3 + $0x8] sm:$0xff] %vm2059_vm5, %v2027_v55  ;;  %v2031_v56 = vsub.f32 1.0, %v2030_v54  ;;  %vm2049_vm0 = vweird.f32 %v1998_v52 }
 0x871   : > { %2065 = vst.msk [vmem:[%s2788_s30 + $0x8] sm:$0xff] %vm2059_vm5, %v2027_v55  ;;  %v2056_v5 = vor.u32 1.1754944e-38, %v2055_v2  ;;  %vm2054_vm2 = vcmp.eq.f32.partialorder %v2053_v4, 8.507059e+37 }
 0x872   : > { %v2032_v58 = vmul.f32 %v2553_v50, %v2031_v56 }
 0x874   : > { %v2033_v60 = vadd.f32 %v2553_v50, %v2032_v58 }
 0x875   : > { %v2555_v13 = vpop.eup %2554 }
 0x876   : > { %v2037_v62 = vsel %vm2036_vm13, %v2553_v50, %v2033_v60  ;;  %v2045_v63 = vmul.f32 %v2555_v13, %v1998_v52  ;;  %vm2050_vm15 = vweird.f32 %v2555_v13 }
 0x877   : > { %v2042_v0 = vsel %vm2039_vm14, %v2041_v61, %v2037_v62  ;;  %vm2051_vm1 = vmor %vm2049_vm0, %vm2050_vm15 }
 0x878   : > { %2062 = vst.msk [vmem:[#allocation3 + $0x10] sm:$0xff] %vm2059_vm5, %v2042_v0  ;;  %v2046_v1 = vsub.f32 1.0, %v2045_v63 }
 0x879   : > { %2066 = vst.msk [vmem:[%s2788_s30 + $0x10] sm:$0xff] %vm2059_vm5, %v2042_v0 }
 0x87a   : > { %v2047_v3 = vmul.f32 %v2555_v13, %v2046_v1 }
 0x87c   : > { %v2048_v10 = vadd.f32 %v2555_v13, %v2047_v3 }
 0x87e   : > { %v2052_v6 = vsel %vm2051_vm1, %v2555_v13, %v2048_v10 }
 0x87f   : > { %v2057_v7 = vsel %vm2054_vm2, %v2056_v5, %v2052_v6 }
 0x880   : > { %2063 = vst.msk [vmem:[#allocation3 + $0x18] sm:$0xff] %vm2059_vm5, %v2057_v7 }
 0x881   : > { %2067 = vst.msk [vmem:[%s2788_s30 + $0x18] sm:$0xff] %vm2059_vm5, %v2057_v7 }
 0x882 PF: > { %s3171_s7 = sld [smem:[#allocation4_spill]] }
 0x888   : > { %s37_s27 = sadd.s32 1, %s3171_s7  }
 0x889   : > { %p34_p5 = scmp.ge.s32.totalorder %s37_s27, 5  }
 0x88b   :  { %36 = sbr.rel (!%p34_p5) target bundleno = 21 (0x15), region = 210 }

</bundles_post_ra>
